<compile_context>
chip_gen: v5e
topology: v5e:2x2
jax: 0.10.0
libtpu: 0.0.40
codegen_flags: <defaults>
</compile_context>

<pallas_src>
import numpy as np

import jax
import jax.numpy as jnp
from jax.experimental import pallas as pl
from jax.experimental.pallas import tpu as pltpu


# ---------------------------------------------------------------------------
# Static LeNet-5 geometry (fixed by the reference nn.Module)
# ---------------------------------------------------------------------------
H0, W0 = 32, 32          # input spatial size (Cin = 1)
K = 5                    # conv kernel size
C1, H1, W1 = 6, 28, 28   # conv1 output
P1H, P1W = 14, 14        # pool1 output
C2, H2, W2 = 16, 10, 10  # conv2 output
P2H, P2W = 5, 5          # pool2 output
F1, F2, F3 = 120, 84, 10 # fc sizes
NPAD = 128               # lane-dense padded width for the FC chain / output
TB = 8                   # images per grid step (multiple of 8; sweep 8..32)


# ---------------------------------------------------------------------------
# The fused kernel: one grid step == TB images.
# Activations are 2D f32 (rows = h*TB + t, lanes = w*C), kept in vregs/VMEM.
# ---------------------------------------------------------------------------
def _lenet_kernel(x_ref,
                  m1_ref, b1_ref, dwe1_ref, dwo1_ref,
                  m2_ref, b2_ref, dwe2_ref, dwo2_ref,
                  w1_ref, fb1_ref, w2_ref, fb2_ref, w3_ref, fb3_ref,
                  out_ref):
    f32 = jnp.float32
    tb = x_ref.shape[1]                     # static block size (multiple of 8)

    def mm(a, w):
        return jnp.dot(a, w, preferred_element_type=f32)

    # ---- conv1: block-Toeplitz matmuls, batch stacked on M -----------------
    # x block: (H0, TB, W0) -> rows ordered (h, t): (H0*TB, W0)
    x = x_ref[...].reshape(H0 * tb, W0)
    d = [mm(x[i * tb:(i + H1) * tb, :], m1_ref[i]) for i in range(K)]
    c1 = (d[0] + d[1]) + (d[2] + d[3]) + (d[4] + b1_ref[...])   # (H1*TB, 168)

    # ---- pool1: lane decimation on MXU, row decimation on VPU --------------
    pw = jnp.maximum(mm(c1, dwe1_ref[...]), mm(c1, dwo1_ref[...]))  # (H1*TB, 84)
    r = pw.reshape(P1H, 2 * tb, P1W * C1)
    p1 = jnp.maximum(r[:, :tb, :], r[:, tb:, :]).reshape(P1H * tb, P1W * C1)

    # ---- conv2 --------------------------------------------------------------
    d = [mm(p1[i * tb:(i + H2) * tb, :], m2_ref[i]) for i in range(K)]
    c2 = (d[0] + d[1]) + (d[2] + d[3]) + (d[4] + b2_ref[...])   # (H2*TB, 160)

    # ---- pool2 --------------------------------------------------------------
    pw = jnp.maximum(mm(c2, dwe2_ref[...]), mm(c2, dwo2_ref[...]))  # (H2*TB, 80)
    r = pw.reshape(P2H, 2 * tb, P2W * C2)
    p2 = jnp.maximum(r[:, :tb, :], r[:, tb:, :]).reshape(P2H * tb, P2W * C2)

    # ---- fc1: batch-stacked (M = TB), tree-summed over the 5 pooled rows ----
    # fc1 weight rows were pre-permuted at init so this reproduces PyTorch's
    # NCHW Flatten ordering exactly.
    e = [mm(p2[h * tb:(h + 1) * tb, :], w1_ref[h]) for h in range(P2H)]
    h1 = (e[0] + e[1]) + (e[2] + e[3]) + (e[4] + fb1_ref[...])   # (TB, 128)

    # ---- fc2, fc3 (lane-dense 128-padded weights; padding lanes stay 0) -----
    h2 = mm(h1, w2_ref[...]) + fb2_ref[...]
    h3 = mm(h2, w3_ref[...]) + fb3_ref[...]

    out_ref[...] = h3                       # (TB, 128) sublane/lane-dense store


def _resident_spec(arr):
    """Full-array block that stays VMEM-resident across all grid steps."""
    zeros = (0,) * arr.ndim
    return pl.BlockSpec(arr.shape, lambda b: zeros)


def _lenet_pallas(x_hbw, pp, tb):
    """x_hbw: (H0, B_pad, W0) f32 with B_pad % tb == 0 -> (B_pad, 128)."""
    b_pad = x_hbw.shape[1]
    n_steps = b_pad // tb
    weights = (pp["m1"], pp["b1"], pp["dwe1"], pp["dwo1"],
               pp["m2"], pp["b2"], pp["dwe2"], pp["dwo2"],
               pp["w1"], pp["fb1"], pp["w2"], pp["fb2"], pp["w3"], pp["fb3"])
    in_specs = [pl.BlockSpec((H0, tb, W0), lambda b: (0, b, 0))]
    in_specs += [_resident_spec(w) for w in weights]
    return pl.pallas_call(
        _lenet_kernel,
        out_shape=jax.ShapeDtypeStruct((b_pad, NPAD), jnp.float32),
        grid=(n_steps,),
        in_specs=in_specs,
        out_specs=pl.BlockSpec((tb, NPAD), lambda b: (b, 0)),
        compiler_params=pltpu.CompilerParams(
            dimension_semantics=("parallel",)),
    )(x_hbw, *weights)


# ---------------------------------------------------------------------------
# One-time parameter preparation (plain JAX/numpy, outside the kernel hot
# path): block-Toeplitz conv matrices, 0/1 lane-pool selectors, and permuted
# + 128-padded FC weights from the PyTorch-layout parameters.
# ---------------------------------------------------------------------------
def prepare_params(p):
    f32 = jnp.float32
    w1 = p["conv1_w"].astype(f32)          # (6, 1, 5, 5)  OIHW
    w2 = p["conv2_w"].astype(f32)          # (16, 6, 5, 5) OIHW

    # conv1 row-Toeplitz: m1[i, wi, wo*C1 + co] = w1[co, 0, i, wi - wo]
    wi = np.arange(W0)[:, None]
    wo = np.arange(W1)[None, :]
    sel1 = np.stack([(wi - wo) == kw for kw in range(K)], 0).astype(np.float32)
    m1 = jnp.stack([
        jnp.einsum("kwo,ck->woc", jnp.asarray(sel1),
                   w1[:, 0, i, :]).reshape(W0, W1 * C1)
        for i in range(K)])                                   # (5, 32, 168)

    # conv2 row-Toeplitz: m2[i, wi*C1 + ci, wo*C2 + co] = w2[co, ci, i, wi - wo]
    wi = np.arange(P1W)[:, None]
    wo = np.arange(W2)[None, :]
    sel2 = np.stack([(wi - wo) == kw for kw in range(K)], 0).astype(np.float32)
    m2 = jnp.stack([
        jnp.einsum("kwo,cdk->wdoc", jnp.asarray(sel2),
                   w2[:, :, i, :]).reshape(P1W * C1, W2 * C2)
        for i in range(K)])                                   # (5, 84, 160)

    b1row = jnp.tile(p["conv1_b"].astype(f32), W1).reshape(1, W1 * C1)
    b2row = jnp.tile(p["conv2_b"].astype(f32), W2).reshape(1, W2 * C2)

    # 2x2 max-pool lane decimation expressed as 0/1 selection matmuls
    def lane_pool(Wd, Cd):
        Wod = Wd // 2
        e = np.zeros((Wd * Cd, Wod * Cd), np.float32)
        o = np.zeros_like(e)
        for pw in range(Wod):
            for c in range(Cd):
                e[(2 * pw) * Cd + c, pw * Cd + c] = 1.0
                o[(2 * pw + 1) * Cd + c, pw * Cd + c] = 1.0
        return jnp.asarray(e), jnp.asarray(o)

    dwe1, dwo1 = lane_pool(W1, C1)         # (168, 84)
    dwe2, dwo2 = lane_pool(W2, C2)         # (160, 80)

    # fc1: permute torch (c*25 + h*5 + w) rows into the kernel's per-row
    # (w*16 + c) lane order, split by pooled row h; pad N 120 -> 128.
    fc1w = p["fc1_w"].astype(f32).reshape(F1, C2, P2H, P2W)   # (n, c, h, w)
    w1p = jnp.transpose(fc1w, (2, 3, 1, 0)).reshape(P2H, P2W * C2, F1)
    w1p = jnp.pad(w1p, ((0, 0), (0, 0), (0, NPAD - F1)))      # (5, 80, 128)
    fb1 = jnp.pad(p["fc1_b"].astype(f32), (0, NPAD - F1)).reshape(1, NPAD)

    w2p = jnp.pad(p["fc2_w"].astype(f32).T,
                  ((0, NPAD - F1), (0, NPAD - F2)))           # (128, 128)
    fb2 = jnp.pad(p["fc2_b"].astype(f32), (0, NPAD - F2)).reshape(1, NPAD)
    w3p = jnp.pad(p["fc3_w"].astype(f32).T,
                  ((0, NPAD - F2), (0, NPAD - F3)))           # (128, 128)
    fb3 = jnp.pad(p["fc3_b"].astype(f32), (0, NPAD - F3)).reshape(1, NPAD)

    return {
        "m1": m1, "b1": b1row, "dwe1": dwe1, "dwo1": dwo1,
        "m2": m2, "b2": b2row, "dwe2": dwe2, "dwo2": dwo2,
        "w1": w1p, "fb1": fb1, "w2": w2p, "fb2": fb2, "w3": w3p, "fb3": fb3,
    }


# ---------------------------------------------------------------------------
# Parameter init (deterministic, synthetic, PyTorch layouts) and forward pass
# ---------------------------------------------------------------------------
def init_params(key):
    keys = jax.random.split(key, 10)
    s = 0.05
    return {
        "conv1_w": s * jax.random.normal(keys[0], (6, 1, 5, 5), jnp.float32),
        "conv1_b": s * jax.random.normal(keys[1], (6,), jnp.float32),
        "conv2_w": s * jax.random.normal(keys[2], (16, 6, 5, 5), jnp.float32),
        "conv2_b": s * jax.random.normal(keys[3], (16,), jnp.float32),
        "fc1_w": s * jax.random.normal(keys[4], (120, 400), jnp.float32),
        "fc1_b": s * jax.random.normal(keys[5], (120,), jnp.float32),
        "fc2_w": s * jax.random.normal(keys[6], (84, 120), jnp.float32),
        "fc2_b": s * jax.random.normal(keys[7], (84,), jnp.float32),
        "fc3_w": s * jax.random.normal(keys[8], (10, 84), jnp.float32),
        "fc3_b": s * jax.random.normal(keys[9], (10,), jnp.float32),
    }


@jax.jit
def mynet_forward(x_nchw, prepped):
    # NCHW (PyTorch), Cin == 1.
    B = x_nchw.shape[0]
    b_pad = -(-B // TB) * TB                       # pad batch to a multiple of TB
    x = x_nchw[:, 0, :, :].astype(jnp.float32)     # (B, 32, 32)
    x = jnp.transpose(x, (1, 0, 2))                # (32, B, 32): h-major, t-minor
    if b_pad != B:
        x = jnp.pad(x, ((0, 0), (0, b_pad - B), (0, 0)))
    out = _lenet_pallas(x, prepped, TB)            # (b_pad, 128) lane-dense
    return out[:B, :F3]                            # (B, 10)


# Pure-JAX reference (same math, for a correctness check only)
def _reference_forward(x_nchw, p):
    x = x_nchw.astype(jnp.float32)
    y = jax.lax.conv_general_dilated(
        x, p["conv1_w"], (1, 1), "VALID",
        dimension_numbers=("NCHW", "OIHW", "NCHW")) + p["conv1_b"][None, :, None, None]
    y = jax.lax.reduce_window(y, -jnp.inf, jax.lax.max,
                              (1, 1, 2, 2), (1, 1, 2, 2), "VALID")
    y = jax.lax.conv_general_dilated(
        y, p["conv2_w"], (1, 1), "VALID",
        dimension_numbers=("NCHW", "OIHW", "NCHW")) + p["conv2_b"][None, :, None, None]
    y = jax.lax.reduce_window(y, -jnp.inf, jax.lax.max,
                              (1, 1, 2, 2), (1, 1, 2, 2), "VALID")
    f = y.reshape(y.shape[0], -1)
    f = f @ p["fc1_w"].T + p["fc1_b"]
    f = f @ p["fc2_w"].T + p["fc2_b"]
    f = f @ p["fc3_w"].T + p["fc3_b"]
    return f


if __name__ == "__main__":
    key = jax.random.PRNGKey(0)
    k_x, k_p = jax.random.split(key)
    # LeNet-style input: batch=2, 1 channel, 32x32 spatial (NCHW as in PyTorch).
    x = jax.random.normal(k_x, (2, 1, 32, 32), jnp.float32)
    params = init_params(k_p)
    prepped = prepare_params(params)

    out = mynet_forward(x, prepped)
    jax.block_until_ready(out)
    assert out.shape == (2, 10)

    ref = _reference_forward(x, params)
    max_err = float(jnp.max(jnp.abs(out - ref)))
    # loose tolerance: default TPU matmul precision may differ slightly
    assert max_err < 1e-2, f"mismatch vs reference: {max_err}"

    print("KERNEL_OK")
</pallas_src>

<mosaic_0001>
module attributes {stable_mosaic.version = 11 : i64} {
  func.func @_lenet_kernel(%arg0: i32, %arg1: memref<32x8x32xf32, #tpu.memory_space<vmem>>, %arg2: memref<5x32x168xf32, #tpu.memory_space<vmem>>, %arg3: memref<1x168xf32, #tpu.memory_space<vmem>>, %arg4: memref<168x84xf32, #tpu.memory_space<vmem>>, %arg5: memref<168x84xf32, #tpu.memory_space<vmem>>, %arg6: memref<5x84x160xf32, #tpu.memory_space<vmem>>, %arg7: memref<1x160xf32, #tpu.memory_space<vmem>>, %arg8: memref<160x80xf32, #tpu.memory_space<vmem>>, %arg9: memref<160x80xf32, #tpu.memory_space<vmem>>, %arg10: memref<5x80x128xf32, #tpu.memory_space<vmem>>, %arg11: memref<1x128xf32, #tpu.memory_space<vmem>>, %arg12: memref<128x128xf32, #tpu.memory_space<vmem>>, %arg13: memref<1x128xf32, #tpu.memory_space<vmem>>, %arg14: memref<128x128xf32, #tpu.memory_space<vmem>>, %arg15: memref<1x128xf32, #tpu.memory_space<vmem>>, %arg16: memref<8x128xf32, #tpu.memory_space<vmem>>) attributes {dimension_semantics = [#tpu.dimension_semantics<parallel>], iteration_bounds = array<i64: 1>, scalar_prefetch = 0 : i64, scratch_operands = 0 : i64, tpu.core_type = #tpu.core_type<tc>, window_params = [{transform_indices = @transform_0, window_bounds = array<i64: 32, 8, 32>}, {pipeline_mode = #tpu.pipeline_mode<synchronous>, transform_indices = @transform_1, window_bounds = array<i64: 5, 32, 168>}, {pipeline_mode = #tpu.pipeline_mode<synchronous>, transform_indices = @transform_2, window_bounds = array<i64: 1, 168>}, {pipeline_mode = #tpu.pipeline_mode<synchronous>, transform_indices = @transform_3, window_bounds = array<i64: 168, 84>}, {pipeline_mode = #tpu.pipeline_mode<synchronous>, transform_indices = @transform_4, window_bounds = array<i64: 168, 84>}, {pipeline_mode = #tpu.pipeline_mode<synchronous>, transform_indices = @transform_5, window_bounds = array<i64: 5, 84, 160>}, {pipeline_mode = #tpu.pipeline_mode<synchronous>, transform_indices = @transform_6, window_bounds = array<i64: 1, 160>}, {pipeline_mode = #tpu.pipeline_mode<synchronous>, transform_indices = @transform_7, window_bounds = array<i64: 160, 80>}, {pipeline_mode = #tpu.pipeline_mode<synchronous>, transform_indices = @transform_8, window_bounds = array<i64: 160, 80>}, {pipeline_mode = #tpu.pipeline_mode<synchronous>, transform_indices = @transform_9, window_bounds = array<i64: 5, 80, 128>}, {pipeline_mode = #tpu.pipeline_mode<synchronous>, transform_indices = @transform_10, window_bounds = array<i64: 1, 128>}, {pipeline_mode = #tpu.pipeline_mode<synchronous>, transform_indices = @transform_11, window_bounds = array<i64: 128, 128>}, {pipeline_mode = #tpu.pipeline_mode<synchronous>, transform_indices = @transform_12, window_bounds = array<i64: 1, 128>}, {pipeline_mode = #tpu.pipeline_mode<synchronous>, transform_indices = @transform_13, window_bounds = array<i64: 128, 128>}, {pipeline_mode = #tpu.pipeline_mode<synchronous>, transform_indices = @transform_14, window_bounds = array<i64: 1, 128>}, {transform_indices = @transform_15, window_bounds = array<i64: 8, 128>}]} {
    %c0 = arith.constant 0 : index
    %c0_0 = arith.constant 0 : index
    %c0_1 = arith.constant 0 : index
    %0 = vector.load %arg1[%c0, %c0_0, %c0_1] : memref<32x8x32xf32, #tpu.memory_space<vmem>>, vector<32x8x32xf32>
    %1 = vector.shape_cast %0 : vector<32x8x32xf32> to vector<256x32xf32>
    %2 = vector.extract_strided_slice %1 {offsets = [0, 0], sizes = [224, 32], strides = [1, 1]} : vector<256x32xf32> to vector<224x32xf32>
    %c0_2 = arith.constant 0 : index
    %c0_3 = arith.constant 0 : index
    %c0_4 = arith.constant 0 : index
    %3 = vector.load %arg2[%c0_2, %c0_3, %c0_4] : memref<5x32x168xf32, #tpu.memory_space<vmem>>, vector<1x32x168xf32>
    %4 = vector.shape_cast %3 : vector<1x32x168xf32> to vector<32x168xf32>
    %cst = arith.constant dense<0.000000e+00> : vector<224x168xf32>
    %5 = tpu.matmul %2, %4, %cst {dimension_numbers = #tpu.dot_dimension_numbers<[1], [0], [0], [1], [0, 0, 1, 1], [], []>} : vector<224x32xf32>, vector<32x168xf32>, vector<224x168xf32> -> vector<224x168xf32>
    %6 = vector.extract_strided_slice %1 {offsets = [8, 0], sizes = [224, 32], strides = [1, 1]} : vector<256x32xf32> to vector<224x32xf32>
    %c1 = arith.constant 1 : index
    %c0_5 = arith.constant 0 : index
    %c0_6 = arith.constant 0 : index
    %7 = vector.load %arg2[%c1, %c0_5, %c0_6] : memref<5x32x168xf32, #tpu.memory_space<vmem>>, vector<1x32x168xf32>
    %8 = vector.shape_cast %7 : vector<1x32x168xf32> to vector<32x168xf32>
    %cst_7 = arith.constant dense<0.000000e+00> : vector<224x168xf32>
    %9 = tpu.matmul %6, %8, %cst_7 {dimension_numbers = #tpu.dot_dimension_numbers<[1], [0], [0], [1], [0, 0, 1, 1], [], []>} : vector<224x32xf32>, vector<32x168xf32>, vector<224x168xf32> -> vector<224x168xf32>
    %10 = vector.extract_strided_slice %1 {offsets = [16, 0], sizes = [224, 32], strides = [1, 1]} : vector<256x32xf32> to vector<224x32xf32>
    %c2 = arith.constant 2 : index
    %c0_8 = arith.constant 0 : index
    %c0_9 = arith.constant 0 : index
    %11 = vector.load %arg2[%c2, %c0_8, %c0_9] : memref<5x32x168xf32, #tpu.memory_space<vmem>>, vector<1x32x168xf32>
    %12 = vector.shape_cast %11 : vector<1x32x168xf32> to vector<32x168xf32>
    %cst_10 = arith.constant dense<0.000000e+00> : vector<224x168xf32>
    %13 = tpu.matmul %10, %12, %cst_10 {dimension_numbers = #tpu.dot_dimension_numbers<[1], [0], [0], [1], [0, 0, 1, 1], [], []>} : vector<224x32xf32>, vector<32x168xf32>, vector<224x168xf32> -> vector<224x168xf32>
    %14 = vector.extract_strided_slice %1 {offsets = [24, 0], sizes = [224, 32], strides = [1, 1]} : vector<256x32xf32> to vector<224x32xf32>
    %c3 = arith.constant 3 : index
    %c0_11 = arith.constant 0 : index
    %c0_12 = arith.constant 0 : index
    %15 = vector.load %arg2[%c3, %c0_11, %c0_12] : memref<5x32x168xf32, #tpu.memory_space<vmem>>, vector<1x32x168xf32>
    %16 = vector.shape_cast %15 : vector<1x32x168xf32> to vector<32x168xf32>
    %cst_13 = arith.constant dense<0.000000e+00> : vector<224x168xf32>
    %17 = tpu.matmul %14, %16, %cst_13 {dimension_numbers = #tpu.dot_dimension_numbers<[1], [0], [0], [1], [0, 0, 1, 1], [], []>} : vector<224x32xf32>, vector<32x168xf32>, vector<224x168xf32> -> vector<224x168xf32>
    %18 = vector.extract_strided_slice %1 {offsets = [32, 0], sizes = [224, 32], strides = [1, 1]} : vector<256x32xf32> to vector<224x32xf32>
    %c4 = arith.constant 4 : index
    %c0_14 = arith.constant 0 : index
    %c0_15 = arith.constant 0 : index
    %19 = vector.load %arg2[%c4, %c0_14, %c0_15] : memref<5x32x168xf32, #tpu.memory_space<vmem>>, vector<1x32x168xf32>
    %20 = vector.shape_cast %19 : vector<1x32x168xf32> to vector<32x168xf32>
    %cst_16 = arith.constant dense<0.000000e+00> : vector<224x168xf32>
    %21 = tpu.matmul %18, %20, %cst_16 {dimension_numbers = #tpu.dot_dimension_numbers<[1], [0], [0], [1], [0, 0, 1, 1], [], []>} : vector<224x32xf32>, vector<32x168xf32>, vector<224x168xf32> -> vector<224x168xf32>
    %22 = arith.addf %5, %9 : vector<224x168xf32>
    %23 = arith.addf %13, %17 : vector<224x168xf32>
    %24 = arith.addf %22, %23 : vector<224x168xf32>
    %c0_17 = arith.constant 0 : index
    %c0_18 = arith.constant 0 : index
    %25 = vector.load %arg3[%c0_17, %c0_18] : memref<1x168xf32, #tpu.memory_space<vmem>>, vector<1x168xf32>
    %26 = vector.broadcast %25 : vector<1x168xf32> to vector<224x168xf32>
    %27 = arith.addf %21, %26 : vector<224x168xf32>
    %28 = arith.addf %24, %27 : vector<224x168xf32>
    %c0_19 = arith.constant 0 : index
    %c0_20 = arith.constant 0 : index
    %29 = vector.load %arg4[%c0_19, %c0_20] : memref<168x84xf32, #tpu.memory_space<vmem>>, vector<168x84xf32>
    %cst_21 = arith.constant dense<0.000000e+00> : vector<224x84xf32>
    %30 = tpu.matmul %28, %29, %cst_21 {dimension_numbers = #tpu.dot_dimension_numbers<[1], [0], [0], [1], [0, 0, 1, 1], [], []>} : vector<224x168xf32>, vector<168x84xf32>, vector<224x84xf32> -> vector<224x84xf32>
    %c0_22 = arith.constant 0 : index
    %c0_23 = arith.constant 0 : index
    %31 = vector.load %arg5[%c0_22, %c0_23] : memref<168x84xf32, #tpu.memory_space<vmem>>, vector<168x84xf32>
    %cst_24 = arith.constant dense<0.000000e+00> : vector<224x84xf32>
    %32 = tpu.matmul %28, %31, %cst_24 {dimension_numbers = #tpu.dot_dimension_numbers<[1], [0], [0], [1], [0, 0, 1, 1], [], []>} : vector<224x168xf32>, vector<168x84xf32>, vector<224x84xf32> -> vector<224x84xf32>
    %33 = arith.maximumf %30, %32 : vector<224x84xf32>
    %34 = vector.shape_cast %33 : vector<224x84xf32> to vector<14x16x84xf32>
    %35 = vector.extract_strided_slice %34 {offsets = [0, 0, 0], sizes = [14, 8, 84], strides = [1, 1, 1]} : vector<14x16x84xf32> to vector<14x8x84xf32>
    %36 = vector.extract_strided_slice %34 {offsets = [0, 8, 0], sizes = [14, 8, 84], strides = [1, 1, 1]} : vector<14x16x84xf32> to vector<14x8x84xf32>
    %37 = arith.maximumf %35, %36 : vector<14x8x84xf32>
    %38 = vector.shape_cast %37 : vector<14x8x84xf32> to vector<112x84xf32>
    %39 = vector.extract_strided_slice %38 {offsets = [0, 0], sizes = [80, 84], strides = [1, 1]} : vector<112x84xf32> to vector<80x84xf32>
    %c0_25 = arith.constant 0 : index
    %c0_26 = arith.constant 0 : index
    %c0_27 = arith.constant 0 : index
    %40 = vector.load %arg6[%c0_25, %c0_26, %c0_27] : memref<5x84x160xf32, #tpu.memory_space<vmem>>, vector<1x84x160xf32>
    %41 = vector.shape_cast %40 : vector<1x84x160xf32> to vector<84x160xf32>
    %cst_28 = arith.constant dense<0.000000e+00> : vector<80x160xf32>
    %42 = tpu.matmul %39, %41, %cst_28 {dimension_numbers = #tpu.dot_dimension_numbers<[1], [0], [0], [1], [0, 0, 1, 1], [], []>} : vector<80x84xf32>, vector<84x160xf32>, vector<80x160xf32> -> vector<80x160xf32>
    %43 = vector.extract_strided_slice %38 {offsets = [8, 0], sizes = [80, 84], strides = [1, 1]} : vector<112x84xf32> to vector<80x84xf32>
    %c1_29 = arith.constant 1 : index
    %c0_30 = arith.constant 0 : index
    %c0_31 = arith.constant 0 : index
    %44 = vector.load %arg6[%c1_29, %c0_30, %c0_31] : memref<5x84x160xf32, #tpu.memory_space<vmem>>, vector<1x84x160xf32>
    %45 = vector.shape_cast %44 : vector<1x84x160xf32> to vector<84x160xf32>
    %cst_32 = arith.constant dense<0.000000e+00> : vector<80x160xf32>
    %46 = tpu.matmul %43, %45, %cst_32 {dimension_numbers = #tpu.dot_dimension_numbers<[1], [0], [0], [1], [0, 0, 1, 1], [], []>} : vector<80x84xf32>, vector<84x160xf32>, vector<80x160xf32> -> vector<80x160xf32>
    %47 = vector.extract_strided_slice %38 {offsets = [16, 0], sizes = [80, 84], strides = [1, 1]} : vector<112x84xf32> to vector<80x84xf32>
    %c2_33 = arith.constant 2 : index
    %c0_34 = arith.constant 0 : index
    %c0_35 = arith.constant 0 : index
    %48 = vector.load %arg6[%c2_33, %c0_34, %c0_35] : memref<5x84x160xf32, #tpu.memory_space<vmem>>, vector<1x84x160xf32>
    %49 = vector.shape_cast %48 : vector<1x84x160xf32> to vector<84x160xf32>
    %cst_36 = arith.constant dense<0.000000e+00> : vector<80x160xf32>
    %50 = tpu.matmul %47, %49, %cst_36 {dimension_numbers = #tpu.dot_dimension_numbers<[1], [0], [0], [1], [0, 0, 1, 1], [], []>} : vector<80x84xf32>, vector<84x160xf32>, vector<80x160xf32> -> vector<80x160xf32>
    %51 = vector.extract_strided_slice %38 {offsets = [24, 0], sizes = [80, 84], strides = [1, 1]} : vector<112x84xf32> to vector<80x84xf32>
    %c3_37 = arith.constant 3 : index
    %c0_38 = arith.constant 0 : index
    %c0_39 = arith.constant 0 : index
    %52 = vector.load %arg6[%c3_37, %c0_38, %c0_39] : memref<5x84x160xf32, #tpu.memory_space<vmem>>, vector<1x84x160xf32>
    %53 = vector.shape_cast %52 : vector<1x84x160xf32> to vector<84x160xf32>
    %cst_40 = arith.constant dense<0.000000e+00> : vector<80x160xf32>
    %54 = tpu.matmul %51, %53, %cst_40 {dimension_numbers = #tpu.dot_dimension_numbers<[1], [0], [0], [1], [0, 0, 1, 1], [], []>} : vector<80x84xf32>, vector<84x160xf32>, vector<80x160xf32> -> vector<80x160xf32>
    %55 = vector.extract_strided_slice %38 {offsets = [32, 0], sizes = [80, 84], strides = [1, 1]} : vector<112x84xf32> to vector<80x84xf32>
    %c4_41 = arith.constant 4 : index
    %c0_42 = arith.constant 0 : index
    %c0_43 = arith.constant 0 : index
    %56 = vector.load %arg6[%c4_41, %c0_42, %c0_43] : memref<5x84x160xf32, #tpu.memory_space<vmem>>, vector<1x84x160xf32>
    %57 = vector.shape_cast %56 : vector<1x84x160xf32> to vector<84x160xf32>
    %cst_44 = arith.constant dense<0.000000e+00> : vector<80x160xf32>
    %58 = tpu.matmul %55, %57, %cst_44 {dimension_numbers = #tpu.dot_dimension_numbers<[1], [0], [0], [1], [0, 0, 1, 1], [], []>} : vector<80x84xf32>, vector<84x160xf32>, vector<80x160xf32> -> vector<80x160xf32>
    %59 = arith.addf %42, %46 : vector<80x160xf32>
    %60 = arith.addf %50, %54 : vector<80x160xf32>
    %61 = arith.addf %59, %60 : vector<80x160xf32>
    %c0_45 = arith.constant 0 : index
    %c0_46 = arith.constant 0 : index
    %62 = vector.load %arg7[%c0_45, %c0_46] : memref<1x160xf32, #tpu.memory_space<vmem>>, vector<1x160xf32>
    %63 = vector.broadcast %62 : vector<1x160xf32> to vector<80x160xf32>
    %64 = arith.addf %58, %63 : vector<80x160xf32>
    %65 = arith.addf %61, %64 : vector<80x160xf32>
    %c0_47 = arith.constant 0 : index
    %c0_48 = arith.constant 0 : index
    %66 = vector.load %arg8[%c0_47, %c0_48] : memref<160x80xf32, #tpu.memory_space<vmem>>, vector<160x80xf32>
    %cst_49 = arith.constant dense<0.000000e+00> : vector<80x80xf32>
    %67 = tpu.matmul %65, %66, %cst_49 {dimension_numbers = #tpu.dot_dimension_numbers<[1], [0], [0], [1], [0, 0, 1, 1], [], []>} : vector<80x160xf32>, vector<160x80xf32>, vector<80x80xf32> -> vector<80x80xf32>
    %c0_50 = arith.constant 0 : index
    %c0_51 = arith.constant 0 : index
    %68 = vector.load %arg9[%c0_50, %c0_51] : memref<160x80xf32, #tpu.memory_space<vmem>>, vector<160x80xf32>
    %cst_52 = arith.constant dense<0.000000e+00> : vector<80x80xf32>
    %69 = tpu.matmul %65, %68, %cst_52 {dimension_numbers = #tpu.dot_dimension_numbers<[1], [0], [0], [1], [0, 0, 1, 1], [], []>} : vector<80x160xf32>, vector<160x80xf32>, vector<80x80xf32> -> vector<80x80xf32>
    %70 = arith.maximumf %67, %69 : vector<80x80xf32>
    %71 = vector.shape_cast %70 : vector<80x80xf32> to vector<5x16x80xf32>
    %72 = vector.extract_strided_slice %71 {offsets = [0, 0, 0], sizes = [5, 8, 80], strides = [1, 1, 1]} : vector<5x16x80xf32> to vector<5x8x80xf32>
    %73 = vector.extract_strided_slice %71 {offsets = [0, 8, 0], sizes = [5, 8, 80], strides = [1, 1, 1]} : vector<5x16x80xf32> to vector<5x8x80xf32>
    %74 = arith.maximumf %72, %73 : vector<5x8x80xf32>
    %75 = vector.shape_cast %74 : vector<5x8x80xf32> to vector<40x80xf32>
    %76 = vector.extract_strided_slice %75 {offsets = [0, 0], sizes = [8, 80], strides = [1, 1]} : vector<40x80xf32> to vector<8x80xf32>
    %c0_53 = arith.constant 0 : index
    %c0_54 = arith.constant 0 : index
    %c0_55 = arith.constant 0 : index
    %77 = vector.load %arg10[%c0_53, %c0_54, %c0_55] : memref<5x80x128xf32, #tpu.memory_space<vmem>>, vector<1x80x128xf32>
    %78 = vector.shape_cast %77 : vector<1x80x128xf32> to vector<80x128xf32>
    %cst_56 = arith.constant dense<0.000000e+00> : vector<8x128xf32>
    %79 = tpu.matmul %76, %78, %cst_56 {dimension_numbers = #tpu.dot_dimension_numbers<[1], [0], [0], [1], [0, 0, 1, 1], [], []>} : vector<8x80xf32>, vector<80x128xf32>, vector<8x128xf32> -> vector<8x128xf32>
    %80 = vector.extract_strided_slice %75 {offsets = [8, 0], sizes = [8, 80], strides = [1, 1]} : vector<40x80xf32> to vector<8x80xf32>
    %c1_57 = arith.constant 1 : index
    %c0_58 = arith.constant 0 : index
    %c0_59 = arith.constant 0 : index
    %81 = vector.load %arg10[%c1_57, %c0_58, %c0_59] : memref<5x80x128xf32, #tpu.memory_space<vmem>>, vector<1x80x128xf32>
    %82 = vector.shape_cast %81 : vector<1x80x128xf32> to vector<80x128xf32>
    %cst_60 = arith.constant dense<0.000000e+00> : vector<8x128xf32>
    %83 = tpu.matmul %80, %82, %cst_60 {dimension_numbers = #tpu.dot_dimension_numbers<[1], [0], [0], [1], [0, 0, 1, 1], [], []>} : vector<8x80xf32>, vector<80x128xf32>, vector<8x128xf32> -> vector<8x128xf32>
    %84 = vector.extract_strided_slice %75 {offsets = [16, 0], sizes = [8, 80], strides = [1, 1]} : vector<40x80xf32> to vector<8x80xf32>
    %c2_61 = arith.constant 2 : index
    %c0_62 = arith.constant 0 : index
    %c0_63 = arith.constant 0 : index
    %85 = vector.load %arg10[%c2_61, %c0_62, %c0_63] : memref<5x80x128xf32, #tpu.memory_space<vmem>>, vector<1x80x128xf32>
    %86 = vector.shape_cast %85 : vector<1x80x128xf32> to vector<80x128xf32>
    %cst_64 = arith.constant dense<0.000000e+00> : vector<8x128xf32>
    %87 = tpu.matmul %84, %86, %cst_64 {dimension_numbers = #tpu.dot_dimension_numbers<[1], [0], [0], [1], [0, 0, 1, 1], [], []>} : vector<8x80xf32>, vector<80x128xf32>, vector<8x128xf32> -> vector<8x128xf32>
    %88 = vector.extract_strided_slice %75 {offsets = [24, 0], sizes = [8, 80], strides = [1, 1]} : vector<40x80xf32> to vector<8x80xf32>
    %c3_65 = arith.constant 3 : index
    %c0_66 = arith.constant 0 : index
    %c0_67 = arith.constant 0 : index
    %89 = vector.load %arg10[%c3_65, %c0_66, %c0_67] : memref<5x80x128xf32, #tpu.memory_space<vmem>>, vector<1x80x128xf32>
    %90 = vector.shape_cast %89 : vector<1x80x128xf32> to vector<80x128xf32>
    %cst_68 = arith.constant dense<0.000000e+00> : vector<8x128xf32>
    %91 = tpu.matmul %88, %90, %cst_68 {dimension_numbers = #tpu.dot_dimension_numbers<[1], [0], [0], [1], [0, 0, 1, 1], [], []>} : vector<8x80xf32>, vector<80x128xf32>, vector<8x128xf32> -> vector<8x128xf32>
    %92 = vector.extract_strided_slice %75 {offsets = [32, 0], sizes = [8, 80], strides = [1, 1]} : vector<40x80xf32> to vector<8x80xf32>
    %c4_69 = arith.constant 4 : index
    %c0_70 = arith.constant 0 : index
    %c0_71 = arith.constant 0 : index
    %93 = vector.load %arg10[%c4_69, %c0_70, %c0_71] : memref<5x80x128xf32, #tpu.memory_space<vmem>>, vector<1x80x128xf32>
    %94 = vector.shape_cast %93 : vector<1x80x128xf32> to vector<80x128xf32>
    %cst_72 = arith.constant dense<0.000000e+00> : vector<8x128xf32>
    %95 = tpu.matmul %92, %94, %cst_72 {dimension_numbers = #tpu.dot_dimension_numbers<[1], [0], [0], [1], [0, 0, 1, 1], [], []>} : vector<8x80xf32>, vector<80x128xf32>, vector<8x128xf32> -> vector<8x128xf32>
    %96 = arith.addf %79, %83 : vector<8x128xf32>
    %97 = arith.addf %87, %91 : vector<8x128xf32>
    %98 = arith.addf %96, %97 : vector<8x128xf32>
    %c0_73 = arith.constant 0 : index
    %c0_74 = arith.constant 0 : index
    %99 = vector.load %arg11[%c0_73, %c0_74] : memref<1x128xf32, #tpu.memory_space<vmem>>, vector<1x128xf32>
    %100 = vector.broadcast %99 : vector<1x128xf32> to vector<8x128xf32>
    %101 = arith.addf %95, %100 : vector<8x128xf32>
    %102 = arith.addf %98, %101 : vector<8x128xf32>
    %c0_75 = arith.constant 0 : index
    %c0_76 = arith.constant 0 : index
    %103 = vector.load %arg12[%c0_75, %c0_76] : memref<128x128xf32, #tpu.memory_space<vmem>>, vector<128x128xf32>
    %cst_77 = arith.constant dense<0.000000e+00> : vector<8x128xf32>
    %104 = tpu.matmul %102, %103, %cst_77 {dimension_numbers = #tpu.dot_dimension_numbers<[1], [0], [0], [1], [0, 0, 1, 1], [], []>} : vector<8x128xf32>, vector<128x128xf32>, vector<8x128xf32> -> vector<8x128xf32>
    %c0_78 = arith.constant 0 : index
    %c0_79 = arith.constant 0 : index
    %105 = vector.load %arg13[%c0_78, %c0_79] : memref<1x128xf32, #tpu.memory_space<vmem>>, vector<1x128xf32>
    %106 = vector.broadcast %105 : vector<1x128xf32> to vector<8x128xf32>
    %107 = arith.addf %104, %106 : vector<8x128xf32>
    %c0_80 = arith.constant 0 : index
    %c0_81 = arith.constant 0 : index
    %108 = vector.load %arg14[%c0_80, %c0_81] : memref<128x128xf32, #tpu.memory_space<vmem>>, vector<128x128xf32>
    %cst_82 = arith.constant dense<0.000000e+00> : vector<8x128xf32>
    %109 = tpu.matmul %107, %108, %cst_82 {dimension_numbers = #tpu.dot_dimension_numbers<[1], [0], [0], [1], [0, 0, 1, 1], [], []>} : vector<8x128xf32>, vector<128x128xf32>, vector<8x128xf32> -> vector<8x128xf32>
    %c0_83 = arith.constant 0 : index
    %c0_84 = arith.constant 0 : index
    %110 = vector.load %arg15[%c0_83, %c0_84] : memref<1x128xf32, #tpu.memory_space<vmem>>, vector<1x128xf32>
    %111 = vector.broadcast %110 : vector<1x128xf32> to vector<8x128xf32>
    %112 = arith.addf %109, %111 : vector<8x128xf32>
    %c0_85 = arith.constant 0 : index
    %c0_86 = arith.constant 0 : index
    %113 = vector.load %arg16[%c0_85, %c0_86] : memref<8x128xf32, #tpu.memory_space<vmem>>, vector<8x128xf32>
    tpu.vector_store %arg16[%c0_85, %c0_86], %112 {strides = array<i32>} : memref<8x128xf32, #tpu.memory_space<vmem>>, vector<8x128xf32>,
    return
  }
  func.func @transform_0(%arg0: i32) -> (i32, i32, i32) {
    %c0_i32 = arith.constant 0 : i32
    %c0_i32_0 = arith.constant 0 : i32
    %c0_i32_1 = arith.constant 0 : i32
    return %c0_i32, %arg0, %c0_i32_0 : i32, i32, i32
  }
  func.func @transform_1(%arg0: i32) -> (i32, i32, i32) {
    %c0_i32 = arith.constant 0 : i32
    %c0_i32_0 = arith.constant 0 : i32
    %c0_i32_1 = arith.constant 0 : i32
    %c0_i32_2 = arith.constant 0 : i32
    return %c0_i32, %c0_i32_0, %c0_i32_1 : i32, i32, i32
  }
  func.func @transform_2(%arg0: i32) -> (i32, i32) {
    %c0_i32 = arith.constant 0 : i32
    %c0_i32_0 = arith.constant 0 : i32
    %c0_i32_1 = arith.constant 0 : i32
    return %c0_i32, %c0_i32_0 : i32, i32
  }
  func.func @transform_3(%arg0: i32) -> (i32, i32) {
    %c0_i32 = arith.constant 0 : i32
    %c0_i32_0 = arith.constant 0 : i32
    %c0_i32_1 = arith.constant 0 : i32
    return %c0_i32, %c0_i32_0 : i32, i32
  }
  func.func @transform_4(%arg0: i32) -> (i32, i32) {
    %c0_i32 = arith.constant 0 : i32
    %c0_i32_0 = arith.constant 0 : i32
    %c0_i32_1 = arith.constant 0 : i32
    return %c0_i32, %c0_i32_0 : i32, i32
  }
  func.func @transform_5(%arg0: i32) -> (i32, i32, i32) {
    %c0_i32 = arith.constant 0 : i32
    %c0_i32_0 = arith.constant 0 : i32
    %c0_i32_1 = arith.constant 0 : i32
    %c0_i32_2 = arith.constant 0 : i32
    return %c0_i32, %c0_i32_0, %c0_i32_1 : i32, i32, i32
  }
  func.func @transform_6(%arg0: i32) -> (i32, i32) {
    %c0_i32 = arith.constant 0 : i32
    %c0_i32_0 = arith.constant 0 : i32
    %c0_i32_1 = arith.constant 0 : i32
    return %c0_i32, %c0_i32_0 : i32, i32
  }
  func.func @transform_7(%arg0: i32) -> (i32, i32) {
    %c0_i32 = arith.constant 0 : i32
    %c0_i32_0 = arith.constant 0 : i32
    %c0_i32_1 = arith.constant 0 : i32
    return %c0_i32, %c0_i32_0 : i32, i32
  }
  func.func @transform_8(%arg0: i32) -> (i32, i32) {
    %c0_i32 = arith.constant 0 : i32
    %c0_i32_0 = arith.constant 0 : i32
    %c0_i32_1 = arith.constant 0 : i32
    return %c0_i32, %c0_i32_0 : i32, i32
  }
  func.func @transform_9(%arg0: i32) -> (i32, i32, i32) {
    %c0_i32 = arith.constant 0 : i32
    %c0_i32_0 = arith.constant 0 : i32
    %c0_i32_1 = arith.constant 0 : i32
    %c0_i32_2 = arith.constant 0 : i32
    return %c0_i32, %c0_i32_0, %c0_i32_1 : i32, i32, i32
  }
  func.func @transform_10(%arg0: i32) -> (i32, i32) {
    %c0_i32 = arith.constant 0 : i32
    %c0_i32_0 = arith.constant 0 : i32
    %c0_i32_1 = arith.constant 0 : i32
    return %c0_i32, %c0_i32_0 : i32, i32
  }
  func.func @transform_11(%arg0: i32) -> (i32, i32) {
    %c0_i32 = arith.constant 0 : i32
    %c0_i32_0 = arith.constant 0 : i32
    %c0_i32_1 = arith.constant 0 : i32
    return %c0_i32, %c0_i32_0 : i32, i32
  }
  func.func @transform_12(%arg0: i32) -> (i32, i32) {
    %c0_i32 = arith.constant 0 : i32
    %c0_i32_0 = arith.constant 0 : i32
    %c0_i32_1 = arith.constant 0 : i32
    return %c0_i32, %c0_i32_0 : i32, i32
  }
  func.func @transform_13(%arg0: i32) -> (i32, i32) {
    %c0_i32 = arith.constant 0 : i32
    %c0_i32_0 = arith.constant 0 : i32
    %c0_i32_1 = arith.constant 0 : i32
    return %c0_i32, %c0_i32_0 : i32, i32
  }
  func.func @transform_14(%arg0: i32) -> (i32, i32) {
    %c0_i32 = arith.constant 0 : i32
    %c0_i32_0 = arith.constant 0 : i32
    %c0_i32_1 = arith.constant 0 : i32
    return %c0_i32, %c0_i32_0 : i32, i32
  }
  func.func @transform_15(%arg0: i32) -> (i32, i32) {
    %c0_i32 = arith.constant 0 : i32
    %c0_i32_0 = arith.constant 0 : i32
    return %arg0, %c0_i32 : i32, i32
  }
}

</mosaic_0001>

<bundles_post_ra>
// kernel: mynet_forward.1
= control target key start
LH: loop header
LB: loop body
LE: loop exit
PB: predicated region body
PF: predicated region fallthrough
CT: control target
= control target key end

     0   :  { %vm99_vm0 = vcmask 261120   ;;  %vm1372_vm1 = vcmask 326656   ;;  %vm2000_vm2 = vcmask 1043456   ;;  %vm1969_vm3 = vcmask 687104   ;;  %s7118_s1 = inlined_call_operand.vmem [shape: f32[5,32,168], index: 1, kind: input, shape index: {}]   ;;  %s7119_s0 = inlined_call_operand.vmem [shape: f32[32,8,32], index: 0, kind: input, shape index: {}]   ;;  %s7120_s3 = inlined_call_operand.vmem [shape: f32[168,84], index: 3, kind: input, shape index: {}]   ;;  %s7121_s4 = inlined_call_operand.vmem [shape: f32[168,84], index: 4, kind: input, shape index: {}]   ;;  %s7122_s2 = inlined_call_operand.vmem [shape: f32[1,168], index: 2, kind: input, shape index: {}]   ;;  %s7123_s5 = inlined_call_operand.vmem [shape: f32[5,84,160], index: 5, kind: input, shape index: {}]   ;;  %s7124_s8 = inlined_call_operand.vmem [shape: f32[160,80], index: 8, kind: input, shape index: {}]   ;;  %s7125_s7 = inlined_call_operand.vmem [shape: f32[160,80], index: 7, kind: input, shape index: {}]   ;;  %s7126_s6 = inlined_call_operand.vmem [shape: f32[1,160], index: 6, kind: input, shape index: {}]   ;;  %s7127_s9 = inlined_call_operand.vmem [shape: f32[5,80,128], index: 9, kind: input, shape index: {}]   ;;  %s7128_s10 = inlined_call_operand.vmem [shape: f32[1,128], index: 10, kind: input, shape index: {}]   ;;  %s7129_s12 = inlined_call_operand.vmem [shape: f32[1,128], index: 12, kind: input, shape index: {}]   ;;  %s7130_s11 = inlined_call_operand.vmem [shape: f32[128,128], index: 11, kind: input, shape index: {}]   ;;  %s7131_s13 = inlined_call_operand.vmem [shape: f32[128,128], index: 13, kind: input, shape index: {}]   ;;  %s7132_s14 = inlined_call_operand.vmem [shape: f32[1,128], index: 14, kind: input, shape index: {}]   ;;  %s7133_s15 = inlined_call_operand.vmem [shape: f32[8,128], index: 15, kind: output, shape index: {}]  }
   0x1   :  { %v3168_v0 = vld [vmem:[%s7118_s1 + $0x70] sm:$0xff]  ;;  %v3169_v1 = vld [vmem:[%s7118_s1 + $0x78] sm:$0xff]  ;;  %v3166_v3 = vld [vmem:[%s7118_s1 + $0x60] sm:$0xff]  ;;  %vm2922_vm4 = vcmask 654336  }
   0x2   :  { %v3240_v2 = vld [vmem:[%s7118_s1 + $0xf0] sm:$0xff]  ;;  %196 = vmatpush.msra.mxu0 %v3168_v0  ;;  %297 = vmatpush.msra.mxu1 %v3169_v1  ;;  %v3167_v4 = vld [vmem:[%s7118_s1 + $0x68] sm:$0xff]  ;;  %v3238_v5 = vld [vmem:[%s7118_s1 + $0xe0] sm:$0xff] }
   0x3   :  { %422 = vmatpush.msra.mxu2 %v3240_v2  ;;  %3793 = vmatpush.msra.mxu3 %v3240_v2  ;;  %v3164_v6 = vld [vmem:[%s7118_s1 + $0x50] sm:$0xff]  ;;  %v3165_v7 = vld [vmem:[%s7118_s1 + $0x58] sm:$0xff]  ;;  %v3162_v9 = vld [vmem:[%s7118_s1 + $0x40] sm:$0xff] }
   0x4   :  { %197 = vmatpush.msra.mxu0 %v3166_v3  ;;  %298 = vmatpush.msra.mxu1 %v3167_v4  ;;  %v3236_v8 = vld [vmem:[%s7118_s1 + $0xd0] sm:$0xff]  ;;  %v3163_v10 = vld [vmem:[%s7118_s1 + $0x48] sm:$0xff]  ;;  %v3234_v11 = vld [vmem:[%s7118_s1 + $0xc0] sm:$0xff] }
   0x5   :  { %423 = vmatpush.msra.mxu2 %v3238_v5  ;;  %3794 = vmatpush.msra.mxu3 %v3238_v5  ;;  %v3930_v12 = vld [vmem:[%s7119_s0 + $0x8] sm:$0xff]  ;;  %v3935_v13 = vld [vmem:[%s7119_s0 + $0x18] sm:$0xff]  ;;  %v88_v15 = vld [vmem:[%s7118_s1 + $0x30] sm:$0xff] }
   0x6   :  { %198 = vmatpush.msra.mxu0 %v3164_v6  ;;  %299 = vmatpush.msra.mxu1 %v3165_v7  ;;  %v3940_v14 = vld [vmem:[%s7119_s0 + $0xe8] sm:$0xff]  ;;  %v89_v16 = vld [vmem:[%s7118_s1 + $0x38] sm:$0xff]  ;;  %v3968_v20 = vld [vmem:[%s7119_s0 + $0x10] sm:$0xff] }
   0x7   :  { %424 = vmatpush.msra.mxu2 %v3236_v8  ;;  %3795 = vmatpush.msra.mxu3 %v3236_v8  ;;  %v3241_v17 = vld [vmem:[%s7118_s1 + $0xf8] sm:$0xff]  ;;  %v3239_v18 = vld [vmem:[%s7118_s1 + $0xe8] sm:$0xff]  ;;  %v3973_v21 = vld [vmem:[%s7119_s0 + $0x20] sm:$0xff] }
   0x8   :  { %199 = vmatpush.msra.mxu0 %v3162_v9  ;;  %300 = vmatpush.msra.mxu1 %v3163_v10  ;;  %v3237_v19 = vld [vmem:[%s7118_s1 + $0xd8] sm:$0xff]  ;;  %v3978_v22 = vld [vmem:[%s7119_s0 + $0xf0] sm:$0xff]  ;;  %v3235_v23 = vld [vmem:[%s7118_s1 + $0xc8] sm:$0xff] }
   0x9   :  { %425 = vmatpush.msra.mxu2 %v3234_v11  ;;  %3796 = vmatpush.msra.mxu3 %v3234_v11  ;;  %v3994_v24 = vld [vmem:[%s7119_s0 + $0x28] sm:$0xff]  ;;  %v4007_v25 = vld [vmem:[%s7119_s0 + $0x30] sm:$0xff]  ;;  %v86_v26 = vld [vmem:[%s7118_s1 + $0x20] sm:$0xff] }
   0xa   :  { %3170 = vmatmul.msk.f32.vlgmr.msra.gmra.mxu0 %vm99_vm0, %v3930_v12  ;;  %3198 = vmatmul.msk.f32.vlgmr.msra.gmra.mxu1 %vm99_vm0, %v3930_v12  ;;  %v87_v27 = vld [vmem:[%s7118_s1 + $0x28] sm:$0xff]  ;;  %v4026_v28 = vld [vmem:[%s7119_s0 + $0x38] sm:$0xff]  ;;  %v4039_v29 = vld [vmem:[%s7119_s0 + $0x40] sm:$0xff] }
   0xb   :  { %3242 = vmatmul.msk.f32.vlgmr.msra.gmra.mxu2 %vm99_vm0, %v3935_v13  ;;  %3268 = vmatmul.msk.f32.vlgmr.msra.gmra.mxu3 %vm99_vm0, %v3940_v14  ;;  %v4052_v30 = vld [vmem:[%s7119_s0 + $0x48] sm:$0xff]  ;;  %v4065_v31 = vld [vmem:[%s7119_s0 + $0x50] sm:$0xff]  ;;  %v4078_v32 = vld [vmem:[%s7119_s0 + $0x58] sm:$0xff] }
   0xc   :  { %636 = vmatpush.msrb.mxu0 %v88_v15  ;;  %737 = vmatpush.msrb.mxu1 %v89_v16  ;;  %v4091_v33 = vld [vmem:[%s7119_s0 + $0x60] sm:$0xff]  ;;  %v4104_v34 = vld [vmem:[%s7119_s0 + $0x68] sm:$0xff]  ;;  %v84_v35 = vld [vmem:[%s7118_s1 + $0x10] sm:$0xff] }
   0xd   :  { %523 = vmatpush.msrb.mxu3 %v3241_v17  ;;  %v85_v36 = vld [vmem:[%s7118_s1 + $0x18] sm:$0xff]  ;;  %v4123_v37 = vld [vmem:[%s7119_s0 + $0x70] sm:$0xff]  ;;  %v4149_v39 = vld [vmem:[%s7119_s0 + $0x80] sm:$0xff] }
   0xe   :  { %637 = vmatpush.msrb.mxu0 %v86_v26  ;;  %738 = vmatpush.msrb.mxu1 %v87_v27  ;;  %v4136_v38 = vld [vmem:[%s7119_s0 + $0x78] sm:$0xff]  ;;  %v4162_v40 = vld [vmem:[%s7119_s0 + $0x88] sm:$0xff]  ;;  %v4175_v41 = vld [vmem:[%s7119_s0 + $0x90] sm:$0xff] }
   0xf   :  { %524 = vmatpush.msrb.mxu3 %v3239_v18  ;;  %v4192_v44 = vld [vmem:[%s7119_s0 + $0x98] sm:$0xff]  ;;  %v4213_v49 = vld [vmem:[%s7119_s0 + $0xa0] sm:$0xff]  ;;  %v83_v51 = vld [vmem:[%s7118_s1 + $0x8] sm:$0xff] }
  0x10   :  { %638 = vmatpush.msrb.mxu0 %v84_v35  ;;  %739 = vmatpush.msrb.mxu1 %v85_v36  ;;  %v82_v50 = vld [vmem:[%s7118_s1] sm:$0xff]  ;;  %v4238_v55 = vld [vmem:[%s7119_s0 + $0xa8] sm:$0xff]  ;;  %v4259_v60 = vld [vmem:[%s7119_s0 + $0xb0] sm:$0xff] }
  0x11   :  { %525 = vmatpush.msrb.mxu3 %v3237_v19  ;;  %v4280_v1 = vld [vmem:[%s7119_s0 + $0xb8] sm:$0xff]  ;;  %v4301_v6 = vld [vmem:[%s7119_s0 + $0xc0] sm:$0xff]  ;;  %v3232_v7 = vld [vmem:[%s7118_s1 + $0xb0] sm:$0xff] }
  0x12   :  { %3171 = vmatmul.msk.f32.gmra.mxu0 %vm99_vm0, %v3968_v20  ;;  %3199 = vmatmul.msk.f32.gmra.mxu1 %vm99_vm0, %v3968_v20  ;;  %v3230_v8 = vld [vmem:[%s7118_s1 + $0xa0] sm:$0xff]  ;;  %v3228_v11 = vld [vmem:[%s7118_s1 + $0x90] sm:$0xff]  ;;  %v4329_v16 = vld [vmem:[%s7119_s0 + $0xc8] sm:$0xff] }
  0x13   :  { %3243 = vmatmul.msk.f32.gmra.mxu2 %vm99_vm0, %v3973_v21  ;;  %3269 = vmatmul.msk.f32.gmra.mxu3 %vm99_vm0, %v3978_v22  ;;  %v3226_v17 = vld [vmem:[%s7118_s1 + $0x80] sm:$0xff]  ;;  %v4351_v26 = vld [vmem:[%s7119_s0 + $0xd0] sm:$0xff]  ;;  %v3233_v35 = vld [vmem:[%s7118_s1 + $0xb8] sm:$0xff] }
  0x14   :  { %526 = vmatpush.msrb.mxu3 %v3235_v23  ;;  %639 = vmatpush.msrb.mxu0 %v82_v50 }
  0x15   :  { %740 = vmatpush.msrb.mxu1 %v83_v51  ;;  %838 = vmatpush.msrb.mxu2 %v3232_v7  ;;  %v4375_v7 = vld [vmem:[%s7119_s0 + $0xd8] sm:$0xff] }
  0x16   :  { %939 = vmatpush.msra.mxu3 %v3233_v35 }
  0x17   :  { %839 = vmatpush.msrb.mxu2 %v3230_v8  ;;  %v3304_v8 = vld [vmem:[%s7118_s1 + $0x130] sm:$0xff] }
  0x18   :  { %1105 = vmatpush.msra.mxu0 %v3304_v8  ;;  %v3231_v8 = vld [vmem:[%s7118_s1 + $0xa8] sm:$0xff] }
  0x19   :  { %840 = vmatpush.msrb.mxu2 %v3228_v11  ;;  %v3305_v11 = vld [vmem:[%s7118_s1 + $0x138] sm:$0xff]  ;;  %940 = vmatpush.msra.mxu3 %v3231_v8 }
  0x1a   :  { %3172 = vmatmul.msk.f32.gmra.mxu0 %vm99_vm0, %v3935_v13  ;;  %3200 = vmatmul.msk.f32.gmra.mxu1 %vm99_vm0, %v3935_v13 }
  0x1b   :  { %3244 = vmatmul.msk.f32.gmra.mxu2 %vm99_vm0, %v3994_v24  ;;  %3270 = vmatmul.msk.f32.vlgmr.msrb.gmra.mxu3 %vm99_vm0, %v3935_v13 }
  0x1c   :  { %841 = vmatpush.msrb.mxu2 %v3226_v17  ;;  %1206 = vmatpush.msra.mxu1 %v3305_v11 }
  0x22   :  { %3173 = vmatmul.msk.f32.gmra.mxu0 %vm99_vm0, %v3973_v21  ;;  %3201 = vmatmul.msk.f32.gmra.mxu1 %vm99_vm0, %v3973_v21 }
  0x23   :  { %3245 = vmatmul.msk.f32.gmra.mxu2 %vm99_vm0, %v4007_v25  ;;  %3271 = vmatmul.msk.f32.gmra.mxu3 %vm99_vm0, %v3973_v21 }
  0x2a   :  { %3174 = vmatmul.msk.f32.gmra.mxu0 %vm99_vm0, %v3994_v24  ;;  %3202 = vmatmul.msk.f32.gmra.mxu1 %vm99_vm0, %v3994_v24 }
  0x2b   :  { %3246 = vmatmul.msk.f32.gmra.mxu2 %vm99_vm0, %v4026_v28  ;;  %3272 = vmatmul.msk.f32.gmra.mxu3 %vm99_vm0, %v3994_v24 }
  0x32   :  { %3175 = vmatmul.msk.f32.gmra.mxu0 %vm99_vm0, %v4007_v25  ;;  %3203 = vmatmul.msk.f32.gmra.mxu1 %vm99_vm0, %v4007_v25 }
  0x33   :  { %3247 = vmatmul.msk.f32.gmra.mxu2 %vm99_vm0, %v4039_v29  ;;  %3273 = vmatmul.msk.f32.gmra.mxu3 %vm99_vm0, %v4007_v25 }
  0x3a   :  { %3176 = vmatmul.msk.f32.gmra.mxu0 %vm99_vm0, %v4026_v28  ;;  %3204 = vmatmul.msk.f32.gmra.mxu1 %vm99_vm0, %v4026_v28 }
  0x3b   :  { %3248 = vmatmul.msk.f32.gmra.mxu2 %vm99_vm0, %v4052_v30  ;;  %3274 = vmatmul.msk.f32.gmra.mxu3 %vm99_vm0, %v4026_v28 }
  0x42   :  { %3177 = vmatmul.msk.f32.gmra.mxu0 %vm99_vm0, %v4039_v29  ;;  %3205 = vmatmul.msk.f32.gmra.mxu1 %vm99_vm0, %v4039_v29 }
  0x43   :  { %3249 = vmatmul.msk.f32.gmra.mxu2 %vm99_vm0, %v4065_v31  ;;  %3275 = vmatmul.msk.f32.gmra.mxu3 %vm99_vm0, %v4039_v29 }
  0x4a   :  { %3178 = vmatmul.msk.f32.gmra.mxu0 %vm99_vm0, %v4052_v30  ;;  %3206 = vmatmul.msk.f32.gmra.mxu1 %vm99_vm0, %v4052_v30 }
  0x4b   :  { %3250 = vmatmul.msk.f32.gmra.mxu2 %vm99_vm0, %v4078_v32  ;;  %3276 = vmatmul.msk.f32.gmra.mxu3 %vm99_vm0, %v4052_v30 }
  0x52   :  { %3179 = vmatmul.msk.f32.gmra.mxu0 %vm99_vm0, %v4065_v31  ;;  %3207 = vmatmul.msk.f32.gmra.mxu1 %vm99_vm0, %v4065_v31 }
  0x53   :  { %3251 = vmatmul.msk.f32.gmra.mxu2 %vm99_vm0, %v4091_v33  ;;  %3277 = vmatmul.msk.f32.gmra.mxu3 %vm99_vm0, %v4065_v31 }
  0x5a   :  { %3180 = vmatmul.msk.f32.gmra.mxu0 %vm99_vm0, %v4078_v32  ;;  %3208 = vmatmul.msk.f32.gmra.mxu1 %vm99_vm0, %v4078_v32 }
  0x5b   :  { %3252 = vmatmul.msk.f32.gmra.mxu2 %vm99_vm0, %v4104_v34  ;;  %3278 = vmatmul.msk.f32.gmra.mxu3 %vm99_vm0, %v4078_v32 }
  0x62   :  { %3181 = vmatmul.msk.f32.gmra.mxu0 %vm99_vm0, %v4091_v33  ;;  %3209 = vmatmul.msk.f32.gmra.mxu1 %vm99_vm0, %v4091_v33 }
  0x63   :  { %3253 = vmatmul.msk.f32.gmra.mxu2 %vm99_vm0, %v4123_v37  ;;  %3279 = vmatmul.msk.f32.gmra.mxu3 %vm99_vm0, %v4091_v33 }
  0x6a   :  { %3182 = vmatmul.msk.f32.gmra.mxu0 %vm99_vm0, %v4104_v34  ;;  %3210 = vmatmul.msk.f32.gmra.mxu1 %vm99_vm0, %v4104_v34 }
  0x6b   :  { %3254 = vmatmul.msk.f32.gmra.mxu2 %vm99_vm0, %v4136_v38  ;;  %3280 = vmatmul.msk.f32.gmra.mxu3 %vm99_vm0, %v4104_v34 }
  0x72   :  { %3183 = vmatmul.msk.f32.gmra.mxu0 %vm99_vm0, %v4123_v37  ;;  %3211 = vmatmul.msk.f32.gmra.mxu1 %vm99_vm0, %v4123_v37 }
  0x73   :  { %3255 = vmatmul.msk.f32.gmra.mxu2 %vm99_vm0, %v4149_v39  ;;  %3281 = vmatmul.msk.f32.gmra.mxu3 %vm99_vm0, %v4123_v37 }
  0x7a   :  { %3184 = vmatmul.msk.f32.gmra.mxu0 %vm99_vm0, %v4136_v38  ;;  %3212 = vmatmul.msk.f32.gmra.mxu1 %vm99_vm0, %v4136_v38 }
  0x7b   :  { %3256 = vmatmul.msk.f32.gmra.mxu2 %vm99_vm0, %v4162_v40  ;;  %3282 = vmatmul.msk.f32.gmra.mxu3 %vm99_vm0, %v4136_v38 }
  0x82   :  { %3185 = vmatmul.msk.f32.gmra.mxu0 %vm99_vm0, %v4149_v39  ;;  %3213 = vmatmul.msk.f32.gmra.mxu1 %vm99_vm0, %v4149_v39 }
  0x83   :  { %3257 = vmatmul.msk.f32.gmra.mxu2 %vm99_vm0, %v4175_v41  ;;  %3283 = vmatmul.msk.f32.gmra.mxu3 %vm99_vm0, %v4149_v39 }
  0x87   :  { %v4185_v42 = vpop.f32.mrf.mxu0  ;;  %v4187_v43 = vpop.f32.mrf.mxu1 }
  0x8a   :  { %3186 = vmatmul.msk.f32.gmra.mxu0 %vm99_vm0, %v4162_v40  ;;  %3214 = vmatmul.msk.f32.gmra.mxu1 %vm99_vm0, %v4162_v40 }
  0x8b   :  { %3258 = vmatmul.msk.f32.gmra.mxu2 %vm99_vm0, %v4192_v44  ;;  %3284 = vmatmul.msk.f32.gmra.mxu3 %vm99_vm0, %v4162_v40 }
  0x8e   :  { %v4202_v45 = vpop.f32.mrf.mxu3  ;;  %v4208_v48 = vpop.f32.mrf.mxu2 }
  0x8f   :  { %7135 = vst [vmem:[#allocation2_spill] sm:$0xff] %v4202_v45  ;;  %v4204_v46 = vpop.f32.mrf.mxu0  ;;  %v4206_v47 = vpop.f32.mrf.mxu1 }
  0x92   :  { %3187 = vmatmul.msk.f32.gmra.mxu0 %vm99_vm0, %v4175_v41  ;;  %3215 = vmatmul.msk.f32.gmra.mxu1 %vm99_vm0, %v4175_v41 }
  0x93   :  { %3259 = vmatmul.msk.f32.gmra.mxu2 %vm99_vm0, %v4213_v49  ;;  %3285 = vmatmul.msk.f32.gmra.mxu3 %vm99_vm0, %v4175_v41 }
  0x96   :  { %v4229_v52 = vpop.f32.mrf.mxu3  ;;  %v4240_v56 = vpop.f32.mrf.mxu2 }
  0x97   :  { %7136 = vst [vmem:[#allocation3_spill] sm:$0xff] %v4229_v52  ;;  %v4231_v53 = vpop.f32.mrf.mxu0  ;;  %v4233_v54 = vpop.f32.mrf.mxu1 }
  0x9a   :  { %3188 = vmatmul.msk.f32.gmra.mxu0 %vm99_vm0, %v4192_v44  ;;  %3216 = vmatmul.msk.f32.gmra.mxu1 %vm99_vm0, %v4192_v44 }
  0x9b   :  { %3260 = vmatmul.msk.f32.gmra.mxu2 %vm99_vm0, %v4238_v55  ;;  %3286 = vmatmul.msk.f32.gmra.mxu3 %vm99_vm0, %v4192_v44 }
  0x9e   :  { %v4250_v57 = vpop.f32.mrf.mxu3  ;;  %v4269_v61 = vpop.f32.mrf.mxu2 }
  0x9f   :  { %v4252_v58 = vpop.f32.mrf.mxu0  ;;  %v4254_v59 = vpop.f32.mrf.mxu1 }
  0xa2   :  { %3189 = vmatmul.msk.f32.gmra.mxu0 %vm99_vm0, %v4213_v49  ;;  %3217 = vmatmul.msk.f32.gmra.mxu1 %vm99_vm0, %v4213_v49 }
  0xa3   :  { %3261 = vmatmul.msk.f32.gmra.mxu2 %vm99_vm0, %v4259_v60  ;;  %3287 = vmatmul.msk.f32.gmra.mxu3 %vm99_vm0, %v4213_v49 }
  0xa6   :  { %v4271_v62 = vpop.f32.mrf.mxu3  ;;  %v4290_v2 = vpop.f32.mrf.mxu2 }
  0xa7   :  { %v4273_v63 = vpop.f32.mrf.mxu0  ;;  %v4275_v0 = vpop.f32.mrf.mxu1 }
  0xaa   :  { %3190 = vmatmul.msk.f32.gmra.mxu0 %vm99_vm0, %v4238_v55  ;;  %3218 = vmatmul.msk.f32.gmra.mxu1 %vm99_vm0, %v4238_v55 }
  0xab   :  { %3262 = vmatmul.msk.f32.gmra.mxu2 %vm99_vm0, %v4280_v1  ;;  %3288 = vmatmul.msk.f32.gmra.mxu3 %vm99_vm0, %v4238_v55 }
  0xae   :  { %v4296_v5 = vpop.f32.mrf.mxu3  ;;  %v4324_v15 = vpop.f32.mrf.mxu2 }
  0xaf   :  { %v4292_v3 = vpop.f32.mrf.mxu0  ;;  %v4294_v4 = vpop.f32.mrf.mxu1 }
  0xb0   :  { %7137 = vst [vmem:[#allocation4_spill] sm:$0xff] %v4294_v4 }
  0xb2   :  { %3191 = vmatmul.msk.f32.gmra.mxu0 %vm99_vm0, %v4259_v60  ;;  %3219 = vmatmul.msk.f32.gmra.mxu1 %vm99_vm0, %v4259_v60 }
  0xb3   :  { %3263 = vmatmul.msk.f32.gmra.mxu2 %vm99_vm0, %v4301_v6  ;;  %3289 = vmatmul.msk.f32.gmra.mxu3 %vm99_vm0, %v4259_v60 }
  0xb6   :  { %v4334_v18 = vpop.f32.mrf.mxu3  ;;  %v4353_v27 = vpop.f32.mrf.mxu2 }
  0xb7   :  { %v4317_v9 = vpop.f32.mrf.mxu0  ;;  %v4319_v10 = vpop.f32.mrf.mxu1 }
  0xb8   :  { %7138 = vst [vmem:[#allocation5_spill] sm:$0xff] %v4317_v9 }
  0xb9   :  { %7139 = vst [vmem:[#allocation6_spill] sm:$0xff] %v4319_v10 }
  0xba   :  { %3192 = vmatmul.msk.f32.gmra.mxu0 %vm99_vm0, %v4280_v1  ;;  %3220 = vmatmul.msk.f32.gmra.mxu1 %vm99_vm0, %v4280_v1 }
  0xbb   :  { %3264 = vmatmul.msk.f32.gmra.mxu2 %vm99_vm0, %v4329_v16  ;;  %3290 = vmatmul.msk.f32.gmra.mxu3 %vm99_vm0, %v4280_v1 }
  0xbe   :  { %v4366_v36 = vpop.f32.mrf.mxu3  ;;  %v4391_v17 = vpop.f32.mrf.mxu2 }
  0xbf   :  { %v4344_v19 = vpop.f32.mrf.mxu0  ;;  %v4346_v23 = vpop.f32.mrf.mxu1  ;;  %7144 = vst [vmem:[#allocation11_spill] sm:$0xff] %v4391_v17 }
  0xc0   :  { %7140 = vst [vmem:[#allocation7_spill] sm:$0xff] %v4344_v19  ;;  %v3227_v19 = vld [vmem:[%s7118_s1 + $0x88] sm:$0xff] }
  0xc1   :  { %7141 = vst [vmem:[#allocation8_spill] sm:$0xff] %v4346_v23 }
  0xc2   :  { %3193 = vmatmul.msk.f32.gmra.mxu0 %vm99_vm0, %v4301_v6  ;;  %3221 = vmatmul.msk.f32.gmra.mxu1 %vm99_vm0, %v4301_v6 }
  0xc3   :  { %3265 = vmatmul.msk.f32.gmra.mxu2 %vm99_vm0, %v4351_v26  ;;  %3291 = vmatmul.msk.f32.gmra.mxu3 %vm99_vm0, %v4301_v6 }
  0xc6   :  { %v4393_v35 = vpop.f32.mrf.mxu3  ;;  %v4415_v11 = vpop.f32.mrf.mxu2 }
  0xc7   :  { %v4368_v50 = vpop.f32.mrf.mxu0  ;;  %v4370_v51 = vpop.f32.mrf.mxu1  ;;  %7145 = vst [vmem:[#allocation12_spill] sm:$0xff] %v4393_v35 }
  0xc8   :  { %7142 = vst [vmem:[#allocation9_spill] sm:$0xff] %v4368_v50  ;;  %v3229_v50 = vld [vmem:[%s7118_s1 + $0x98] sm:$0xff] }
  0xc9   :  { %7143 = vst [vmem:[#allocation10_spill] sm:$0xff] %v4370_v51  ;;  %v4402_v51 = vld [vmem:[%s7119_s0 + $0xe0] sm:$0xff]  ;;  %941 = vmatpush.msra.mxu3 %v3229_v50 }
  0xca   :  { %3194 = vmatmul.msk.f32.gmra.mxu0 %vm99_vm0, %v4329_v16  ;;  %3222 = vmatmul.msk.f32.gmra.mxu1 %vm99_vm0, %v4329_v16  ;;  %7148 = vst [vmem:[#allocation15_spill] sm:$0xff] %v4415_v11 }
  0xcb   :  { %3266 = vmatmul.msk.f32.gmra.mxu2 %vm99_vm0, %v4375_v7  ;;  %3292 = vmatmul.msk.f32.gmra.mxu3 %vm99_vm0, %v4329_v16 }
  0xcc   :  { %942 = vmatpush.msra.mxu3 %v3227_v19 }
  0xce   :  { %v4424_v23 = vpop.f32.mrf.mxu3 }
  0xcf   :  { %v4395_v52 = vpop.f32.mrf.mxu0  ;;  %v4397_v45 = vpop.f32.mrf.mxu1  ;;  %7151 = vst [vmem:[#allocation18_spill] sm:$0xff] %v4424_v23 }
  0xd0   :  { %7146 = vst [vmem:[#allocation13_spill] sm:$0xff] %v4395_v52 }
  0xd1   :  { %7147 = vst [vmem:[#allocation14_spill] sm:$0xff] %v4397_v45 }
  0xd2   :  { %3195 = vmatmul.msk.f32.gmra.mxu0 %vm99_vm0, %v4351_v26  ;;  %3223 = vmatmul.msk.f32.gmra.mxu1 %vm99_vm0, %v4351_v26 }
  0xd3   :  { %3267 = vmatmul.msk.f32.gmra.mxu2 %vm99_vm0, %v4402_v51  ;;  %3293 = vmatmul.msk.f32.gmra.mxu3 %vm99_vm0, %v4351_v26 }
  0xd7   :  { %v4417_v45 = vpop.f32.mrf.mxu0  ;;  %v4419_v52 = vpop.f32.mrf.mxu1 }
  0xd8   :  { %7149 = vst [vmem:[#allocation16_spill] sm:$0xff] %v4417_v45  ;;  %v4443_v45 = vpop.f32.mrf.mxu3 }
  0xd9   :  { %7150 = vst [vmem:[#allocation17_spill] sm:$0xff] %v4419_v52  ;;  %v4441_v52 = vpop.f32.mrf.mxu2 }
  0xda   :  { %3196 = vmatmul.msk.f32.gmra.mxu0 %vm99_vm0, %v4375_v7  ;;  %3224 = vmatmul.msk.f32.gmra.mxu1 %vm99_vm0, %v4375_v7  ;;  %7154 = vst [vmem:[#allocation21_spill] sm:$0xff] %v4441_v52 }
  0xdb   :  { %3294 = vmatmul.msk.f32.gmra.mxu3 %vm99_vm0, %v4375_v7  ;;  %3362 = vmatmul.msk.f32.vlgmr.msrb.gmra.mxu2 %vm99_vm0, %v3968_v20  ;;  %7155 = vst [vmem:[#allocation22_spill] sm:$0xff] %v4443_v45 }
  0xdf   :  { %v4437_v8 = vpop.f32.mrf.mxu0  ;;  %v4439_v50 = vpop.f32.mrf.mxu1 }
  0xe0   :  { %7152 = vst [vmem:[#allocation19_spill] sm:$0xff] %v4437_v8  ;;  %v4468_v45 = vpop.f32.mrf.mxu3 }
  0xe1   :  { %7153 = vst [vmem:[#allocation20_spill] sm:$0xff] %v4439_v50  ;;  %v50_v50 = vld [vmem:[%s7119_s0] sm:$0xff]  ;;  %v4460_v52 = vpop.f32.mrf.mxu2 }
  0xe2   :  { %3197 = vmatmul.msk.f32.gmra.mxu0 %vm99_vm0, %v4402_v51  ;;  %3225 = vmatmul.msk.f32.gmra.mxu1 %vm99_vm0, %v4402_v51  ;;  %7158 = vst [vmem:[#allocation25_spill] sm:$0xff] %v4460_v52 }
  0xe3   :  { %3295 = vmatmul.msk.f32.gmra.mxu3 %vm99_vm0, %v4402_v51  ;;  %3363 = vmatmul.msk.f32.gmra.mxu2 %vm99_vm0, %v3935_v13  ;;  %7159 = vst [vmem:[#allocation26_spill] sm:$0xff] %v4468_v45 }
  0xe7   :  { %v4453_v19 = vpop.f32.mrf.mxu0  ;;  %v4455_v8 = vpop.f32.mrf.mxu1 }
  0xe8   :  { %7156 = vst [vmem:[#allocation23_spill] sm:$0xff] %v4453_v19  ;;  %v4484_v52 = vpop.f32.mrf.mxu3 }
  0xe9   :  { %7157 = vst [vmem:[#allocation24_spill] sm:$0xff] %v4455_v8 }
  0xea   :  { %3306 = vmatmul.msk.f32.vlgmr.msrb.gmra.mxu0 %vm99_vm0, %v50_v50  ;;  %3334 = vmatmul.msk.f32.vlgmr.msrb.gmra.mxu1 %vm99_vm0, %v50_v50  ;;  %v4482_v50 = vpop.f32.mrf.mxu2  ;;  %7163 = vst [vmem:[#allocation30_spill] sm:$0xff] %v4484_v52 }
  0xeb   :  { %3296 = vmatmul.msk.f32.gmra.mxu3 %vm99_vm0, %v3940_v14  ;;  %3364 = vmatmul.msk.f32.gmra.mxu2 %vm99_vm0, %v3973_v21  ;;  %7162 = vst [vmem:[#allocation29_spill] sm:$0xff] %v4482_v50 }
  0xef   :  { %v4470_v19 = vpop.f32.mrf.mxu0  ;;  %v4472_v8 = vpop.f32.mrf.mxu1 }
  0xf0   :  { %7160 = vst [vmem:[#allocation27_spill] sm:$0xff] %v4470_v19 }
  0xf1   :  { %7161 = vst [vmem:[#allocation28_spill] sm:$0xff] %v4472_v8 }
  0xf2   :  { %3307 = vmatmul.msk.f32.gmra.mxu0 %vm99_vm0, %v3930_v12  ;;  %3335 = vmatmul.msk.f32.gmra.mxu1 %vm99_vm0, %v3930_v12  ;;  %v4498_v12 = vpop.f32.mrf.mxu2 }
  0xf3   :  { %3297 = vmatmul.msk.f32.gmra.mxu3 %vm99_vm0, %v3978_v22  ;;  %3365 = vmatmul.msk.f32.gmra.mxu2 %vm99_vm0, %v3994_v24  ;;  %7166 = vst [vmem:[#allocation33_spill] sm:$0xff] %v4498_v12 }
  0xf7   :  { %v4486_v45 = vpop.f32.mrf.mxu0  ;;  %v4488_v19 = vpop.f32.mrf.mxu1 }
  0xf8   :  { %7164 = vst [vmem:[#allocation31_spill] sm:$0xff] %v4486_v45  ;;  %v4504_v45 = vpop.f32.mrf.mxu3 }
  0xf9   :  { %7165 = vst [vmem:[#allocation32_spill] sm:$0xff] %v4488_v19 }
  0xfa   :  { %3308 = vmatmul.msk.f32.gmra.mxu0 %vm99_vm0, %v3968_v20  ;;  %3336 = vmatmul.msk.f32.gmra.mxu1 %vm99_vm0, %v3968_v20  ;;  %7169 = vst [vmem:[#allocation36_spill] sm:$0xff] %v4504_v45  ;;  %v4524_v12 = vpop.f32.mrf.mxu2 }
  0xfb   :  { %3366 = vmatmul.msk.f32.gmra.mxu2 %vm99_vm0, %v4007_v25  ;;  %3390 = vmatmul.msk.f32.vlgmr.msra.gmra.mxu3 %vm99_vm0, %v3968_v20  ;;  %v3302_v20 = vld [vmem:[%s7118_s1 + $0x120] sm:$0xff]  ;;  %7172 = vst [vmem:[#allocation39_spill] sm:$0xff] %v4524_v12 }
  0xfc   :  { %1106 = vmatpush.msra.mxu0 %v3302_v20 }
  0xff   :  { %v4500_v22 = vpop.f32.mrf.mxu0  ;;  %v4502_v8 = vpop.f32.mrf.mxu1 }
 0x100   :  { %7167 = vst [vmem:[#allocation34_spill] sm:$0xff] %v4500_v22  ;;  %v4526_v45 = vpop.f32.mrf.mxu3 }
 0x101   :  { %7168 = vst [vmem:[#allocation35_spill] sm:$0xff] %v4502_v8  ;;  %v3303_v8 = vld [vmem:[%s7118_s1 + $0x128] sm:$0xff] }
 0x102   :  { %3309 = vmatmul.msk.f32.gmra.mxu0 %vm99_vm0, %v3935_v13  ;;  %3337 = vmatmul.msk.f32.gmra.mxu1 %vm99_vm0, %v3935_v13  ;;  %7173 = vst [vmem:[#allocation40_spill] sm:$0xff] %v4526_v45  ;;  %v4540_v20 = vpop.f32.mrf.mxu2 }
 0x103   :  { %3367 = vmatmul.msk.f32.gmra.mxu2 %vm99_vm0, %v4026_v28  ;;  %3391 = vmatmul.msk.f32.gmra.mxu3 %vm99_vm0, %v3935_v13  ;;  %7176 = vst [vmem:[#allocation43_spill] sm:$0xff] %v4540_v20 }
 0x104   :  { %1207 = vmatpush.msra.mxu1 %v3303_v8 }
 0x107   :  { %v4520_v22 = vpop.f32.mrf.mxu0  ;;  %v4522_v19 = vpop.f32.mrf.mxu1 }
 0x108   :  { %7170 = vst [vmem:[#allocation37_spill] sm:$0xff] %v4520_v22 }
 0x109   :  { %7171 = vst [vmem:[#allocation38_spill] sm:$0xff] %v4522_v19  ;;  %v4550_v19 = vpop.f32.mrf.mxu3 }
 0x10a   :  { %3310 = vmatmul.msk.f32.gmra.mxu0 %vm99_vm0, %v3973_v21  ;;  %3338 = vmatmul.msk.f32.gmra.mxu1 %vm99_vm0, %v3973_v21  ;;  %7177 = vst [vmem:[#allocation44_spill] sm:$0xff] %v4550_v19 }
 0x10b   :  { %3368 = vmatmul.msk.f32.gmra.mxu2 %vm99_vm0, %v4039_v29  ;;  %3392 = vmatmul.msk.f32.gmra.mxu3 %vm99_vm0, %v3973_v21 }
 0x10f   :  { %v4536_v13 = vpop.f32.mrf.mxu0  ;;  %v4538_v8 = vpop.f32.mrf.mxu1 }
 0x110   :  { %7174 = vst [vmem:[#allocation41_spill] sm:$0xff] %v4536_v13 }
 0x111   :  { %7175 = vst [vmem:[#allocation42_spill] sm:$0xff] %v4538_v8  ;;  %v4564_v8 = vpop.f32.mrf.mxu2  ;;  %v4566_v20 = vpop.f32.mrf.mxu3 }
 0x112   :  { %3311 = vmatmul.msk.f32.gmra.mxu0 %vm99_vm0, %v3994_v24  ;;  %3339 = vmatmul.msk.f32.gmra.mxu1 %vm99_vm0, %v3994_v24  ;;  %7180 = vst [vmem:[#allocation47_spill] sm:$0xff] %v4564_v8 }
 0x113   :  { %3369 = vmatmul.msk.f32.gmra.mxu2 %vm99_vm0, %v4052_v30  ;;  %3393 = vmatmul.msk.f32.gmra.mxu3 %vm99_vm0, %v3994_v24  ;;  %7181 = vst [vmem:[#allocation48_spill] sm:$0xff] %v4566_v20 }
 0x117   :  { %v4552_v22 = vpop.f32.mrf.mxu0  ;;  %v4554_v13 = vpop.f32.mrf.mxu1 }
 0x118   :  { %7178 = vst [vmem:[#allocation45_spill] sm:$0xff] %v4552_v22 }
 0x119   :  { %7179 = vst [vmem:[#allocation46_spill] sm:$0xff] %v4554_v13  ;;  %v4580_v13 = vpop.f32.mrf.mxu2 }
 0x11a   :  { %3312 = vmatmul.msk.f32.gmra.mxu0 %vm99_vm0, %v4007_v25  ;;  %3340 = vmatmul.msk.f32.gmra.mxu1 %vm99_vm0, %v4007_v25  ;;  %7184 = vst [vmem:[#allocation51_spill] sm:$0xff] %v4580_v13 }
 0x11b   :  { %3370 = vmatmul.msk.f32.gmra.mxu2 %vm99_vm0, %v4065_v31  ;;  %3394 = vmatmul.msk.f32.gmra.mxu3 %vm99_vm0, %v4007_v25 }
 0x11f   :  { %v4568_v19 = vpop.f32.mrf.mxu0  ;;  %v4570_v22 = vpop.f32.mrf.mxu1 }
 0x120   :  { %7182 = vst [vmem:[#allocation49_spill] sm:$0xff] %v4568_v19  ;;  %v4586_v19 = vpop.f32.mrf.mxu3 }
 0x121   :  { %7183 = vst [vmem:[#allocation50_spill] sm:$0xff] %v4570_v22 }
 0x122   :  { %3313 = vmatmul.msk.f32.gmra.mxu0 %vm99_vm0, %v4026_v28  ;;  %3341 = vmatmul.msk.f32.gmra.mxu1 %vm99_vm0, %v4026_v28  ;;  %7187 = vst [vmem:[#allocation54_spill] sm:$0xff] %v4586_v19 }
 0x123   :  { %3371 = vmatmul.msk.f32.gmra.mxu2 %vm99_vm0, %v4078_v32  ;;  %3395 = vmatmul.msk.f32.gmra.mxu3 %vm99_vm0, %v4026_v28 }
 0x127   :  { %v4582_v8 = vpop.f32.mrf.mxu0  ;;  %v4584_v20 = vpop.f32.mrf.mxu1 }
 0x128   :  { %7185 = vst [vmem:[#allocation52_spill] sm:$0xff] %v4582_v8  ;;  %v4600_v8 = vpop.f32.mrf.mxu2 }
 0x129   :  { %7186 = vst [vmem:[#allocation53_spill] sm:$0xff] %v4584_v20  ;;  %v4602_v20 = vpop.f32.mrf.mxu3 }
 0x12a   :  { %3314 = vmatmul.msk.f32.gmra.mxu0 %vm99_vm0, %v4039_v29  ;;  %3342 = vmatmul.msk.f32.gmra.mxu1 %vm99_vm0, %v4039_v29  ;;  %7190 = vst [vmem:[#allocation57_spill] sm:$0xff] %v4600_v8 }
 0x12b   :  { %3372 = vmatmul.msk.f32.gmra.mxu2 %vm99_vm0, %v4091_v33  ;;  %3396 = vmatmul.msk.f32.gmra.mxu3 %vm99_vm0, %v4039_v29  ;;  %7191 = vst [vmem:[#allocation58_spill] sm:$0xff] %v4602_v20 }
 0x12f   :  { %v4596_v22 = vpop.f32.mrf.mxu0  ;;  %v4598_v13 = vpop.f32.mrf.mxu1 }
 0x130   :  { %7188 = vst [vmem:[#allocation55_spill] sm:$0xff] %v4596_v22 }
 0x131   :  { %7189 = vst [vmem:[#allocation56_spill] sm:$0xff] %v4598_v13  ;;  %v4616_v13 = vpop.f32.mrf.mxu2 }
 0x132   :  { %3315 = vmatmul.msk.f32.gmra.mxu0 %vm99_vm0, %v4052_v30  ;;  %3343 = vmatmul.msk.f32.gmra.mxu1 %vm99_vm0, %v4052_v30  ;;  %7194 = vst [vmem:[#allocation61_spill] sm:$0xff] %v4616_v13  ;;  %v4632_v13 = vpop.f32.mrf.mxu3 }
 0x133   :  { %3373 = vmatmul.msk.f32.gmra.mxu2 %vm99_vm0, %v4104_v34  ;;  %3397 = vmatmul.msk.f32.gmra.mxu3 %vm99_vm0, %v4052_v30  ;;  %7195 = vst [vmem:[#allocation62_spill] sm:$0xff] %v4632_v13 }
 0x137   :  { %v4612_v19 = vpop.f32.mrf.mxu0  ;;  %v4614_v22 = vpop.f32.mrf.mxu1 }
 0x138   :  { %7192 = vst [vmem:[#allocation59_spill] sm:$0xff] %v4612_v19  ;;  %v3300_v19 = vld [vmem:[%s7118_s1 + $0x110] sm:$0xff] }
 0x139   :  { %7193 = vst [vmem:[#allocation60_spill] sm:$0xff] %v4614_v22  ;;  %v3301_v22 = vld [vmem:[%s7118_s1 + $0x118] sm:$0xff]  ;;  %1107 = vmatpush.msra.mxu0 %v3300_v19  ;;  %v4646_v12 = vpop.f32.mrf.mxu2 }
 0x13a   :  { %3316 = vmatmul.msk.f32.gmra.mxu0 %vm99_vm0, %v4065_v31  ;;  %3344 = vmatmul.msk.f32.gmra.mxu1 %vm99_vm0, %v4065_v31  ;;  %7198 = vst [vmem:[#allocation65_spill] sm:$0xff] %v4646_v12  ;;  %v4648_v19 = vpop.f32.mrf.mxu3 }
 0x13b   :  { %3374 = vmatmul.msk.f32.gmra.mxu2 %vm99_vm0, %v4123_v37  ;;  %3398 = vmatmul.msk.f32.gmra.mxu3 %vm99_vm0, %v4065_v31  ;;  %7199 = vst [vmem:[#allocation66_spill] sm:$0xff] %v4648_v19 }
 0x13c   :  { %1208 = vmatpush.msra.mxu1 %v3301_v22 }
 0x13f   :  { %v4634_v8 = vpop.f32.mrf.mxu0  ;;  %v4636_v20 = vpop.f32.mrf.mxu1 }
 0x140   :  { %7196 = vst [vmem:[#allocation63_spill] sm:$0xff] %v4634_v8 }
 0x141   :  { %7197 = vst [vmem:[#allocation64_spill] sm:$0xff] %v4636_v20  ;;  %v4662_v20 = vpop.f32.mrf.mxu2 }
 0x142   :  { %3317 = vmatmul.msk.f32.gmra.mxu0 %vm99_vm0, %v4078_v32  ;;  %3345 = vmatmul.msk.f32.gmra.mxu1 %vm99_vm0, %v4078_v32  ;;  %7202 = vst [vmem:[#allocation69_spill] sm:$0xff] %v4662_v20 }
 0x143   :  { %3375 = vmatmul.msk.f32.gmra.mxu2 %vm99_vm0, %v4136_v38  ;;  %3399 = vmatmul.msk.f32.gmra.mxu3 %vm99_vm0, %v4078_v32 }
 0x147   :  { %v4650_v22 = vpop.f32.mrf.mxu0  ;;  %v4652_v8 = vpop.f32.mrf.mxu1 }
 0x148   :  { %7200 = vst [vmem:[#allocation67_spill] sm:$0xff] %v4650_v22  ;;  %v4668_v22 = vpop.f32.mrf.mxu3 }
 0x149   :  { %7201 = vst [vmem:[#allocation68_spill] sm:$0xff] %v4652_v8 }
 0x14a   :  { %3318 = vmatmul.msk.f32.gmra.mxu0 %vm99_vm0, %v4091_v33  ;;  %3346 = vmatmul.msk.f32.gmra.mxu1 %vm99_vm0, %v4091_v33  ;;  %7205 = vst [vmem:[#allocation72_spill] sm:$0xff] %v4668_v22 }
 0x14b   :  { %3376 = vmatmul.msk.f32.gmra.mxu2 %vm99_vm0, %v4149_v39  ;;  %3400 = vmatmul.msk.f32.gmra.mxu3 %vm99_vm0, %v4091_v33 }
 0x14f   :  { %v4664_v12 = vpop.f32.mrf.mxu0  ;;  %v4666_v19 = vpop.f32.mrf.mxu1 }
 0x150   :  { %7203 = vst [vmem:[#allocation70_spill] sm:$0xff] %v4664_v12  ;;  %v4682_v12 = vpop.f32.mrf.mxu2 }
 0x151   :  { %7204 = vst [vmem:[#allocation71_spill] sm:$0xff] %v4666_v19  ;;  %v4684_v19 = vpop.f32.mrf.mxu3 }
 0x152   :  { %3319 = vmatmul.msk.f32.gmra.mxu0 %vm99_vm0, %v4104_v34  ;;  %3347 = vmatmul.msk.f32.gmra.mxu1 %vm99_vm0, %v4104_v34  ;;  %7208 = vst [vmem:[#allocation75_spill] sm:$0xff] %v4682_v12 }
 0x153   :  { %3377 = vmatmul.msk.f32.gmra.mxu2 %vm99_vm0, %v4162_v40  ;;  %3401 = vmatmul.msk.f32.gmra.mxu3 %vm99_vm0, %v4104_v34  ;;  %7209 = vst [vmem:[#allocation76_spill] sm:$0xff] %v4684_v19 }
 0x157   :  { %v4678_v8 = vpop.f32.mrf.mxu0  ;;  %v4680_v20 = vpop.f32.mrf.mxu1 }
 0x158   :  { %7206 = vst [vmem:[#allocation73_spill] sm:$0xff] %v4678_v8 }
 0x159   :  { %7207 = vst [vmem:[#allocation74_spill] sm:$0xff] %v4680_v20  ;;  %v4698_v20 = vpop.f32.mrf.mxu2  ;;  %v4708_v12 = vpop.f32.mrf.mxu3 }
 0x15a   :  { %3320 = vmatmul.msk.f32.gmra.mxu0 %vm99_vm0, %v4123_v37  ;;  %3348 = vmatmul.msk.f32.gmra.mxu1 %vm99_vm0, %v4123_v37  ;;  %7212 = vst [vmem:[#allocation79_spill] sm:$0xff] %v4698_v20 }
 0x15b   :  { %3378 = vmatmul.msk.f32.gmra.mxu2 %vm99_vm0, %v4175_v41  ;;  %3402 = vmatmul.msk.f32.gmra.mxu3 %vm99_vm0, %v4123_v37  ;;  %7213 = vst [vmem:[#allocation80_spill] sm:$0xff] %v4708_v12 }
 0x15f   :  { %v4694_v22 = vpop.f32.mrf.mxu0  ;;  %v4696_v8 = vpop.f32.mrf.mxu1 }
 0x160   :  { %7210 = vst [vmem:[#allocation77_spill] sm:$0xff] %v4694_v22 }
 0x161   :  { %7211 = vst [vmem:[#allocation78_spill] sm:$0xff] %v4696_v8  ;;  %v4722_v8 = vpop.f32.mrf.mxu2  ;;  %v4724_v20 = vpop.f32.mrf.mxu3 }
 0x162   :  { %3321 = vmatmul.msk.f32.gmra.mxu0 %vm99_vm0, %v4136_v38  ;;  %3349 = vmatmul.msk.f32.gmra.mxu1 %vm99_vm0, %v4136_v38  ;;  %7214 = vst [vmem:[#allocation81_spill] sm:$0xff] %v4722_v8  ;;  %v3298_v8 = vld [vmem:[%s7118_s1 + $0x100] sm:$0xff] }
 0x163   :  { %3379 = vmatmul.msk.f32.gmra.mxu2 %vm99_vm0, %v4192_v44  ;;  %3403 = vmatmul.msk.f32.gmra.mxu3 %vm99_vm0, %v4136_v38  ;;  %7215 = vst [vmem:[#allocation82_spill] sm:$0xff] %v4724_v20  ;;  %v3299_v20 = vld [vmem:[%s7118_s1 + $0x108] sm:$0xff] }
 0x164   :  { %1108 = vmatpush.msra.mxu0 %v3298_v8  ;;  %1209 = vmatpush.msra.mxu1 %v3299_v20 }
 0x167   :  { %v4710_v19 = vpop.f32.mrf.mxu0  ;;  %v4712_v22 = vpop.f32.mrf.mxu1 }
 0x169   :  { %v4744_v45 = vpop.f32.mrf.mxu2  ;;  %v4750_v11 = vpop.f32.mrf.mxu3 }
 0x16a   :  { %3322 = vmatmul.msk.f32.gmra.mxu0 %vm99_vm0, %v4149_v39  ;;  %3350 = vmatmul.msk.f32.gmra.mxu1 %vm99_vm0, %v4149_v39  ;;  %7216 = vst [vmem:[#allocation83_spill] sm:$0xff] %v4744_v45 }
 0x16b   :  { %3380 = vmatmul.msk.f32.gmra.mxu2 %vm99_vm0, %v4213_v49  ;;  %3404 = vmatmul.msk.f32.gmra.mxu3 %vm99_vm0, %v4149_v39  ;;  %7217 = vst [vmem:[#allocation84_spill] sm:$0xff] %v4750_v11 }
 0x16f   :  { %v4726_v12 = vpop.f32.mrf.mxu0  ;;  %v4728_v13 = vpop.f32.mrf.mxu1 }
 0x171   :  { %v4764_v45 = vpop.f32.mrf.mxu2  ;;  %v4766_v10 = vpop.f32.mrf.mxu3 }
 0x172   :  { %3323 = vmatmul.msk.f32.gmra.mxu0 %vm99_vm0, %v4162_v40  ;;  %3351 = vmatmul.msk.f32.gmra.mxu1 %vm99_vm0, %v4162_v40  ;;  %7218 = vst [vmem:[#allocation85_spill] sm:$0xff] %v4764_v45 }
 0x173   :  { %3381 = vmatmul.msk.f32.gmra.mxu2 %vm99_vm0, %v4238_v55  ;;  %3405 = vmatmul.msk.f32.gmra.mxu3 %vm99_vm0, %v4162_v40  ;;  %7219 = vst [vmem:[#allocation86_spill] sm:$0xff] %v4766_v10 }
 0x177   :  { %v4746_v50 = vpop.f32.mrf.mxu0  ;;  %v4748_v52 = vpop.f32.mrf.mxu1 }
 0x179   :  { %v4780_v9 = vpop.f32.mrf.mxu2  ;;  %v4790_v45 = vpop.f32.mrf.mxu3 }
 0x17a   :  { %3324 = vmatmul.msk.f32.gmra.mxu0 %vm99_vm0, %v4175_v41  ;;  %3352 = vmatmul.msk.f32.gmra.mxu1 %vm99_vm0, %v4175_v41  ;;  %7220 = vst [vmem:[#allocation87_spill] sm:$0xff] %v4780_v9 }
 0x17b   :  { %3382 = vmatmul.msk.f32.gmra.mxu2 %vm99_vm0, %v4259_v60  ;;  %3406 = vmatmul.msk.f32.gmra.mxu3 %vm99_vm0, %v4175_v41  ;;  %7221 = vst [vmem:[#allocation88_spill] sm:$0xff] %v4790_v45 }
 0x17f   :  { %v4760_v8 = vpop.f32.mrf.mxu0  ;;  %v4762_v20 = vpop.f32.mrf.mxu1 }
 0x181   :  { %v4804_v9 = vpop.f32.mrf.mxu2 }
 0x182   :  { %3325 = vmatmul.msk.f32.gmra.mxu0 %vm99_vm0, %v4192_v44  ;;  %3353 = vmatmul.msk.f32.gmra.mxu1 %vm99_vm0, %v4192_v44 }
 0x183   :  { %3383 = vmatmul.msk.f32.gmra.mxu2 %vm99_vm0, %v4280_v1  ;;  %3407 = vmatmul.msk.f32.gmra.mxu3 %vm99_vm0, %v4192_v44 }
 0x187   :  { %v4776_v11 = vpop.f32.mrf.mxu0  ;;  %v4778_v23 = vpop.f32.mrf.mxu1 }
 0x18a   :  { %3326 = vmatmul.msk.f32.gmra.mxu0 %vm99_vm0, %v4213_v49  ;;  %3354 = vmatmul.msk.f32.gmra.mxu1 %vm99_vm0, %v4213_v49 }
 0x18b   :  { %3384 = vmatmul.msk.f32.gmra.mxu2 %vm99_vm0, %v4301_v6  ;;  %3408 = vmatmul.msk.f32.gmra.mxu3 %vm99_vm0, %v4213_v49  ;;  %v4806_v49 = vpop.f32.mrf.mxu3 }
 0x18c   :  { %7223 = vst [vmem:[#allocation90_spill] sm:$0xff] %v4806_v49 }
 0x18f   :  { %v4792_v10 = vpop.f32.mrf.mxu0  ;;  %v4794_v17 = vpop.f32.mrf.mxu1 }
 0x190   :  { %7222 = vst [vmem:[#allocation89_spill] sm:$0xff] %v4794_v17 }
 0x192   :  { %3327 = vmatmul.msk.f32.gmra.mxu0 %vm99_vm0, %v4238_v55  ;;  %3355 = vmatmul.msk.f32.gmra.mxu1 %vm99_vm0, %v4238_v55 }
 0x193   :  { %3385 = vmatmul.msk.f32.gmra.mxu2 %vm99_vm0, %v4329_v16  ;;  %3409 = vmatmul.msk.f32.gmra.mxu3 %vm99_vm0, %v4238_v55  ;;  %v4820_v55 = vpop.f32.mrf.mxu2 }
 0x197   :  { %v4808_v45 = vpop.f32.mrf.mxu0  ;;  %v4810_v4 = vpop.f32.mrf.mxu1 }
 0x198   :  { %7224 = vst [vmem:[#allocation91_spill] sm:$0xff] %v4808_v45  ;;  %v4826_v45 = vpop.f32.mrf.mxu3 }
 0x199   :  { %7225 = vst [vmem:[#allocation92_spill] sm:$0xff] %v4810_v4 }
 0x19a   :  { %3328 = vmatmul.msk.f32.gmra.mxu0 %vm99_vm0, %v4259_v60  ;;  %3356 = vmatmul.msk.f32.gmra.mxu1 %vm99_vm0, %v4259_v60  ;;  %7228 = vst [vmem:[#allocation95_spill] sm:$0xff] %v4826_v45  ;;  %v1371_v45 = vld [vmem:[%s7120_s3 + $0xa0] sm:$0xff] }
 0x19b   :  { %3386 = vmatmul.msk.f32.gmra.mxu2 %vm99_vm0, %v4351_v26  ;;  %3410 = vmatmul.msk.f32.gmra.mxu3 %vm99_vm0, %v4259_v60  ;;  %v1366_v60 = vld [vmem:[%s7120_s3 + $0x78] sm:$0xff]  ;;  %v4846_v4 = vpop.f32.mrf.mxu2 }
 0x19c   :  { %1457 = vmatpush.msra.mxu2 %v1366_v60  ;;  %1569 = vmatpush.msrb.mxu3 %v1371_v45  ;;  %v1674_v45 = vld [vmem:[%s7121_s4 + $0x78] sm:$0xff] }
 0x19d   :  { %1680 = vmatpush.msrb.mxu0 %v1674_v45  ;;  %v1365_v45 = vld [vmem:[%s7120_s3 + $0x70] sm:$0xff] }
 0x19e   :  { %1458 = vmatpush.msra.mxu2 %v1365_v45 }
 0x19f   :  { %v4822_v17 = vpop.f32.mrf.mxu0  ;;  %v4824_v49 = vpop.f32.mrf.mxu1 }
 0x1a0   :  { %7226 = vst [vmem:[#allocation93_spill] sm:$0xff] %v4822_v17  ;;  %v4848_v35 = vpop.f32.mrf.mxu3 }
 0x1a1   :  { %7227 = vst [vmem:[#allocation94_spill] sm:$0xff] %v4824_v49 }
 0x1a2   :  { %3329 = vmatmul.msk.f32.gmra.mxu0 %vm99_vm0, %v4280_v1  ;;  %3357 = vmatmul.msk.f32.gmra.mxu1 %vm99_vm0, %v4280_v1  ;;  %7231 = vst [vmem:[#allocation98_spill] sm:$0xff] %v4848_v35 }
 0x1a3   :  { %3387 = vmatmul.msk.f32.gmra.mxu2 %vm99_vm0, %v4375_v7  ;;  %3411 = vmatmul.msk.f32.gmra.mxu3 %vm99_vm0, %v4280_v1  ;;  %v1679_v1 = vld [vmem:[%s7121_s4 + $0xa0] sm:$0xff] }
 0x1a4   :  { %1792 = vmatpush.msrb.mxu1 %v1679_v1 }
 0x1a7   :  { %v4842_v49 = vpop.f32.mrf.mxu0  ;;  %v4844_v17 = vpop.f32.mrf.mxu1 }
 0x1a8   :  { %7229 = vst [vmem:[#allocation96_spill] sm:$0xff] %v4842_v49  ;;  %v4881_v1 = vpop.f32.mrf.mxu3  ;;  %v1359_v49 = vld [vmem:[%s7120_s3 + $0x40] sm:$0xff] }
 0x1a9   :  { %7230 = vst [vmem:[#allocation97_spill] sm:$0xff] %v4844_v17 }
 0x1aa   :  { %3330 = vmatmul.msk.f32.gmra.mxu0 %vm99_vm0, %v4301_v6  ;;  %3358 = vmatmul.msk.f32.gmra.mxu1 %vm99_vm0, %v4301_v6 }
 0x1ab   :  { %3388 = vmatmul.msk.f32.gmra.mxu2 %vm99_vm0, %v4402_v51  ;;  %3412 = vmatmul.msk.f32.gmra.mxu3 %vm99_vm0, %v4301_v6  ;;  %v4872_v6 = vpop.f32.mrf.mxu2 }
 0x1af   :  { %v4864_v60 = vpop.f32.mrf.mxu0  ;;  %v4866_v35 = vpop.f32.mrf.mxu1 }
 0x1b0   :  { %7232 = vst [vmem:[#allocation99_spill] sm:$0xff] %v4864_v60  ;;  %v4896_v17 = vpop.f32.mrf.mxu3 }
 0x1b1   :  { %7233 = vst [vmem:[#allocation100_spill] sm:$0xff] %v4866_v35 }
 0x1b2   :  { %3331 = vmatmul.msk.f32.gmra.mxu0 %vm99_vm0, %v4329_v16  ;;  %3359 = vmatmul.msk.f32.gmra.mxu1 %vm99_vm0, %v4329_v16 }
 0x1b3   :  { %3389 = vmatmul.msk.f32.gmra.mxu2 %vm99_vm0, %v3940_v14  ;;  %3413 = vmatmul.msk.f32.gmra.mxu3 %vm99_vm0, %v4329_v16  ;;  %v1673_v16 = vld [vmem:[%s7121_s4 + $0x70] sm:$0xff] }
 0x1b4   :  { %1681 = vmatpush.msrb.mxu0 %v1673_v16 }
 0x1b7   :  { %v4883_v35 = vpop.f32.mrf.mxu0  ;;  %v4885_v60 = vpop.f32.mrf.mxu1 }
 0x1b8   :  { %7234 = vst [vmem:[#allocation101_spill] sm:$0xff] %v4883_v35 }
 0x1b9   :  { %7235 = vst [vmem:[#allocation102_spill] sm:$0xff] %v4885_v60  ;;  %v1364_v60 = vld [vmem:[%s7120_s3 + $0x68] sm:$0xff] }
 0x1ba   :  { %3332 = vmatmul.msk.f32.gmra.mxu0 %vm99_vm0, %v4351_v26  ;;  %3360 = vmatmul.msk.f32.gmra.mxu1 %vm99_vm0, %v4351_v26 }
 0x1bb   :  { %3414 = vmatmul.msk.f32.gmra.mxu3 %vm99_vm0, %v4351_v26  ;;  %1459 = vmatpush.msra.mxu2 %v1364_v60 }
 0x1bf   :  { %v4898_v45 = vpop.f32.mrf.mxu0  ;;  %v4900_v35 = vpop.f32.mrf.mxu1 }
 0x1c0   :  { %7236 = vst [vmem:[#allocation103_spill] sm:$0xff] %v4898_v45  ;;  %v4915_v45 = vpop.f32.mrf.mxu3 }
 0x1c1   :  { %7237 = vst [vmem:[#allocation104_spill] sm:$0xff] %v4900_v35  ;;  %v1672_v35 = vld [vmem:[%s7121_s4 + $0x68] sm:$0xff] }
 0x1c2   :  { %3333 = vmatmul.msk.f32.gmra.mxu0 %vm99_vm0, %v4375_v7  ;;  %3361 = vmatmul.msk.f32.gmra.mxu1 %vm99_vm0, %v4375_v7 }
 0x1c3   :  { %3415 = vmatmul.msk.f32.gmra.mxu3 %vm99_vm0, %v4375_v7  ;;  %1682 = vmatpush.msrb.mxu0 %v1672_v35 }
 0x1c7   :  { %v4911_v26 = vpop.f32.mrf.mxu0  ;;  %v4913_v16 = vpop.f32.mrf.mxu1 }
 0x1c8   :  { %7238 = vst [vmem:[#allocation105_spill] sm:$0xff] %v4911_v26  ;;  %v4943_v35 = vpop.f32.mrf.mxu3 }
 0x1c9   :  { %7239 = vst [vmem:[#allocation106_spill] sm:$0xff] %v4913_v16  ;;  %v1363_v16 = vld [vmem:[%s7120_s3 + $0x60] sm:$0xff] }
 0x1ca   :  { %3418 = vmatmul.msk.f32.vlgmr.msra.gmra.mxu0 %vm99_vm0, %v3973_v21  ;;  %3446 = vmatmul.msk.f32.vlgmr.msra.gmra.mxu1 %vm99_vm0, %v3973_v21  ;;  %v1370_v21 = vld [vmem:[%s7120_s3 + $0x98] sm:$0xff] }
 0x1cb   :  { %3416 = vmatmul.msk.f32.gmra.mxu3 %vm99_vm0, %v4402_v51  ;;  %v1671_v51 = vld [vmem:[%s7121_s4 + $0x60] sm:$0xff]  ;;  %1460 = vmatpush.msra.mxu2 %v1363_v16 }
 0x1cc   :  { %1570 = vmatpush.msrb.mxu3 %v1370_v21  ;;  %1683 = vmatpush.msrb.mxu0 %v1671_v51  ;;  %v4965_v51 = vpop.f32.mrf.mxu2 }
 0x1cf   :  { %v4926_v7 = vpop.f32.mrf.mxu0  ;;  %v4928_v60 = vpop.f32.mrf.mxu1 }
 0x1d0   :  { %7240 = vst [vmem:[#allocation107_spill] sm:$0xff] %v4926_v7 }
 0x1d1   :  { %7241 = vst [vmem:[#allocation108_spill] sm:$0xff] %v4928_v60 }
 0x1d2   :  { %3419 = vmatmul.msk.f32.gmra.mxu0 %vm99_vm0, %v3994_v24  ;;  %3447 = vmatmul.msk.f32.gmra.mxu1 %vm99_vm0, %v3994_v24  ;;  %v1678_v24 = vld [vmem:[%s7121_s4 + $0x98] sm:$0xff] }
 0x1d3   :  { %3417 = vmatmul.msk.f32.gmra.mxu3 %vm99_vm0, %v3940_v14  ;;  %v1362_v14 = vld [vmem:[%s7120_s3 + $0x58] sm:$0xff]  ;;  %1793 = vmatpush.msrb.mxu1 %v1678_v24 }
 0x1d4   :  { %1461 = vmatpush.msra.mxu2 %v1362_v14 }
 0x1d7   :  { %v4947_v60 = vpop.f32.mrf.mxu0  ;;  %v4949_v7 = vpop.f32.mrf.mxu1 }
 0x1d8   :  { %7242 = vst [vmem:[#allocation109_spill] sm:$0xff] %v4947_v60 }
 0x1d9   :  { %7243 = vst [vmem:[#allocation110_spill] sm:$0xff] %v4949_v7  ;;  %v4967_v7 = vpop.f32.mrf.mxu3 }
 0x1da   :  { %3420 = vmatmul.msk.f32.gmra.mxu0 %vm99_vm0, %v4007_v25  ;;  %3448 = vmatmul.msk.f32.gmra.mxu1 %vm99_vm0, %v4007_v25  ;;  %v1670_v25 = vld [vmem:[%s7121_s4 + $0x58] sm:$0xff] }
 0x1db   :  { %1684 = vmatpush.msrb.mxu0 %v1670_v25 }
 0x1df   :  { %v4961_v16 = vpop.f32.mrf.mxu0  ;;  %v4963_v21 = vpop.f32.mrf.mxu1 }
 0x1e0   :  { %7244 = vst [vmem:[#allocation111_spill] sm:$0xff] %v4961_v16 }
 0x1e1   :  { %7245 = vst [vmem:[#allocation112_spill] sm:$0xff] %v4963_v21  ;;  %v1361_v21 = vld [vmem:[%s7120_s3 + $0x50] sm:$0xff]  ;;  %v4989_v16 = vpop.f32.mrf.mxu3 }
 0x1e2   :  { %3421 = vmatmul.msk.f32.gmra.mxu0 %vm99_vm0, %v4026_v28  ;;  %3449 = vmatmul.msk.f32.gmra.mxu1 %vm99_vm0, %v4026_v28  ;;  %v4987_v28 = vpop.f32.mrf.mxu2 }
 0x1e3   :  { %1462 = vmatpush.msra.mxu2 %v1361_v21 }
 0x1e7   :  { %v4976_v24 = vpop.f32.mrf.mxu0  ;;  %v4978_v14 = vpop.f32.mrf.mxu1 }
 0x1e8   :  { %7246 = vst [vmem:[#allocation113_spill] sm:$0xff] %v4976_v24 }
 0x1e9   :  { %7247 = vst [vmem:[#allocation114_spill] sm:$0xff] %v4978_v14  ;;  %v5004_v14 = vpop.f32.mrf.mxu3 }
 0x1ea   :  { %3422 = vmatmul.msk.f32.gmra.mxu0 %vm99_vm0, %v4039_v29  ;;  %3450 = vmatmul.msk.f32.gmra.mxu1 %vm99_vm0, %v4039_v29  ;;  %v1669_v29 = vld [vmem:[%s7121_s4 + $0x50] sm:$0xff]  ;;  %v5002_v21 = vpop.f32.mrf.mxu2 }
 0x1eb   :  { %1685 = vmatpush.msrb.mxu0 %v1669_v29 }
 0x1ef   :  { %v4991_v25 = vpop.f32.mrf.mxu0  ;;  %v4993_v24 = vpop.f32.mrf.mxu1 }
 0x1f0   :  { %7248 = vst [vmem:[#allocation115_spill] sm:$0xff] %v4991_v25 }
 0x1f1   :  { %7249 = vst [vmem:[#allocation116_spill] sm:$0xff] %v4993_v24 }
 0x1f2   :  { %3423 = vmatmul.msk.f32.gmra.mxu0 %vm99_vm0, %v4052_v30  ;;  %3451 = vmatmul.msk.f32.gmra.mxu1 %vm99_vm0, %v4052_v30  ;;  %v1360_v30 = vld [vmem:[%s7120_s3 + $0x48] sm:$0xff]  ;;  %v5021_v26 = vpop.f32.mrf.mxu2 }
 0x1f3   :  { %1463 = vmatpush.msra.mxu2 %v1360_v30  ;;  %7254 = vst [vmem:[#allocation121_spill] sm:$0xff] %v5021_v26  ;;  %v1677_v30 = vld [vmem:[%s7121_s4 + $0x90] sm:$0xff] }
 0x1f4   :  { %1794 = vmatpush.msrb.mxu1 %v1677_v30 }
 0x1f5   :  { %1464 = vmatpush.msra.mxu2 %v1359_v49 }
 0x1f7   :  { %v5006_v60 = vpop.f32.mrf.mxu0  ;;  %v5008_v25 = vpop.f32.mrf.mxu1 }
 0x1f8   :  { %7250 = vst [vmem:[#allocation117_spill] sm:$0xff] %v5006_v60  ;;  %v5023_v60 = vpop.f32.mrf.mxu3 }
 0x1f9   :  { %7251 = vst [vmem:[#allocation118_spill] sm:$0xff] %v5008_v25  ;;  %v1369_v25 = vld [vmem:[%s7120_s3 + $0x90] sm:$0xff] }
 0x1fa   :  { %3424 = vmatmul.msk.f32.gmra.mxu0 %vm99_vm0, %v4065_v31  ;;  %3452 = vmatmul.msk.f32.gmra.mxu1 %vm99_vm0, %v4065_v31  ;;  %7255 = vst [vmem:[#allocation122_spill] sm:$0xff] %v5023_v60  ;;  %v1668_v31 = vld [vmem:[%s7121_s4 + $0x48] sm:$0xff]  ;;  %v5045_v60 = vpop.f32.mrf.mxu2 }
 0x1fb   :  { %1571 = vmatpush.msrb.mxu3 %v1369_v25  ;;  %1686 = vmatpush.msrb.mxu0 %v1668_v31 }
 0x1ff   :  { %v5017_v29 = vpop.f32.mrf.mxu0  ;;  %v5019_v24 = vpop.f32.mrf.mxu1 }
 0x200   :  { %7252 = vst [vmem:[#allocation119_spill] sm:$0xff] %v5017_v29  ;;  %v5047_v26 = vpop.f32.mrf.mxu3 }
 0x201   :  { %7253 = vst [vmem:[#allocation120_spill] sm:$0xff] %v5019_v24 }
 0x202   :  { %3425 = vmatmul.msk.f32.gmra.mxu0 %vm99_vm0, %v4078_v32  ;;  %3453 = vmatmul.msk.f32.gmra.mxu1 %vm99_vm0, %v4078_v32  ;;  %v1667_v32 = vld [vmem:[%s7121_s4 + $0x40] sm:$0xff]  ;;  %v5067_v30 = vpop.f32.mrf.mxu2 }
 0x203   :  { %1687 = vmatpush.msrb.mxu0 %v1667_v32 }
 0x207   :  { %v5038_v24 = vpop.f32.mrf.mxu0  ;;  %v5040_v29 = vpop.f32.mrf.mxu1 }
 0x208   :  { %7256 = vst [vmem:[#allocation123_spill] sm:$0xff] %v5038_v24  ;;  %v1353_v24 = vld [vmem:[%s7120_s3 + $0x10] sm:$0xff] }
 0x209   :  { %7257 = vst [vmem:[#allocation124_spill] sm:$0xff] %v5040_v29  ;;  %v5069_v29 = vpop.f32.mrf.mxu3 }
 0x20a   :  { %3426 = vmatmul.msk.f32.gmra.mxu0 %vm99_vm0, %v4091_v33  ;;  %3454 = vmatmul.msk.f32.gmra.mxu1 %vm99_vm0, %v4091_v33  ;;  %v1358_v33 = vld [vmem:[%s7120_s3 + $0x38] sm:$0xff] }
 0x20b   :  { %1465 = vmatpush.msra.mxu2 %v1358_v33  ;;  %v5082_v33 = vpop.f32.mrf.mxu2 }
 0x20f   :  { %v5056_v25 = vpop.f32.mrf.mxu0  ;;  %v5058_v31 = vpop.f32.mrf.mxu1 }
 0x210   :  { %7258 = vst [vmem:[#allocation125_spill] sm:$0xff] %v5056_v25 }
 0x211   :  { %7259 = vst [vmem:[#allocation126_spill] sm:$0xff] %v5058_v31  ;;  %v5084_v31 = vpop.f32.mrf.mxu3 }
 0x212   :  { %3427 = vmatmul.msk.f32.gmra.mxu0 %vm99_vm0, %v4104_v34  ;;  %3455 = vmatmul.msk.f32.gmra.mxu1 %vm99_vm0, %v4104_v34  ;;  %v1666_v34 = vld [vmem:[%s7121_s4 + $0x38] sm:$0xff]  ;;  %7262 = vst [vmem:[#allocation129_spill] sm:$0xff] %v5084_v31 }
 0x213   :  { %1688 = vmatpush.msrb.mxu0 %v1666_v34  ;;  %v1355_v34 = vld [vmem:[%s7120_s3 + $0x20] sm:$0xff] }
 0x217   :  { %v5071_v49 = vpop.f32.mrf.mxu0  ;;  %v5073_v32 = vpop.f32.mrf.mxu1 }
 0x218   :  { %7260 = vst [vmem:[#allocation127_spill] sm:$0xff] %v5071_v49 }
 0x219   :  { %7261 = vst [vmem:[#allocation128_spill] sm:$0xff] %v5073_v32  ;;  %v1357_v32 = vld [vmem:[%s7120_s3 + $0x30] sm:$0xff]  ;;  %v5115_v31 = vpop.f32.mrf.mxu3 }
 0x21a   :  { %3428 = vmatmul.msk.f32.gmra.mxu0 %vm99_vm0, %v4123_v37  ;;  %3456 = vmatmul.msk.f32.gmra.mxu1 %vm99_vm0, %v4123_v37  ;;  %v1356_v37 = vld [vmem:[%s7120_s3 + $0x28] sm:$0xff]  ;;  %7268 = vst [vmem:[#allocation135_spill] sm:$0xff] %v5115_v31 }
 0x21b   :  { %1466 = vmatpush.msra.mxu2 %v1357_v32  ;;  %v1354_v32 = vld [vmem:[%s7120_s3 + $0x18] sm:$0xff] }
 0x21d   :  { %1467 = vmatpush.msra.mxu2 %v1356_v37  ;;  %v1352_v37 = vld [vmem:[%s7120_s3 + $0x8] sm:$0xff] }
 0x21f   :  { %v5086_v25 = vpop.f32.mrf.mxu0  ;;  %v5088_v49 = vpop.f32.mrf.mxu1  ;;  %1468 = vmatpush.msra.mxu2 %v1355_v34  ;;  %v1368_v34 = vld [vmem:[%s7120_s3 + $0x88] sm:$0xff] }
 0x220   :  { %7263 = vst [vmem:[#allocation130_spill] sm:$0xff] %v5086_v25  ;;  %1572 = vmatpush.msrb.mxu3 %v1368_v34 }
 0x221   :  { %7264 = vst [vmem:[#allocation131_spill] sm:$0xff] %v5088_v49  ;;  %1469 = vmatpush.msra.mxu2 %v1354_v32  ;;  %v1665_v32 = vld [vmem:[%s7121_s4 + $0x30] sm:$0xff] }
 0x222   :  { %3429 = vmatmul.msk.f32.gmra.mxu0 %vm99_vm0, %v4136_v38  ;;  %3457 = vmatmul.msk.f32.gmra.mxu1 %vm99_vm0, %v4136_v38  ;;  %v5113_v38 = vpop.f32.mrf.mxu2 }
 0x223   :  { %7267 = vst [vmem:[#allocation134_spill] sm:$0xff] %v5113_v38  ;;  %1470 = vmatpush.msra.mxu2 %v1353_v24  ;;  %v1351_v24 = vld [vmem:[%s7120_s3] sm:$0xff]  ;;  %1689 = vmatpush.msrb.mxu0 %v1665_v32  ;;  %v5142_v38 = vpop.f32.mrf.mxu3  ;;  %v1664_v32 = vld [vmem:[%s7121_s4 + $0x28] sm:$0xff] }
 0x224   :  { %7271 = vst [vmem:[#allocation138_spill] sm:$0xff] %v5142_v38 }
 0x225   :  { %1471 = vmatpush.msra.mxu2 %v1352_v37  ;;  %v1676_v37 = vld [vmem:[%s7121_s4 + $0x88] sm:$0xff]  ;;  %1690 = vmatpush.msrb.mxu0 %v1664_v32  ;;  %v642_v32 = vadd.f32 %v4710_v19, %v4185_v42 }
 0x226   :  { %1795 = vmatpush.msrb.mxu1 %v1676_v37 }
 0x227   :  { %v5106_v49 = vpop.f32.mrf.mxu0  ;;  %v5108_v25 = vpop.f32.mrf.mxu1  ;;  %1472 = vmatpush.msra.mxu2 %v1351_v24 }
 0x228   :  { %7265 = vst [vmem:[#allocation132_spill] sm:$0xff] %v5106_v49 }
 0x229   :  { %7266 = vst [vmem:[#allocation133_spill] sm:$0xff] %v5108_v25  ;;  %v1367_v25 = vld [vmem:[%s7120_s3 + $0x80] sm:$0xff] }
 0x22a   :  { %3430 = vmatmul.msk.f32.gmra.mxu0 %vm99_vm0, %v4149_v39  ;;  %3458 = vmatmul.msk.f32.gmra.mxu1 %vm99_vm0, %v4149_v39  ;;  %v5140_v31 = vpop.f32.mrf.mxu2 }
 0x22b   :  { %1573 = vmatpush.msrb.mxu3 %v1367_v25  ;;  %v5164_v24 = vpop.f32.mrf.mxu3 }
 0x22c   :  { %7275 = vst [vmem:[#allocation142_spill] sm:$0xff] %v5164_v24 }
 0x22f   :  { %v5136_v49 = vpop.f32.mrf.mxu0  ;;  %v5138_v39 = vpop.f32.mrf.mxu1 }
 0x230   :  { %7269 = vst [vmem:[#allocation136_spill] sm:$0xff] %v5136_v49  ;;  %v1663_v49 = vld [vmem:[%s7121_s4 + $0x20] sm:$0xff] }
 0x231   :  { %7270 = vst [vmem:[#allocation137_spill] sm:$0xff] %v5138_v39  ;;  %1691 = vmatpush.msrb.mxu0 %v1663_v49  ;;  %v645_v49 = vadd.f32 %v4726_v12, %v4204_v46 }
 0x232   :  { %3431 = vmatmul.msk.f32.gmra.mxu0 %vm99_vm0, %v4162_v40  ;;  %3459 = vmatmul.msk.f32.gmra.mxu1 %vm99_vm0, %v4162_v40  ;;  %v5162_v40 = vpop.f32.mrf.mxu2 }
 0x233   :  { %7274 = vst [vmem:[#allocation141_spill] sm:$0xff] %v5162_v40 }
 0x237   :  { %v5151_v25 = vpop.f32.mrf.mxu0  ;;  %v5153_v34 = vpop.f32.mrf.mxu1 }
 0x238   :  { %7272 = vst [vmem:[#allocation139_spill] sm:$0xff] %v5151_v25 }
 0x239   :  { %7273 = vst [vmem:[#allocation140_spill] sm:$0xff] %v5153_v34  ;;  %v1084_v34 = vld [vmem:[%s7122_s2] sm:$0x3] }
 0x23a   :  { %3432 = vmatmul.msk.f32.gmra.mxu0 %vm99_vm0, %v4175_v41  ;;  %3460 = vmatmul.msk.f32.gmra.mxu1 %vm99_vm0, %v4175_v41  ;;  %v844_v41 = vadd.f32 %v4804_v9, %v4208_v48  ;;  %v5185_v39 = vperm.slane %v1084_v34, 1  ;;  %v5192_v24 = vpop.f32.mrf.mxu2  ;;  %v5194_v48 = vpop.f32.mrf.mxu3 }
 0x23c   :  { %v1028_v19 = vadd.f32 %v844_v41, %v642_v32  ;;  %v746_v41 = vadd.f32 %v4728_v13, %v4206_v47  ;;  %v3801_v47 = vld [vmem:[%s7119_s0 + $0xa8] sm:$0xff]  ;;  %v1662_v13 = vld [vmem:[%s7121_s4 + $0x18] sm:$0xff] }
 0x23d   :  { %1692 = vmatpush.msrb.mxu0 %v1662_v13  ;;  %v957_v13 = vadd.f32 %v4967_v7, %v4366_v36 }
 0x23f   :  { %v5166_v37 = vpop.f32.mrf.mxu0  ;;  %v5168_v25 = vpop.f32.mrf.mxu1 }
 0x240   :  { %7276 = vst [vmem:[#allocation143_spill] sm:$0xff] %v5166_v37  ;;  %v945_v37 = vadd.f32 %v4881_v1, %v4250_v57 }
 0x241   :  { %7277 = vst [vmem:[#allocation144_spill] sm:$0xff] %v5168_v25  ;;  %v5183_v25 = vperm.slane %v1084_v34, 0 }
 0x242   :  { %3433 = vmatmul.msk.f32.gmra.mxu0 %vm99_vm0, %v4192_v44  ;;  %3461 = vmatmul.msk.f32.gmra.mxu1 %vm99_vm0, %v4192_v44  ;;  %v743_v44 = vadd.f32 %v4712_v22, %v4187_v43  ;;  %v3800_v43 = vld [vmem:[%s7119_s0 + $0xa0] sm:$0xff]  ;;  %v847_v22 = vadd.f32 %v4820_v55, %v4240_v56  ;;  %v5220_v56 = vpop.f32.mrf.mxu3  ;;  %v850_v55 = vadd.f32 %v4846_v4, %v4269_v61 }
 0x244   :  { %v1029_v57 = vadd.f32 %v945_v37, %v743_v44  ;;  %v948_v37 = vadd.f32 %v4896_v17, %v4271_v62 }
 0x247   :  { %v1110_v42 = vpop.f32.mrf.mxu0  ;;  %v1211_v9 = vpop.f32.mrf.mxu1 }
 0x248   :  { %v1111_v1 = vadd.f32 %v1110_v42, %v5183_v25  ;;  %v1212_v34 = vadd.f32 %v1211_v9, %v5185_v39  ;;  %v1030_v42 = vadd.f32 %v847_v22, %v645_v49  ;;  %v1031_v9 = vadd.f32 %v948_v37, %v746_v41 }
 0x249   :  { %v651_v41 = vadd.f32 %v4760_v8, %v4252_v58 }
 0x24a   :  { %v5198_v40 = vadd.f32 %v1111_v1, %v1028_v19  ;;  %v5200_v38 = vadd.f32 %v1212_v34, %v1029_v57  ;;  %3434 = vmatmul.msk.f32.gmra.mxu0 %vm99_vm0, %v3800_v43  ;;  %3462 = vmatmul.msk.f32.gmra.mxu1 %vm99_vm0, %v3800_v43  ;;  %v5218_v19 = vpop.f32.mrf.mxu2  ;;  %v648_v57 = vadd.f32 %v4746_v50, %v4231_v53  ;;  %v5251_v50 = vpop.f32.mrf.mxu3 }
 0x24b   :  { %v951_v1 = vadd.f32 %v4915_v45, %v4296_v5  ;;  %v749_v34 = vadd.f32 %v4748_v52, %v4233_v54  ;;  %v3802_v52 = vld [vmem:[%s7119_s0 + $0xb0] sm:$0xff]  ;;  %v853_v54 = vadd.f32 %v4872_v6, %v4290_v2 }
 0x24c   :  { %1473 = vmatmul.f32.vlgmr.msra.gmra.mxu2 %v5198_v40  ;;  %3474 = vmatmul.msk.f32.vlgmr.msrb.gmra.mxu3 %vm1372_vm1, %v5200_v38  ;;  %v1032_v49 = vadd.f32 %v850_v55, %v648_v57 }
 0x24d   :  { %v1033_v37 = vadd.f32 %v951_v1, %v749_v34  ;;  %v755_v1 = vadd.f32 %v4778_v23, %v4275_v0  ;;  %v859_v0 = vadd.f32 %v4987_v28, %v4353_v27  ;;  %v657_v23 = vadd.f32 %v4792_v10, %v4292_v3 }
 0x24f   :  { %v1113_v32 = vpop.f32.mrf.mxu0  ;;  %v1214_v44 = vpop.f32.mrf.mxu1 }
 0x250   :  { %v1114_v46 = vadd.f32 %v1113_v32, %v5183_v25  ;;  %v1215_v62 = vadd.f32 %v1214_v44, %v5185_v39  ;;  %v954_v32 = vadd.f32 %v4943_v35, %v4334_v18  ;;  %v1675_v44 = vld [vmem:[%s7121_s4 + $0x80] sm:$0xff] }
 0x251   :  { %1796 = vmatpush.msrb.mxu1 %v1675_v44 }
 0x252   :  { %v5224_v17 = vadd.f32 %v1114_v46, %v1030_v42  ;;  %v5226_v12 = vadd.f32 %v1215_v62, %v1031_v9  ;;  %3435 = vmatmul.msk.f32.gmra.mxu0 %vm99_vm0, %v3801_v47  ;;  %3463 = vmatmul.msk.f32.gmra.mxu1 %vm99_vm0, %v3801_v47  ;;  %v5249_v53 = vpop.f32.mrf.mxu2  ;;  %v752_v42 = vadd.f32 %v4762_v20, %v4254_v59  ;;  %v3803_v62 = vld [vmem:[%s7119_s0 + $0xb8] sm:$0xff]  ;;  %v1661_v59 = vld [vmem:[%s7121_s4 + $0x10] sm:$0xff]  ;;  %v5298_v57 = vpop.f32.mrf.mxu3 }
 0x253   :  { %v1034_v9 = vadd.f32 %v853_v54, %v651_v41  ;;  %1693 = vmatpush.msrb.mxu0 %v1661_v59  ;;  %v856_v20 = vadd.f32 %v4965_v51, %v4324_v15  ;;  %v654_v47 = vadd.f32 %v4776_v11, %v4273_v63  ;;  %v7284_v59 = vld [vmem:[#allocation18_spill] sm:$0xff] }
 0x254   :  { %1476 = vmatmul.f32.gmra.mxu2 %v5224_v17  ;;  %3475 = vmatmul.msk.f32.gmra.mxu3 %vm1372_vm1, %v5226_v12  ;;  %v1035_v58 = vadd.f32 %v954_v32, %v752_v42 }
 0x255   :  { %v1036_v51 = vadd.f32 %v856_v20, %v654_v47  ;;  %v963_v20 = vadd.f32 %v5004_v14, %v7284_v59  ;;  %v7285_v47 = vld [vmem:[#allocation6_spill] sm:$0xff] }
 0x257   :  { %v1116_v43 = vpop.f32.mrf.mxu0  ;;  %v1217_v22 = vpop.f32.mrf.mxu1 }
 0x258   :  { %v1117_v61 = vadd.f32 %v1116_v43, %v5183_v25  ;;  %v1218_v4 = vadd.f32 %v1217_v22, %v5185_v39  ;;  %v1037_v43 = vadd.f32 %v957_v13, %v755_v1  ;;  %v3804_v22 = vld [vmem:[%s7119_s0 + $0xc0] sm:$0xff]  ;;  %v7286_v13 = vld [vmem:[#allocation92_spill] sm:$0xff] }
 0x259   :  { %v761_v1 = vadd.f32 %v7286_v13, %v7285_v47 }
 0x25a   :  { %v5253_v5 = vadd.f32 %v1117_v61, %v1032_v49  ;;  %v5255_v45 = vadd.f32 %v1218_v4, %v1033_v37  ;;  %3436 = vmatmul.msk.f32.gmra.mxu0 %vm99_vm0, %v3802_v52  ;;  %3464 = vmatmul.msk.f32.gmra.mxu1 %vm99_vm0, %v3802_v52  ;;  %v5296_v55 = vpop.f32.mrf.mxu2  ;;  %v7278_v49 = vld [vmem:[#allocation12_spill] sm:$0xff]  ;;  %v1660_v61 = vld [vmem:[%s7121_s4 + $0x8] sm:$0xff]  ;;  %v7280_v52 = vld [vmem:[#allocation89_spill] sm:$0xff]  ;;  %v5332_v28 = vpop.f32.mrf.mxu3 }
 0x25b   :  { %v960_v37 = vadd.f32 %v4989_v16, %v7278_v49  ;;  %1694 = vmatpush.msrb.mxu0 %v1660_v61  ;;  %v7279_v4 = vld [vmem:[#allocation4_spill] sm:$0xff]  ;;  %v1038_v16 = vadd.f32 %v859_v0, %v657_v23  ;;  %v7287_v49 = vld [vmem:[#allocation15_spill] sm:$0xff] }
 0x25c   :  { %1479 = vmatmul.f32.gmra.mxu2 %v5253_v5  ;;  %3476 = vmatmul.msk.f32.gmra.mxu3 %vm1372_vm1, %v5255_v45  ;;  %v758_v54 = vadd.f32 %v7280_v52, %v7279_v4  ;;  %v3806_v23 = vld [vmem:[%s7119_s0 + $0xd0] sm:$0xff]  ;;  %v7289_v4 = vld [vmem:[#allocation7_spill] sm:$0xff]  ;;  %v7290_v52 = vld [vmem:[#allocation93_spill] sm:$0xff] }
 0x25e   :  { %v1039_v41 = vadd.f32 %v960_v37, %v758_v54  ;;  %v7288_v37 = vld [vmem:[#allocation121_spill] sm:$0xff]  ;;  %v663_v54 = vadd.f32 %v7290_v52, %v7289_v4 }
 0x25f   :  { %v1119_v2 = vpop.f32.mrf.mxu0  ;;  %v1220_v6 = vpop.f32.mrf.mxu1  ;;  %v865_v61 = vadd.f32 %v7288_v37, %v7287_v49  ;;  %v7299_v37 = vld [vmem:[#allocation10_spill] sm:$0xff] }
 0x260   :  { %v1120_v8 = vadd.f32 %v1119_v2, %v5183_v25  ;;  %v1221_v18 = vadd.f32 %v1220_v6, %v5185_v39  ;;  %v3805_v6 = vld [vmem:[%s7119_s0 + $0xc8] sm:$0xff] }
 0x262   :  { %v5278_v35 = vadd.f32 %v1120_v8, %v1034_v9  ;;  %v5280_v46 = vadd.f32 %v1221_v18, %v1035_v58  ;;  %3437 = vmatmul.msk.f32.gmra.mxu0 %vm99_vm0, %v3803_v62  ;;  %3465 = vmatmul.msk.f32.gmra.mxu1 %vm99_vm0, %v3803_v62  ;;  %v5330_v27 = vpop.f32.mrf.mxu2  ;;  %v7281_v9 = vld [vmem:[#allocation11_spill] sm:$0xff]  ;;  %v7282_v8 = vld [vmem:[#allocation5_spill] sm:$0xff] }
 0x263   :  { %v862_v58 = vadd.f32 %v5002_v21, %v7281_v9  ;;  %v7283_v18 = vld [vmem:[#allocation91_spill] sm:$0xff]  ;;  %v5358_v21 = vpop.f32.mrf.mxu3 }
 0x264   :  { %1482 = vmatmul.f32.gmra.mxu2 %v5278_v35  ;;  %3477 = vmatmul.msk.f32.gmra.mxu3 %vm1372_vm1, %v5280_v46  ;;  %v660_v62 = vadd.f32 %v7283_v18, %v7282_v8  ;;  %v1042_v8 = vadd.f32 %v865_v61, %v663_v54  ;;  %v7300_v61 = vld [vmem:[#allocation97_spill] sm:$0xff] }
 0x265   :  { %v767_v4 = vadd.f32 %v7300_v61, %v7299_v37 }
 0x267   :  { %v1122_v34 = vpop.f32.mrf.mxu0  ;;  %v1223_v15 = vpop.f32.mrf.mxu1 }
 0x268   :  { %v1123_v63 = vadd.f32 %v1122_v34, %v5183_v25  ;;  %v1224_v36 = vadd.f32 %v1223_v15, %v5185_v39 }
 0x26a   :  { %v5307_v11 = vadd.f32 %v1123_v63, %v1036_v51  ;;  %v5309_v7 = vadd.f32 %v1224_v36, %v1037_v43  ;;  %3438 = vmatmul.msk.f32.gmra.mxu0 %vm99_vm0, %v3804_v22  ;;  %3466 = vmatmul.msk.f32.gmra.mxu1 %vm99_vm0, %v3804_v22  ;;  %v1040_v51 = vadd.f32 %v862_v58, %v660_v62  ;;  %v5356_v63 = vpop.f32.mrf.mxu2 }
 0x26b   :  { %v1041_v43 = vadd.f32 %v963_v20, %v761_v1  ;;  %v5389_v47 = vpop.f32.mrf.mxu3 }
 0x26c   :  { %1485 = vmatmul.f32.gmra.mxu2 %v5307_v11  ;;  %3478 = vmatmul.msk.f32.gmra.mxu3 %vm1372_vm1, %v5309_v7 }
 0x26f   :  { %v1125_v3 = vpop.f32.mrf.mxu0  ;;  %v1226_v10 = vpop.f32.mrf.mxu1 }
 0x270   :  { %v1126_v32 = vadd.f32 %v1125_v3, %v5183_v25  ;;  %v1227_v44 = vadd.f32 %v1226_v10, %v5185_v39  ;;  %v7291_v3 = vld [vmem:[#allocation22_spill] sm:$0xff] }
 0x271   :  { %v7292_v10 = vld [vmem:[#allocation122_spill] sm:$0xff] }
 0x272   :  { %v5336_v42 = vadd.f32 %v1126_v32, %v1038_v16  ;;  %v5338_v2 = vadd.f32 %v1227_v44, %v1039_v41  ;;  %3439 = vmatmul.msk.f32.gmra.mxu0 %vm99_vm0, %v3805_v6  ;;  %3467 = vmatmul.msk.f32.gmra.mxu1 %vm99_vm0, %v3805_v6  ;;  %v966_v16 = vadd.f32 %v7292_v10, %v7291_v3  ;;  %v1659_v41 = vld [vmem:[%s7121_s4] sm:$0xff]  ;;  %v7293_v32 = vld [vmem:[#allocation8_spill] sm:$0xff]  ;;  %v5387_v20 = vpop.f32.mrf.mxu2 }
 0x273   :  { %1695 = vmatpush.msrb.mxu0 %v1659_v41  ;;  %v7294_v44 = vld [vmem:[#allocation94_spill] sm:$0xff] }
 0x274   :  { %1488 = vmatmul.f32.gmra.mxu2 %v5336_v42  ;;  %3479 = vmatmul.msk.f32.gmra.mxu3 %vm1372_vm1, %v5338_v2  ;;  %v764_v6 = vadd.f32 %v7294_v44, %v7293_v32  ;;  %v7301_v44 = vld [vmem:[#allocation25_spill] sm:$0xff] }
 0x276   :  { %v1043_v18 = vadd.f32 %v966_v16, %v764_v6  ;;  %v871_v6 = vadd.f32 %v5067_v30, %v7301_v44  ;;  %v3551_v30 = vld [vmem:[%s7123_s5 + $0x158] sm:$0xf]  ;;  %v7310_v44 = vld [vmem:[#allocation36_spill] sm:$0xff] }
 0x277   :  { %v1128_v34 = vpop.f32.mrf.mxu0  ;;  %v1229_v15 = vpop.f32.mrf.mxu1  ;;  %3563 = vmatpush.msk.msra.mxu3 %vm2000_vm2, %v3551_v30 }
 0x278   :  { %v1129_v36 = vadd.f32 %v1128_v34, %v5183_v25  ;;  %v1230_v14 = vadd.f32 %v1229_v15, %v5185_v39  ;;  %v3807_v34 = vld [vmem:[%s7119_s0 + $0xd8] sm:$0xff] }
 0x279   :  { %v7295_v15 = vld [vmem:[#allocation21_spill] sm:$0xff] }
 0x27a   :  { %v5362_v22 = vadd.f32 %v1129_v36, %v1040_v51  ;;  %v5364_v0 = vadd.f32 %v1230_v14, %v1041_v43  ;;  %3440 = vmatmul.msk.f32.gmra.mxu0 %vm99_vm0, %v3806_v23  ;;  %3468 = vmatmul.msk.f32.gmra.mxu1 %vm99_vm0, %v3806_v23  ;;  %v868_v51 = vadd.f32 %v5045_v60, %v7295_v15  ;;  %v7296_v43 = vld [vmem:[#allocation9_spill] sm:$0xff]  ;;  %v7297_v36 = vld [vmem:[#allocation96_spill] sm:$0xff]  ;;  %v7298_v23 = vld [vmem:[#allocation26_spill] sm:$0xff] }
 0x27b   :  { %v666_v14 = vadd.f32 %v7297_v36, %v7296_v43  ;;  %v969_v49 = vadd.f32 %v5047_v26, %v7298_v23  ;;  %v3808_v26 = vld [vmem:[%s7119_s0 + $0xe0] sm:$0xff]  ;;  %v3550_v15 = vld [vmem:[%s7123_s5 + $0x150] sm:$0xf] }
 0x27c   :  { %1491 = vmatmul.f32.gmra.mxu2 %v5362_v22  ;;  %3480 = vmatmul.msk.f32.gmra.mxu3 %vm1372_vm1, %v5364_v0 }
 0x27d   :  { %v1044_v3 = vadd.f32 %v868_v51, %v666_v14  ;;  %v1045_v10 = vadd.f32 %v969_v49, %v767_v4  ;;  %3552 = vmatpush.msk.msrb.mxu2 %vm2000_vm2, %v3550_v15  ;;  %v7306_v51 = vld [vmem:[#allocation100_spill] sm:$0xff] }
 0x27f   :  { %v1131_v9 = vpop.f32.mrf.mxu0  ;;  %v1232_v58 = vpop.f32.mrf.mxu1 }
 0x280   :  { %v1132_v62 = vadd.f32 %v1131_v9, %v5183_v25  ;;  %v1233_v59 = vadd.f32 %v1232_v58, %v5185_v39  ;;  %v7302_v9 = vld [vmem:[#allocation13_spill] sm:$0xff]  ;;  %v7303_v58 = vld [vmem:[#allocation99_spill] sm:$0xff] }
 0x282   :  { %v5391_v13 = vadd.f32 %v1132_v62, %v1042_v8  ;;  %v5393_v1 = vadd.f32 %v1233_v59, %v1043_v18  ;;  %3441 = vmatmul.msk.f32.gmra.mxu0 %vm99_vm0, %v3807_v34  ;;  %3469 = vmatmul.msk.f32.gmra.mxu1 %vm99_vm0, %v3807_v34  ;;  %v669_v8 = vadd.f32 %v7303_v58, %v7302_v9  ;;  %v7304_v18 = vld [vmem:[#allocation30_spill] sm:$0xff]  ;;  %v5428_v59 = vpop.f32.mrf.mxu2  ;;  %v5430_v34 = vpop.f32.mrf.mxu3  ;;  %v7312_v58 = vld [vmem:[#allocation17_spill] sm:$0xff] }
 0x283   :  { %v972_v62 = vadd.f32 %v5069_v29, %v7304_v18  ;;  %v7305_v29 = vld [vmem:[#allocation14_spill] sm:$0xff] }
 0x284   :  { %1494 = vmatmul.f32.gmra.mxu2 %v5391_v13  ;;  %3481 = vmatmul.msk.f32.gmra.mxu3 %vm1372_vm1, %v5393_v1  ;;  %v770_v43 = vadd.f32 %v7306_v51, %v7305_v29  ;;  %v1046_v23 = vadd.f32 %v871_v6, %v669_v8  ;;  %v7311_v6 = vld [vmem:[#allocation129_spill] sm:$0xff]  ;;  %v7313_v8 = vld [vmem:[#allocation102_spill] sm:$0xff] }
 0x285   :  { %v975_v9 = vadd.f32 %v7311_v6, %v7310_v44  ;;  %v773_v18 = vadd.f32 %v7313_v8, %v7312_v58  ;;  %v7320_v6 = vld [vmem:[#allocation20_spill] sm:$0xff] }
 0x286   :  { %v1047_v49 = vadd.f32 %v972_v62, %v770_v43 }
 0x287   :  { %v1134_v52 = vpop.f32.mrf.mxu0  ;;  %v1235_v54 = vpop.f32.mrf.mxu1  ;;  %v1049_v51 = vadd.f32 %v975_v9, %v773_v18  ;;  %v7321_v9 = vld [vmem:[#allocation104_spill] sm:$0xff] }
 0x288   :  { %v1135_v60 = vadd.f32 %v1134_v52, %v5183_v25  ;;  %v1236_v16 = vadd.f32 %v1235_v54, %v5185_v39  ;;  %v3809_v54 = vld [vmem:[%s7119_s0 + $0xe8] sm:$0xff]  ;;  %v776_v58 = vadd.f32 %v7321_v9, %v7320_v6  ;;  %v7325_v6 = vld [vmem:[#allocation44_spill] sm:$0xff]  ;;  %v7326_v9 = vld [vmem:[#allocation138_spill] sm:$0xff] }
 0x28a   :  { %v5413_v41 = vadd.f32 %v1135_v60, %v1044_v3  ;;  %v5415_v32 = vadd.f32 %v1236_v16, %v1045_v10  ;;  %3442 = vmatmul.msk.f32.gmra.mxu0 %vm99_vm0, %v3808_v26  ;;  %3470 = vmatmul.msk.f32.gmra.mxu1 %vm99_vm0, %v3808_v26  ;;  %v7307_v3 = vld [vmem:[#allocation29_spill] sm:$0xff]  ;;  %v7308_v60 = vld [vmem:[#allocation16_spill] sm:$0xff]  ;;  %v5467_v62 = vpop.f32.mrf.mxu2  ;;  %v5469_v15 = vpop.f32.mrf.mxu3 }
 0x28b   :  { %v874_v10 = vadd.f32 %v5082_v33, %v7307_v3  ;;  %v7309_v16 = vld [vmem:[#allocation101_spill] sm:$0xff]  ;;  %v7316_v3 = vld [vmem:[#allocation19_spill] sm:$0xff] }
 0x28c   :  { %1497 = vmatmul.f32.gmra.mxu2 %v5413_v41  ;;  %3482 = vmatmul.msk.f32.gmra.mxu3 %vm1372_vm1, %v5415_v32  ;;  %v672_v26 = vadd.f32 %v7309_v16, %v7308_v60  ;;  %v7318_v16 = vld [vmem:[#allocation40_spill] sm:$0xff] }
 0x28e   :  { %v1048_v29 = vadd.f32 %v874_v10, %v672_v26  ;;  %v7317_v10 = vld [vmem:[#allocation103_spill] sm:$0xff] }
 0x28f   :  { %v1137_v36 = vpop.f32.mrf.mxu0  ;;  %v1238_v14 = vpop.f32.mrf.mxu1  ;;  %v675_v60 = vadd.f32 %v7317_v10, %v7316_v3  ;;  %v7319_v26 = vld [vmem:[#allocation135_spill] sm:$0xff] }
 0x290   :  { %v1138_v37 = vadd.f32 %v1137_v36, %v5183_v25  ;;  %v1239_v61 = vadd.f32 %v1238_v14, %v5185_v39  ;;  %v978_v44 = vadd.f32 %v7319_v26, %v7318_v16  ;;  %v3549_v3 = vld [vmem:[%s7123_s5 + $0x148] sm:$0xff]  ;;  %v7324_v26 = vld [vmem:[#allocation105_spill] sm:$0xff] }
 0x291   :  { %2060 = vmatpush.msra.mxu3 %v3549_v3  ;;  %v7322_v10 = vld [vmem:[#allocation39_spill] sm:$0xff] }
 0x292   :  { %v5447_v4 = vadd.f32 %v1138_v37, %v1046_v23  ;;  %v5449_v52 = vadd.f32 %v1239_v61, %v1047_v49  ;;  %3443 = vmatmul.msk.f32.gmra.mxu0 %vm99_vm0, %v3809_v54  ;;  %3471 = vmatmul.msk.f32.gmra.mxu1 %vm99_vm0, %v3809_v54  ;;  %v3810_v49 = vld [vmem:[%s7119_s0 + $0xf0] sm:$0xff]  ;;  %v7314_v37 = vld [vmem:[#allocation33_spill] sm:$0xff]  ;;  %v7315_v61 = vld [vmem:[#allocation134_spill] sm:$0xff] }
 0x293   :  { %v877_v54 = vadd.f32 %v7315_v61, %v7314_v37  ;;  %v7323_v16 = vld [vmem:[#allocation23_spill] sm:$0xff] }
 0x294   :  { %1500 = vmatmul.f32.gmra.mxu2 %v5447_v4  ;;  %3483 = vmatmul.msk.f32.gmra.mxu3 %vm1372_vm1, %v5449_v52 }
 0x297   :  { %v1140_v30 = vpop.f32.mrf.mxu0  ;;  %v1241_v33 = vpop.f32.mrf.mxu1 }
 0x298   :  { %v1141_v43 = vadd.f32 %v1140_v30, %v5183_v25  ;;  %v1242_v36 = vadd.f32 %v1241_v33, %v5185_v39  ;;  %v81_v30 = vld [vmem:[%s7119_s0 + $0xf8] sm:$0xff]  ;;  %v1050_v33 = vadd.f32 %v877_v54, %v675_v60  ;;  %v3548_v54 = vld [vmem:[%s7123_s5 + $0x140] sm:$0xff]  ;;  %v880_v60 = vadd.f32 %v5140_v31, %v7322_v10 }
 0x299   :  { %2013 = vmatpush.msrb.mxu2 %v3548_v54 }
 0x29a   :  { %v5473_v14 = vadd.f32 %v1141_v43, %v1048_v29  ;;  %v5475_v23 = vadd.f32 %v1242_v36, %v1049_v51  ;;  %3444 = vmatmul.msk.f32.gmra.mxu0 %vm99_vm0, %v3810_v49  ;;  %3472 = vmatmul.msk.f32.gmra.mxu1 %vm99_vm0, %v3810_v49  ;;  %v1051_v29 = vadd.f32 %v978_v44, %v776_v58  ;;  %v5496_v51 = vpop.f32.mrf.mxu2  ;;  %v5498_v43 = vpop.f32.mrf.mxu3 }
 0x29b   :  { %v678_v44 = vadd.f32 %v7324_v26, %v7323_v16  ;;  %v981_v58 = vadd.f32 %v7326_v9, %v7325_v6  ;;  %v7329_v6 = vld [vmem:[#allocation43_spill] sm:$0xff] }
 0x29c   :  { %1503 = vmatmul.f32.gmra.mxu2 %v5473_v14  ;;  %3484 = vmatmul.msk.f32.gmra.mxu3 %vm1372_vm1, %v5475_v23  ;;  %v7331_v9 = vld [vmem:[#allocation27_spill] sm:$0xff] }
 0x29f   :  { %v1143_v8 = vpop.f32.mrf.mxu0  ;;  %v1244_v18 = vpop.f32.mrf.mxu1 }
 0x2a0   :  { %v1144_v36 = vadd.f32 %v1143_v8, %v5183_v25  ;;  %v1245_v49 = vadd.f32 %v1244_v18, %v5185_v39  ;;  %v7327_v8 = vld [vmem:[#allocation24_spill] sm:$0xff]  ;;  %v7328_v18 = vld [vmem:[#allocation106_spill] sm:$0xff] }
 0x2a2   :  { %v5502_v37 = vadd.f32 %v1144_v36, %v1050_v33  ;;  %v5504_v61 = vadd.f32 %v1245_v49, %v1051_v29  ;;  %3445 = vmatmul.msk.f32.gmra.mxu0 %vm99_vm0, %v81_v30  ;;  %3473 = vmatmul.msk.f32.gmra.mxu1 %vm99_vm0, %v81_v30  ;;  %v779_v30 = vadd.f32 %v7328_v18, %v7327_v8  ;;  %v5527_v3 = vpop.f32.mrf.mxu2  ;;  %v5529_v10 = vpop.f32.mrf.mxu3  ;;  %v7333_v18 = vld [vmem:[#allocation48_spill] sm:$0xff] }
 0x2a3   :  { %v1052_v36 = vadd.f32 %v880_v60, %v678_v44  ;;  %v7330_v60 = vld [vmem:[#allocation141_spill] sm:$0xff] }
 0x2a4   :  { %1506 = vmatmul.f32.gmra.mxu2 %v5502_v37  ;;  %3485 = vmatmul.msk.f32.gmra.mxu3 %vm1372_vm1, %v5504_v61  ;;  %v1053_v49 = vadd.f32 %v981_v58, %v779_v30  ;;  %v883_v44 = vadd.f32 %v7330_v60, %v7329_v6  ;;  %v7332_v58 = vld [vmem:[#allocation107_spill] sm:$0xff]  ;;  %v7334_v30 = vld [vmem:[#allocation142_spill] sm:$0xff] }
 0x2a5   :  { %v681_v8 = vadd.f32 %v7332_v58, %v7331_v9 }
 0x2a7   :  { %v1146_v33 = vpop.f32.mrf.mxu0  ;;  %v1247_v29 = vpop.f32.mrf.mxu1 }
 0x2a8   :  { %v1147_v31 = vadd.f32 %v1146_v33, %v5183_v25  ;;  %v1248_v54 = vadd.f32 %v1247_v29, %v5185_v39  ;;  %v984_v33 = vadd.f32 %v7334_v30, %v7333_v18  ;;  %v7335_v29 = vld [vmem:[#allocation28_spill] sm:$0xff]  ;;  %v7337_v18 = vld [vmem:[#allocation47_spill] sm:$0xff] }
 0x2a9   :  { %v886_v30 = vadd.f32 %v5192_v24, %v7337_v18 }
 0x2aa   :  { %v5531_v16 = vadd.f32 %v1147_v31, %v1052_v36  ;;  %v5533_v26 = vadd.f32 %v1248_v54, %v1053_v49  ;;  %1696 = vmatmul.f32.vlgmr.msrb.gmra.mxu0 %v5198_v40  ;;  %3502 = vmatmul.msk.f32.vlgmr.msrb.gmra.mxu1 %vm1372_vm1, %v5200_v38  ;;  %v7336_v36 = vld [vmem:[#allocation108_spill] sm:$0xff]  ;;  %v1054_v38 = vadd.f32 %v883_v44, %v681_v8  ;;  %v7340_v8 = vld [vmem:[#allocation54_spill] sm:$0xff] }
 0x2ab   :  { %v782_v40 = vadd.f32 %v7336_v36, %v7335_v29  ;;  %v7338_v29 = vld [vmem:[#allocation31_spill] sm:$0xff]  ;;  %v7339_v36 = vld [vmem:[#allocation109_spill] sm:$0xff] }
 0x2ac   :  { %1509 = vmatmul.f32.gmra.mxu2 %v5531_v16  ;;  %3486 = vmatmul.msk.f32.gmra.mxu3 %vm1372_vm1, %v5533_v26  ;;  %v684_v44 = vadd.f32 %v7339_v36, %v7338_v29  ;;  %v3546_v36 = vld [vmem:[%s7123_s5 + $0x130] sm:$0xff] }
 0x2ad   :  { %v1055_v54 = vadd.f32 %v984_v33, %v782_v40  ;;  %v987_v33 = vadd.f32 %v5194_v48, %v7340_v8  ;;  %v5564_v40 = vpop.f32.mrf.mxu2  ;;  %2014 = vmatpush.msrb.mxu2 %v3546_v36 }
 0x2af   :  { %v1149_v49 = vpop.f32.mrf.mxu0  ;;  %v1250_v31 = vpop.f32.mrf.mxu1 }
 0x2b0   :  { %v1150_v6 = vadd.f32 %v1149_v49, %v5183_v25  ;;  %v1251_v60 = vadd.f32 %v1250_v31, %v5185_v39  ;;  %v5566_v49 = vpop.f32.mrf.mxu3 }
 0x2b2   :  { %v5551_v9 = vadd.f32 %v1150_v6, %v1054_v38  ;;  %v5553_v58 = vadd.f32 %v1251_v60, %v1055_v54  ;;  %1699 = vmatmul.f32.gmra.mxu0 %v5224_v17  ;;  %3503 = vmatmul.msk.f32.gmra.mxu1 %vm1372_vm1, %v5226_v12  ;;  %v7341_v17 = vld [vmem:[#allocation32_spill] sm:$0xff]  ;;  %v7342_v12 = vld [vmem:[#allocation110_spill] sm:$0xff]  ;;  %v1056_v54 = vadd.f32 %v886_v30, %v684_v44  ;;  %v3547_v30 = vld [vmem:[%s7123_s5 + $0x138] sm:$0xff] }
 0x2b3   :  { %v785_v31 = vadd.f32 %v7342_v12, %v7341_v17  ;;  %2061 = vmatpush.msra.mxu3 %v3547_v30  ;;  %v7343_v44 = vld [vmem:[#allocation51_spill] sm:$0xff] }
 0x2b4   :  { %1512 = vmatmul.f32.gmra.mxu2 %v5551_v9  ;;  %3487 = vmatmul.msk.f32.gmra.mxu3 %vm1372_vm1, %v5553_v58  ;;  %v889_v8 = vadd.f32 %v5218_v19, %v7343_v44  ;;  %v7345_v17 = vld [vmem:[#allocation111_spill] sm:$0xff] }
 0x2b5   :  { %v1057_v6 = vadd.f32 %v987_v33, %v785_v31  ;;  %v7344_v33 = vld [vmem:[#allocation34_spill] sm:$0xff] }
 0x2b6   :  { %v687_v12 = vadd.f32 %v7345_v17, %v7344_v33  ;;  %v7349_v17 = vld [vmem:[#allocation57_spill] sm:$0xff] }
 0x2b7   :  { %v1152_v38 = vpop.f32.mrf.mxu0  ;;  %v1253_v24 = vpop.f32.mrf.mxu1 }
 0x2b8   :  { %v1153_v60 = vadd.f32 %v1152_v38, %v5183_v25  ;;  %v1254_v48 = vadd.f32 %v1253_v24, %v5185_v39  ;;  %v7348_v38 = vld [vmem:[#allocation112_spill] sm:$0xff] }
 0x2ba   :  { %v5575_v18 = vadd.f32 %v1153_v60, %v1056_v54  ;;  %v5577_v29 = vadd.f32 %v1254_v48, %v1057_v6  ;;  %1702 = vmatmul.f32.gmra.mxu0 %v5253_v5  ;;  %3504 = vmatmul.msk.f32.gmra.mxu1 %vm1372_vm1, %v5255_v45  ;;  %v7346_v5 = vld [vmem:[#allocation58_spill] sm:$0xff]  ;;  %v7347_v45 = vld [vmem:[#allocation35_spill] sm:$0xff]  ;;  %v5599_v54 = vpop.f32.mrf.mxu2  ;;  %v5601_v6 = vpop.f32.mrf.mxu3  ;;  %v1058_v48 = vadd.f32 %v889_v8, %v687_v12 }
 0x2bb   :  { %v990_v31 = vadd.f32 %v5220_v56, %v7346_v5  ;;  %v788_v24 = vadd.f32 %v7348_v38, %v7347_v45  ;;  %v892_v5 = vadd.f32 %v5249_v53, %v7349_v17  ;;  %v7350_v45 = vld [vmem:[#allocation37_spill] sm:$0xff]  ;;  %v7352_v12 = vld [vmem:[#allocation62_spill] sm:$0xff] }
 0x2bc   :  { %1515 = vmatmul.f32.gmra.mxu2 %v5575_v18  ;;  %3488 = vmatmul.msk.f32.gmra.mxu3 %vm1372_vm1, %v5577_v29  ;;  %v7351_v38 = vld [vmem:[#allocation113_spill] sm:$0xff] }
 0x2bd   :  { %v1059_v36 = vadd.f32 %v990_v31, %v788_v24  ;;  %v690_v8 = vadd.f32 %v7351_v38, %v7350_v45  ;;  %v993_v31 = vadd.f32 %v5251_v50, %v7352_v12  ;;  %v7353_v24 = vld [vmem:[#allocation38_spill] sm:$0xff]  ;;  %v7356_v38 = vld [vmem:[#allocation61_spill] sm:$0xff]  ;;  %v7358_v12 = vld [vmem:[#allocation115_spill] sm:$0xff] }
 0x2bf   :  { %v1155_v60 = vpop.f32.mrf.mxu0  ;;  %v1256_v19 = vpop.f32.mrf.mxu1 }
 0x2c0   :  { %v1156_v30 = vadd.f32 %v1155_v60, %v5183_v25  ;;  %v1257_v56 = vadd.f32 %v1256_v19, %v5185_v39  ;;  %v7354_v60 = vld [vmem:[#allocation114_spill] sm:$0xff] }
 0x2c2   :  { %v5605_v44 = vadd.f32 %v1156_v30, %v1058_v48  ;;  %v5607_v33 = vadd.f32 %v1257_v56, %v1059_v36  ;;  %1705 = vmatmul.f32.gmra.mxu0 %v5278_v35  ;;  %3505 = vmatmul.msk.f32.gmra.mxu1 %vm1372_vm1, %v5280_v46  ;;  %v791_v35 = vadd.f32 %v7354_v60, %v7353_v24  ;;  %v5623_v30 = vpop.f32.mrf.mxu2  ;;  %v5625_v53 = vpop.f32.mrf.mxu3  ;;  %v7359_v24 = vld [vmem:[#allocation66_spill] sm:$0xff] }
 0x2c3   :  { %v1060_v46 = vadd.f32 %v892_v5, %v690_v8  ;;  %v895_v5 = vadd.f32 %v5296_v55, %v7356_v38  ;;  %v7357_v8 = vld [vmem:[#allocation41_spill] sm:$0xff]  ;;  %v996_v60 = vadd.f32 %v5298_v57, %v7359_v24  ;;  %v7360_v55 = vld [vmem:[#allocation42_spill] sm:$0xff] }
 0x2c4   :  { %1518 = vmatmul.f32.gmra.mxu2 %v5605_v44  ;;  %3489 = vmatmul.msk.f32.gmra.mxu3 %vm1372_vm1, %v5607_v33  ;;  %v1061_v36 = vadd.f32 %v993_v31, %v791_v35  ;;  %v693_v31 = vadd.f32 %v7358_v12, %v7357_v8  ;;  %v7361_v35 = vld [vmem:[#allocation116_spill] sm:$0xff] }
 0x2c7   :  { %v1158_v19 = vpop.f32.mrf.mxu0  ;;  %v1259_v48 = vpop.f32.mrf.mxu1 }
 0x2c8   :  { %v1159_v56 = vadd.f32 %v1158_v19, %v5183_v25  ;;  %v1260_v50 = vadd.f32 %v1259_v48, %v5185_v39  ;;  %v794_v19 = vadd.f32 %v7361_v35, %v7360_v55  ;;  %v7365_v55 = vld [vmem:[#allocation72_spill] sm:$0xff] }
 0x2c9   :  { %v999_v35 = vadd.f32 %v5332_v28, %v7365_v55 }
 0x2ca   :  { %v5629_v17 = vadd.f32 %v1159_v56, %v1060_v46  ;;  %v5631_v45 = vadd.f32 %v1260_v50, %v1061_v36  ;;  %1708 = vmatmul.f32.gmra.mxu0 %v5307_v11  ;;  %3506 = vmatmul.msk.f32.gmra.mxu1 %vm1372_vm1, %v5309_v7  ;;  %v3544_v11 = vld [vmem:[%s7123_s5 + $0x120] sm:$0xff]  ;;  %v3545_v7 = vld [vmem:[%s7123_s5 + $0x128] sm:$0xff]  ;;  %v1062_v46 = vadd.f32 %v895_v5, %v693_v31  ;;  %v7363_v31 = vld [vmem:[#allocation45_spill] sm:$0xff] }
 0x2cb   :  { %2015 = vmatpush.msrb.mxu2 %v3544_v11  ;;  %2062 = vmatpush.msra.mxu3 %v3545_v7  ;;  %v1063_v36 = vadd.f32 %v996_v60, %v794_v19  ;;  %v7362_v11 = vld [vmem:[#allocation65_spill] sm:$0xff]  ;;  %v7366_v19 = vld [vmem:[#allocation46_spill] sm:$0xff] }
 0x2cc   :  { %7355 = vst [vmem:[#allocation12_spill] sm:$0xff] %v5631_v45  ;;  %1521 = vmatmul.f32.gmra.mxu2 %v5629_v17  ;;  %3490 = vmatmul.msk.f32.gmra.mxu3 %vm1372_vm1, %v5631_v45  ;;  %v898_v5 = vadd.f32 %v5330_v27, %v7362_v11  ;;  %v7364_v60 = vld [vmem:[#allocation117_spill] sm:$0xff] }
 0x2cd   :  { %v696_v7 = vadd.f32 %v7364_v60, %v7363_v31  ;;  %v7368_v31 = vld [vmem:[#allocation69_spill] sm:$0xff] }
 0x2ce   :  { %v7369_v60 = vld [vmem:[#allocation49_spill] sm:$0xff] }
 0x2cf   :  { %v1161_v48 = vpop.f32.mrf.mxu0  ;;  %v1262_v57 = vpop.f32.mrf.mxu1 }
 0x2d0   :  { %v1162_v56 = vadd.f32 %v1161_v48, %v5183_v25  ;;  %v1263_v50 = vadd.f32 %v1262_v57, %v5185_v39  ;;  %v1474_v38 = vpop.f32.mrf.mxu2  ;;  %v1575_v8 = vpop.f32.mrf.mxu3  ;;  %v7367_v48 = vld [vmem:[#allocation118_spill] sm:$0xff] }
 0x2d1   :  { %v5655_v12 = vadd.f32 %v1575_v8, %v1474_v38 }
 0x2d2   :  { %v5657_v24 = vadd.f32 %v1162_v56, %v1062_v46  ;;  %v5659_v45 = vadd.f32 %v1263_v50, %v1063_v36  ;;  %1711 = vmatmul.f32.gmra.mxu0 %v5336_v42  ;;  %3507 = vmatmul.msk.f32.gmra.mxu1 %vm1372_vm1, %v5338_v2  ;;  %v797_v42 = vadd.f32 %v7367_v48, %v7366_v19  ;;  %v7372_v48 = vld [vmem:[#allocation50_spill] sm:$0xff] }
 0x2d3   :  { %v1064_v2 = vadd.f32 %v898_v5, %v696_v7  ;;  %v901_v5 = vadd.f32 %v5356_v63, %v7368_v31  ;;  %v7370_v7 = vld [vmem:[#allocation119_spill] sm:$0xff] }
 0x2d4   :  { %1524 = vmatmul.f32.gmra.mxu2 %v5657_v24  ;;  %3491 = vmatmul.msk.f32.gmra.mxu3 %vm1372_vm1, %v5659_v45  ;;  %v1065_v36 = vadd.f32 %v999_v35, %v797_v42  ;;  %v699_v55 = vadd.f32 %v7370_v7, %v7369_v60  ;;  %v7371_v35 = vld [vmem:[#allocation76_spill] sm:$0xff]  ;;  %v7376_v60 = vld [vmem:[#allocation123_spill] sm:$0xff] }
 0x2d5   :  { %v1002_v19 = vadd.f32 %v5358_v21, %v7371_v35  ;;  %v7373_v42 = vld [vmem:[#allocation120_spill] sm:$0xff] }
 0x2d6   :  { %v3542_v21 = vld [vmem:[%s7123_s5 + $0x110] sm:$0xff] }
 0x2d7   :  { %v1164_v57 = vpop.f32.mrf.mxu0  ;;  %v1265_v46 = vpop.f32.mrf.mxu1  ;;  %2016 = vmatpush.msrb.mxu2 %v3542_v21  ;;  %v7379_v35 = vld [vmem:[#allocation124_spill] sm:$0xff]  ;;  %v7382_v21 = vld [vmem:[#allocation125_spill] sm:$0xff] }
 0x2d8   :  { %v1165_v27 = vadd.f32 %v1164_v57, %v5183_v25  ;;  %v1266_v56 = vadd.f32 %v1265_v46, %v5185_v39  ;;  %v1477_v50 = vpop.f32.mrf.mxu2  ;;  %v1578_v38 = vpop.f32.mrf.mxu3 }
 0x2d9   :  { %v5677_v8 = vadd.f32 %v1578_v38, %v1477_v50  ;;  %v3543_v50 = vld [vmem:[%s7123_s5 + $0x118] sm:$0xff]  ;;  %v7374_v38 = vld [vmem:[#allocation75_spill] sm:$0xff] }
 0x2da   :  { %v5679_v28 = vadd.f32 %v1165_v27, %v1064_v2  ;;  %v5681_v11 = vadd.f32 %v1266_v56, %v1065_v36  ;;  %1714 = vmatmul.f32.gmra.mxu0 %v5362_v22  ;;  %3508 = vmatmul.msk.f32.gmra.mxu1 %vm1372_vm1, %v5364_v0  ;;  %v800_v22 = vadd.f32 %v7373_v42, %v7372_v48 }
 0x2db   :  { %v1066_v0 = vadd.f32 %v901_v5, %v699_v55  ;;  %2063 = vmatpush.msra.mxu3 %v3543_v50  ;;  %v904_v31 = vadd.f32 %v5387_v20, %v7374_v38  ;;  %v7375_v5 = vld [vmem:[#allocation52_spill] sm:$0xff]  ;;  %v7383_v38 = vld [vmem:[#allocation82_spill] sm:$0xff] }
 0x2dc   :  { %1527 = vmatmul.f32.gmra.mxu2 %v5679_v28  ;;  %3492 = vmatmul.msk.f32.gmra.mxu3 %vm1372_vm1, %v5681_v11  ;;  %v1067_v2 = vadd.f32 %v1002_v19, %v800_v22  ;;  %v702_v7 = vadd.f32 %v7376_v60, %v7375_v5  ;;  %v7384_v5 = vld [vmem:[#allocation56_spill] sm:$0xff]  ;;  %v7385_v60 = vld [vmem:[#allocation126_spill] sm:$0xff] }
 0x2de   :  { %v1068_v22 = vadd.f32 %v904_v31, %v702_v7  ;;  %v1008_v31 = vadd.f32 %v5430_v34, %v7383_v38  ;;  %v7386_v34 = vld [vmem:[#allocation81_spill] sm:$0xff] }
 0x2df   :  { %v1167_v57 = vpop.f32.mrf.mxu0  ;;  %v1268_v46 = vpop.f32.mrf.mxu1 }
 0x2e0   :  { %v1168_v63 = vadd.f32 %v1167_v57, %v5183_v25  ;;  %v1269_v36 = vadd.f32 %v1268_v46, %v5185_v39 }
 0x2e2   :  { %v5699_v27 = vadd.f32 %v1168_v63, %v1066_v0  ;;  %v5701_v56 = vadd.f32 %v1269_v36, %v1067_v2  ;;  %1717 = vmatmul.f32.gmra.mxu0 %v5391_v13  ;;  %3509 = vmatmul.msk.f32.gmra.mxu1 %vm1372_vm1, %v5393_v1  ;;  %v7377_v13 = vld [vmem:[#allocation80_spill] sm:$0xff]  ;;  %v7378_v1 = vld [vmem:[#allocation53_spill] sm:$0xff]  ;;  %v7381_v36 = vld [vmem:[#allocation55_spill] sm:$0xff] }
 0x2e3   :  { %v1005_v55 = vadd.f32 %v5389_v47, %v7377_v13  ;;  %v803_v19 = vadd.f32 %v7379_v35, %v7378_v1  ;;  %v7380_v47 = vld [vmem:[#allocation79_spill] sm:$0xff]  ;;  %v705_v50 = vadd.f32 %v7382_v21, %v7381_v36 }
 0x2e4   :  { %1530 = vmatmul.f32.gmra.mxu2 %v5699_v27  ;;  %3493 = vmatmul.msk.f32.gmra.mxu3 %vm1372_vm1, %v5701_v56  ;;  %v907_v63 = vadd.f32 %v5428_v59, %v7380_v47  ;;  %v7391_v47 = vld [vmem:[#allocation128_spill] sm:$0xff] }
 0x2e5   :  { %v1069_v57 = vadd.f32 %v1005_v55, %v803_v19 }
 0x2e7   :  { %v1170_v48 = vpop.f32.mrf.mxu0  ;;  %v1271_v42 = vpop.f32.mrf.mxu1 }
 0x2e8   :  { %v1171_v20 = vadd.f32 %v1170_v48, %v5183_v25  ;;  %v1272_v46 = vadd.f32 %v1271_v42, %v5185_v39  ;;  %v910_v48 = vadd.f32 %v5467_v62, %v7386_v34  ;;  %v7387_v42 = vld [vmem:[#allocation59_spill] sm:$0xff]  ;;  %v7390_v62 = vld [vmem:[#allocation60_spill] sm:$0xff] }
 0x2e9   :  { %v7396_v34 = vld [vmem:[#allocation64_spill] sm:$0xff] }
 0x2ea   :  { %v5725_v0 = vadd.f32 %v1171_v20, %v1068_v22  ;;  %v5727_v2 = vadd.f32 %v1272_v46, %v1069_v57  ;;  %1720 = vmatmul.f32.gmra.mxu0 %v5413_v41  ;;  %3510 = vmatmul.msk.f32.gmra.mxu1 %vm1372_vm1, %v5415_v32  ;;  %v806_v41 = vadd.f32 %v7385_v60, %v7384_v5  ;;  %v7388_v22 = vld [vmem:[#allocation127_spill] sm:$0xff]  ;;  %v7389_v20 = vld [vmem:[#allocation84_spill] sm:$0xff] }
 0x2eb   :  { %v1070_v32 = vadd.f32 %v907_v63, %v705_v50  ;;  %v708_v57 = vadd.f32 %v7388_v22, %v7387_v42  ;;  %v1011_v46 = vadd.f32 %v5469_v15, %v7389_v20  ;;  %v809_v63 = vadd.f32 %v7391_v47, %v7390_v62  ;;  %v7399_v62 = vld [vmem:[#allocation67_spill] sm:$0xff]  ;;  %v7400_v47 = vld [vmem:[#allocation132_spill] sm:$0xff] }
 0x2ec   :  { %1533 = vmatmul.f32.gmra.mxu2 %v5725_v0  ;;  %3494 = vmatmul.msk.f32.gmra.mxu3 %vm1372_vm1, %v5727_v2  ;;  %v1071_v55 = vadd.f32 %v1008_v31, %v806_v41  ;;  %v7392_v41 = vld [vmem:[#allocation83_spill] sm:$0xff] }
 0x2ed   :  { %v1072_v21 = vadd.f32 %v910_v48, %v708_v57  ;;  %v1073_v50 = vadd.f32 %v1011_v46, %v809_v63  ;;  %v7397_v48 = vld [vmem:[#allocation131_spill] sm:$0xff]  ;;  %v714_v63 = vadd.f32 %v7400_v47, %v7399_v62 }
 0x2ef   :  { %v1173_v7 = vpop.f32.mrf.mxu0  ;;  %v1274_v13 = vpop.f32.mrf.mxu1 }
 0x2f0   :  { %v1174_v59 = vadd.f32 %v1173_v7, %v5183_v25  ;;  %v1275_v1 = vadd.f32 %v1274_v13, %v5185_v39  ;;  %v913_v7 = vadd.f32 %v5496_v51, %v7392_v41  ;;  %v7393_v13 = vld [vmem:[#allocation63_spill] sm:$0xff] }
 0x2f2   :  { %v5745_v35 = vadd.f32 %v1174_v59, %v1070_v32  ;;  %v5747_v19 = vadd.f32 %v1275_v1, %v1071_v55  ;;  %1723 = vmatmul.f32.gmra.mxu0 %v5447_v4  ;;  %3511 = vmatmul.msk.f32.gmra.mxu1 %vm1372_vm1, %v5449_v52  ;;  %v3540_v4 = vld [vmem:[%s7123_s5 + $0x100] sm:$0xff]  ;;  %v3541_v52 = vld [vmem:[%s7123_s5 + $0x108] sm:$0xff] }
 0x2f3   :  { %2017 = vmatpush.msrb.mxu2 %v3540_v4  ;;  %2064 = vmatpush.msra.mxu3 %v3541_v52  ;;  %v7394_v32 = vld [vmem:[#allocation130_spill] sm:$0xff] }
 0x2f4   :  { %1536 = vmatmul.f32.gmra.mxu2 %v5745_v35  ;;  %3495 = vmatmul.msk.f32.gmra.mxu3 %vm1372_vm1, %v5747_v19  ;;  %v711_v55 = vadd.f32 %v7394_v32, %v7393_v13  ;;  %v7395_v59 = vld [vmem:[#allocation86_spill] sm:$0xff]  ;;  %v5811_v13 = vpop.f32.mrf.mxu2  ;;  %v5813_v32 = vpop.f32.mrf.mxu3 }
 0x2f5   :  { %v1014_v1 = vadd.f32 %v5498_v43, %v7395_v59  ;;  %v7398_v43 = vld [vmem:[#allocation85_spill] sm:$0xff]  ;;  %v3538_v59 = vld [vmem:[%s7123_s5 + $0xf0] sm:$0xff] }
 0x2f6   :  { %v916_v52 = vadd.f32 %v5527_v3, %v7398_v43  ;;  %2018 = vmatpush.msrb.mxu2 %v3538_v59 }
 0x2f7   :  { %v1176_v36 = vpop.f32.mrf.mxu0  ;;  %v1277_v15 = vpop.f32.mrf.mxu1 }
 0x2f8   :  { %v1177_v38 = vadd.f32 %v1176_v36, %v5183_v25  ;;  %v1278_v31 = vadd.f32 %v1277_v15, %v5185_v39  ;;  %v7401_v36 = vld [vmem:[#allocation88_spill] sm:$0xff] }
 0x2f9   :  { %v1017_v15 = vadd.f32 %v5529_v10, %v7401_v36 }
 0x2fa   :  { %v5771_v5 = vadd.f32 %v1177_v38, %v1072_v21  ;;  %v5773_v60 = vadd.f32 %v1278_v31, %v1073_v50  ;;  %1726 = vmatmul.f32.gmra.mxu0 %v5473_v14  ;;  %3512 = vmatmul.msk.f32.gmra.mxu1 %vm1372_vm1, %v5475_v23  ;;  %v812_v14 = vadd.f32 %v7397_v48, %v7396_v34  ;;  %v7402_v21 = vld [vmem:[#allocation68_spill] sm:$0xff]  ;;  %v7403_v50 = vld [vmem:[#allocation133_spill] sm:$0xff]  ;;  %v7404_v34 = vld [vmem:[#allocation87_spill] sm:$0xff] }
 0x2fb   :  { %v1074_v23 = vadd.f32 %v913_v7, %v711_v55  ;;  %v919_v48 = vadd.f32 %v5564_v40, %v7404_v34 }
 0x2fc   :  { %1539 = vmatmul.f32.gmra.mxu2 %v5771_v5  ;;  %3496 = vmatmul.msk.f32.gmra.mxu3 %vm1372_vm1, %v5773_v60  ;;  %v1075_v57 = vadd.f32 %v1014_v1, %v812_v14  ;;  %v3539_v1 = vld [vmem:[%s7123_s5 + $0xf8] sm:$0xff]  ;;  %v7405_v14 = vld [vmem:[#allocation70_spill] sm:$0xff] }
 0x2fd   :  { %2065 = vmatpush.msra.mxu3 %v3539_v1 }
 0x2ff   :  { %v1179_v42 = vpop.f32.mrf.mxu0  ;;  %v1280_v22 = vpop.f32.mrf.mxu1 }
 0x300   :  { %v1180_v51 = vadd.f32 %v1179_v42, %v5183_v25  ;;  %v1281_v20 = vadd.f32 %v1280_v22, %v5185_v39  ;;  %v7406_v42 = vld [vmem:[#allocation136_spill] sm:$0xff] }
 0x301   :  { %v717_v22 = vadd.f32 %v7406_v42, %v7405_v14 }
 0x302   :  { %v5791_v46 = vadd.f32 %v1180_v51, %v1074_v23  ;;  %v5793_v4 = vadd.f32 %v1281_v20, %v1075_v57  ;;  %1729 = vmatmul.f32.gmra.mxu0 %v5502_v37  ;;  %3513 = vmatmul.msk.f32.gmra.mxu1 %vm1372_vm1, %v5504_v61  ;;  %v815_v37 = vadd.f32 %v7403_v50, %v7402_v21  ;;  %v7409_v57 = vld [vmem:[#allocation137_spill] sm:$0xff]  ;;  %v7412_v50 = vld [vmem:[#allocation95_spill] sm:$0xff] }
 0x303   :  { %v1076_v61 = vadd.f32 %v916_v52, %v714_v63  ;;  %v1078_v52 = vadd.f32 %v919_v48, %v717_v22  ;;  %v3537_v22 = vld [vmem:[%s7123_s5 + $0xe8] sm:$0xff] }
 0x304   :  { %1542 = vmatmul.f32.gmra.mxu2 %v5791_v46  ;;  %3497 = vmatmul.msk.f32.gmra.mxu3 %vm1372_vm1, %v5793_v4  ;;  %v1077_v41 = vadd.f32 %v1017_v15, %v815_v37  ;;  %v7411_v15 = vld [vmem:[#allocation139_spill] sm:$0xff]  ;;  %v1023_v37 = vadd.f32 %v5601_v6, %v7412_v50 }
 0x305   :  { %2066 = vmatpush.msra.mxu3 %v3537_v22 }
 0x307   :  { %v1182_v38 = vpop.f32.mrf.mxu0  ;;  %v1283_v31 = vpop.f32.mrf.mxu1 }
 0x308   :  { %v1183_v3 = vadd.f32 %v1182_v38, %v5183_v25  ;;  %v1284_v7 = vadd.f32 %v1283_v31, %v5185_v39  ;;  %v5852_v38 = vpop.f32.mrf.mxu2  ;;  %v5854_v31 = vpop.f32.mrf.mxu3 }
 0x30a   :  { %v5815_v10 = vadd.f32 %v1183_v3, %v1076_v61  ;;  %v5817_v55 = vadd.f32 %v1284_v7, %v1077_v41  ;;  %1732 = vmatmul.f32.gmra.mxu0 %v5531_v16  ;;  %3514 = vmatmul.msk.f32.gmra.mxu1 %vm1372_vm1, %v5533_v26  ;;  %v7407_v16 = vld [vmem:[#allocation90_spill] sm:$0xff]  ;;  %v7408_v26 = vld [vmem:[#allocation71_spill] sm:$0xff] }
 0x30b   :  { %v1020_v23 = vadd.f32 %v5566_v49, %v7407_v16  ;;  %v818_v51 = vadd.f32 %v7409_v57, %v7408_v26  ;;  %v7410_v49 = vld [vmem:[#allocation73_spill] sm:$0xff]  ;;  %v7413_v61 = vld [vmem:[#allocation2_spill] sm:$0xff] }
 0x30c   :  { %1545 = vmatmul.f32.gmra.mxu2 %v5815_v10  ;;  %3498 = vmatmul.msk.f32.gmra.mxu3 %vm1372_vm1, %v5817_v55  ;;  %v720_v21 = vadd.f32 %v7411_v15, %v7410_v49  ;;  %v7414_v41 = vld [vmem:[#allocation74_spill] sm:$0xff]  ;;  %v7416_v16 = vld [vmem:[#allocation77_spill] sm:$0xff] }
 0x30d   :  { %v1079_v62 = vadd.f32 %v1020_v23, %v818_v51  ;;  %v7417_v23 = vld [vmem:[#allocation143_spill] sm:$0xff]  ;;  %v7418_v57 = vld [vmem:[#allocation98_spill] sm:$0xff] }
 0x30e   :  { %v723_v26 = vadd.f32 %v7417_v23, %v7416_v16  ;;  %v1026_v51 = vadd.f32 %v5625_v53, %v7418_v57 }
 0x30f   :  { %v1185_v20 = vpop.f32.mrf.mxu0  ;;  %v1286_v43 = vpop.f32.mrf.mxu1 }
 0x310   :  { %v1186_v40 = vadd.f32 %v1185_v20, %v5183_v25  ;;  %v1287_v47 = vadd.f32 %v1286_v43, %v5185_v39  ;;  %v7420_v20 = vld [vmem:[#allocation78_spill] sm:$0xff]  ;;  %v7421_v43 = vld [vmem:[#allocation144_spill] sm:$0xff] }
 0x312   :  { %v5841_v63 = vadd.f32 %v1186_v40, %v1078_v52  ;;  %v5843_v36 = vadd.f32 %v1287_v47, %v1079_v62  ;;  %1735 = vmatmul.f32.gmra.mxu0 %v5551_v9  ;;  %3515 = vmatmul.msk.f32.gmra.mxu1 %vm1372_vm1, %v5553_v58  ;;  %v922_v9 = vadd.f32 %v5599_v54, %v7413_v61  ;;  %v7415_v58 = vld [vmem:[#allocation140_spill] sm:$0xff]  ;;  %v3536_v54 = vld [vmem:[%s7123_s5 + $0xe0] sm:$0xff]  ;;  %v5889_v62 = vpop.f32.mrf.mxu2  ;;  %v5891_v40 = vpop.f32.mrf.mxu3 }
 0x313   :  { %v821_v3 = vadd.f32 %v7415_v58, %v7414_v41  ;;  %2019 = vmatpush.msrb.mxu2 %v3536_v54  ;;  %v824_v52 = vadd.f32 %v7421_v43, %v7420_v20 }
 0x314   :  { %1548 = vmatmul.f32.gmra.mxu2 %v5841_v63  ;;  %3499 = vmatmul.msk.f32.gmra.mxu3 %vm1372_vm1, %v5843_v36  ;;  %v1080_v1 = vadd.f32 %v922_v9, %v720_v21 }
 0x315   :  { %v1081_v34 = vadd.f32 %v1023_v37, %v821_v3  ;;  %v1083_v21 = vadd.f32 %v1026_v51, %v824_v52  ;;  %v3534_v37 = vld [vmem:[%s7123_s5 + $0xd0] sm:$0xff] }
 0x316   :  { %2020 = vmatpush.msrb.mxu2 %v3534_v37 }
 0x317   :  { %v1188_v7 = vpop.f32.mrf.mxu0  ;;  %v1289_v59 = vpop.f32.mrf.mxu1 }
 0x318   :  { %v1189_v6 = vadd.f32 %v1188_v7, %v5183_v25  ;;  %v1290_v48 = vadd.f32 %v1289_v59, %v5185_v39  ;;  %v7422_v59 = vld [vmem:[#allocation12_spill] sm:$0xff] }
 0x31a   :  { %v5865_v14 = vadd.f32 %v1189_v6, %v1080_v1  ;;  %v5867_v42 = vadd.f32 %v1290_v48, %v1081_v34  ;;  %1738 = vmatmul.f32.gmra.mxu0 %v5575_v18  ;;  %3516 = vmatmul.msk.f32.gmra.mxu1 %vm1372_vm1, %v5577_v29  ;;  %v7419_v18 = vld [vmem:[#allocation3_spill] sm:$0xff]  ;;  %v1489_v3 = vpop.f32.mrf.mxu2  ;;  %v1590_v7 = vpop.f32.mrf.mxu3 }
 0x31b   :  { %v925_v29 = vadd.f32 %v5623_v30, %v7419_v18  ;;  %v3535_v30 = vld [vmem:[%s7123_s5 + $0xd8] sm:$0xff] }
 0x31c   :  { %1551 = vmatmul.f32.gmra.mxu2 %v5865_v14  ;;  %3500 = vmatmul.msk.f32.gmra.mxu3 %vm1372_vm1, %v5867_v42 }
 0x31d   :  { %v1082_v15 = vadd.f32 %v925_v29, %v723_v26  ;;  %2067 = vmatpush.msra.mxu3 %v3535_v30  ;;  %v3593_v30 = vld [vmem:[%s7123_s5 + $0x1f8] sm:$0xff] }
 0x31f   :  { %v1191_v47 = vpop.f32.mrf.mxu0  ;;  %v1292_v49 = vpop.f32.mrf.mxu1 }
 0x320   :  { %v1192_v53 = vadd.f32 %v1191_v47, %v5183_v25  ;;  %v1293_v50 = vadd.f32 %v1292_v49, %v5185_v39  ;;  %v3532_v39 = vld [vmem:[%s7123_s5 + $0xc0] sm:$0xff]  ;;  %v3533_v25 = vld [vmem:[%s7123_s5 + $0xc8] sm:$0xff]  ;;  %v1591_v49 = vadd.f32 %v1590_v7, %v1489_v3 }
 0x321   :  { %2021 = vmatpush.msrb.mxu2 %v3532_v39  ;;  %2068 = vmatpush.msra.mxu3 %v3533_v25  ;;  %v3590_v39 = vld [vmem:[%s7123_s5 + $0x1e0] sm:$0xff]  ;;  %v3591_v25 = vld [vmem:[%s7123_s5 + $0x1e8] sm:$0xff] }
 0x322   :  { %v5901_v61 = vadd.f32 %v1192_v53, %v1082_v15  ;;  %v5903_v9 = vadd.f32 %v1293_v50, %v1083_v21  ;;  %1741 = vmatmul.f32.gmra.mxu0 %v5605_v44  ;;  %3517 = vmatmul.msk.f32.gmra.mxu1 %vm1372_vm1, %v5607_v33  ;;  %v3530_v44 = vld [vmem:[%s7123_s5 + $0xb0] sm:$0xff]  ;;  %v3531_v33 = vld [vmem:[%s7123_s5 + $0xb8] sm:$0xff]  ;;  %v5926_v54 = vpop.f32.mrf.mxu2  ;;  %v5928_v22 = vpop.f32.mrf.mxu3  ;;  %v3586_v3 = vld [vmem:[%s7123_s5 + $0x1c0] sm:$0xff] }
 0x323   :  { %2022 = vmatpush.msrb.mxu2 %v3530_v44  ;;  %2069 = vmatpush.msra.mxu3 %v3531_v33 }
 0x324   :  { %1554 = vmatmul.f32.gmra.mxu2 %v5901_v61  ;;  %3501 = vmatmul.msk.f32.gmra.mxu3 %vm1372_vm1, %v5903_v9 }
 0x327   :  { %v1697_v41 = vpop.f32.mrf.mxu0  ;;  %v1798_v58 = vpop.f32.mrf.mxu1 }
 0x328   :  { %v1799_v1 = vadd.f32 %v1798_v58, %v1697_v41  ;;  %v3588_v41 = vld [vmem:[%s7123_s5 + $0x1d0] sm:$0xff]  ;;  %v3589_v58 = vld [vmem:[%s7123_s5 + $0x1d8] sm:$0xff] }
 0x32a   :  { %1744 = vmatmul.f32.gmra.mxu0 %v5629_v17  ;;  %3518 = vmatmul.msk.f32.gmra.mxu1 %vm1372_vm1, %v7422_v59  ;;  %v1882_v16 = vmax.f32 %v5655_v12, %v1799_v1  ;;  %v5940_v51 = vpop.f32.mrf.mxu2  ;;  %v5942_v18 = vpop.f32.mrf.mxu3  ;;  %v3584_v1 = vld [vmem:[%s7123_s5 + $0x1b0] sm:$0xff] }
 0x32f   :  { %v1700_v34 = vpop.f32.mrf.mxu0  ;;  %v1801_v6 = vpop.f32.mrf.mxu1 }
 0x330   :  { %v1802_v48 = vadd.f32 %v1801_v6, %v1700_v34  ;;  %v3585_v34 = vld [vmem:[%s7123_s5 + $0x1b8] sm:$0xff]  ;;  %v1594_v6 = vadd.f32 %v5928_v22, %v5926_v54  ;;  %v3580_v54 = vld [vmem:[%s7123_s5 + $0x190] sm:$0xff] }
 0x331   :  { %v3581_v22 = vld [vmem:[%s7123_s5 + $0x198] sm:$0xff] }
 0x332   :  { %v1883_v23 = vmax.f32 %v5677_v8, %v1802_v48  ;;  %1747 = vmatmul.f32.gmra.mxu0 %v5657_v24  ;;  %3519 = vmatmul.msk.f32.gmra.mxu1 %vm1372_vm1, %v5659_v45  ;;  %v1582_v24 = vadd.f32 %v5813_v32, %v5811_v13  ;;  %v1585_v45 = vadd.f32 %v5854_v31, %v5852_v38  ;;  %v5955_v47 = vpop.f32.mrf.mxu3 }
 0x333   :  { %v1588_v31 = vadd.f32 %v5891_v40, %v5889_v62  ;;  %v3595_v62 = vld [vmem:[%s7123_s5 + $0x208] sm:$0xf]  ;;  %v3592_v40 = vld [vmem:[%s7123_s5 + $0x1f0] sm:$0xff]  ;;  %v1597_v48 = vadd.f32 %v5942_v18, %v5940_v51 }
 0x334   :  { %v5935_v17 = vmax.f32 %v1882_v16, %v1883_v23  ;;  %3695 = vmatpush.msk.msra.mxu1 %vm2000_vm2, %v3595_v62  ;;  %v3582_v23 = vld [vmem:[%s7123_s5 + $0x1a0] sm:$0xff]  ;;  %v3612_v62 = vld [vmem:[%s7123_s5 + $0x290] sm:$0xff] }
 0x336   :  { %2438 = vmatpush.msra.mxu1 %v3593_v30 }
 0x337   :  { %v1703_v26 = vpop.f32.mrf.mxu0  ;;  %v1804_v57 = vpop.f32.mrf.mxu1 }
 0x338   :  { %v1805_v12 = vadd.f32 %v1804_v57, %v1703_v26  ;;  %2439 = vmatpush.msra.mxu1 %v3591_v25  ;;  %v3583_v26 = vld [vmem:[%s7123_s5 + $0x1a8] sm:$0xff] }
 0x33a   :  { %1750 = vmatmul.f32.gmra.mxu0 %v5679_v28  ;;  %3520 = vmatmul.msk.f32.gmra.mxu1 %vm1372_vm1, %v5681_v11  ;;  %v1884_v43 = vmax.f32 %v1582_v24, %v1805_v12  ;;  %v5953_v11 = vpop.f32.mrf.mxu2  ;;  %v5968_v21 = vpop.f32.mrf.mxu3 }
 0x33b   :  { %2440 = vmatpush.msra.mxu1 %v3589_v58 }
 0x33f   :  { %v1706_v8 = vpop.f32.mrf.mxu0  ;;  %v1807_v29 = vpop.f32.mrf.mxu1 }
 0x340   :  { %v1808_v20 = vadd.f32 %v1807_v29, %v1706_v8 }
 0x342   :  { %v1885_v52 = vmax.f32 %v1585_v45, %v1808_v20  ;;  %1753 = vmatmul.f32.gmra.mxu0 %v5699_v27  ;;  %3521 = vmatmul.msk.f32.gmra.mxu1 %vm1372_vm1, %v5701_v56  ;;  %v5966_v15 = vpop.f32.mrf.mxu2  ;;  %v6001_v33 = vpop.f32.mrf.mxu3  ;;  %v3576_v45 = vld [vmem:[%s7123_s5 + $0x170] sm:$0xff]  ;;  %v3577_v20 = vld [vmem:[%s7123_s5 + $0x178] sm:$0xff] }
 0x344   :  { %v5951_v28 = vmax.f32 %v1884_v43, %v1885_v52  ;;  %v3574_v43 = vld [vmem:[%s7123_s5 + $0x160] sm:$0xff]  ;;  %v3575_v52 = vld [vmem:[%s7123_s5 + $0x168] sm:$0xff] }
 0x346   :  { %3553 = vmatmul.msk.f32.vlgmr.msrb.gmra.mxu2 %vm1969_vm3, %v5951_v28  ;;  %3564 = vmatmul.msk.f32.vlgmr.msra.gmra.mxu3 %vm1969_vm3, %v5951_v28 }
 0x347   :  { %v1709_v13 = vpop.f32.mrf.mxu0  ;;  %v1810_v32 = vpop.f32.mrf.mxu1 }
 0x348   :  { %v1811_v27 = vadd.f32 %v1810_v32, %v1709_v13  ;;  %v3616_v13 = vld [vmem:[%s7123_s5 + $0x2b0] sm:$0xf]  ;;  %v3617_v32 = vld [vmem:[%s7123_s5 + $0x2b8] sm:$0xf] }
 0x349   :  { %3618 = vmatpush.msk.msra.mxu2 %vm2000_vm2, %v3616_v13  ;;  %3629 = vmatpush.msk.msrb.mxu3 %vm2000_vm2, %v3617_v32 }
 0x34a   :  { %1756 = vmatmul.f32.gmra.mxu0 %v5725_v0  ;;  %3522 = vmatmul.msk.f32.gmra.mxu1 %vm1372_vm1, %v5727_v2  ;;  %v1886_v50 = vmax.f32 %v1588_v31, %v1811_v27  ;;  %v3594_v2 = vld [vmem:[%s7123_s5 + $0x200] sm:$0xf]  ;;  %v5999_v44 = vpop.f32.mrf.mxu2  ;;  %v1608_v18 = vpop.f32.mrf.mxu3 }
 0x34b   :  { %3684 = vmatpush.msk.msra.mxu0 %vm2000_vm2, %v3594_v2 }
 0x34d   :  { %2391 = vmatpush.msra.mxu0 %v3592_v40 }
 0x34f   :  { %v1712_v56 = vpop.f32.mrf.mxu0  ;;  %v1813_v38 = vpop.f32.mrf.mxu1  ;;  %2392 = vmatpush.msra.mxu0 %v3590_v39  ;;  %v1606_v39 = vadd.f32 %v6001_v33, %v5999_v44  ;;  %v3611_v44 = vld [vmem:[%s7123_s5 + $0x288] sm:$0xff]  ;;  %v3608_v33 = vld [vmem:[%s7123_s5 + $0x270] sm:$0xff] }
 0x350   :  { %v1814_v53 = vadd.f32 %v1813_v38, %v1712_v56 }
 0x351   :  { %2393 = vmatpush.msra.mxu0 %v3588_v41 }
 0x352   :  { %v1887_v37 = vmax.f32 %v1591_v49, %v1814_v53  ;;  %1759 = vmatmul.f32.gmra.mxu0 %v5745_v35  ;;  %3523 = vmatmul.msk.f32.gmra.mxu1 %vm1372_vm1, %v5747_v19  ;;  %v1507_v51 = vpop.f32.mrf.mxu2  ;;  %v1611_v56 = vpop.f32.mrf.mxu3  ;;  %v1603_v49 = vadd.f32 %v5968_v21, %v5966_v15 }
 0x353   :  { %2394 = vmatpush.msra.mxu0 %v3586_v3 }
 0x354   :  { %v5973_v0 = vmax.f32 %v1886_v50, %v1887_v37 }
 0x355   :  { %2395 = vmatpush.msra.mxu0 %v3584_v1 }
 0x356   :  { %3554 = vmatmul.msk.f32.gmra.mxu2 %vm1969_vm3, %v5973_v0  ;;  %3565 = vmatmul.msk.f32.gmra.mxu3 %vm1969_vm3, %v5973_v0 }
 0x357   :  { %v1715_v35 = vpop.f32.mrf.mxu0  ;;  %v1816_v19 = vpop.f32.mrf.mxu1  ;;  %2396 = vmatpush.msra.mxu0 %v3582_v23 }
 0x359   :  { %2397 = vmatpush.msra.mxu0 %v3580_v54 }
 0x35a   :  { %1762 = vmatmul.f32.gmra.mxu0 %v5771_v5  ;;  %3524 = vmatmul.msk.f32.gmra.mxu1 %vm1372_vm1, %v5773_v60  ;;  %v3587_v5 = vld [vmem:[%s7123_s5 + $0x1c8] sm:$0xff]  ;;  %v1817_v60 = vadd.f32 %v1816_v19, %v1715_v35  ;;  %v1510_v27 = vpop.f32.mrf.mxu2  ;;  %v1614_v21 = vpop.f32.mrf.mxu3  ;;  %v3613_v35 = vld [vmem:[%s7123_s5 + $0x298] sm:$0xff] }
 0x35b   :  { %2441 = vmatpush.msra.mxu1 %v3587_v5 }
 0x35c   :  { %v1888_v57 = vmax.f32 %v1594_v6, %v1817_v60  ;;  %v3610_v60 = vld [vmem:[%s7123_s5 + $0x280] sm:$0xff] }
 0x35d   :  { %2442 = vmatpush.msra.mxu1 %v3585_v34 }
 0x35f   :  { %v1718_v7 = vpop.f32.mrf.mxu0  ;;  %v1819_v59 = vpop.f32.mrf.mxu1  ;;  %2443 = vmatpush.msra.mxu1 %v3583_v26 }
 0x360   :  { %v1820_v16 = vadd.f32 %v1819_v59, %v1718_v7  ;;  %v3609_v7 = vld [vmem:[%s7123_s5 + $0x278] sm:$0xff] }
 0x361   :  { %2444 = vmatpush.msra.mxu1 %v3581_v22  ;;  %v3606_v22 = vld [vmem:[%s7123_s5 + $0x260] sm:$0xff] }
 0x362   :  { %v1889_v12 = vmax.f32 %v1597_v48, %v1820_v16  ;;  %1765 = vmatmul.f32.gmra.mxu0 %v5791_v46  ;;  %3525 = vmatmul.msk.f32.gmra.mxu1 %vm1372_vm1, %v5793_v4  ;;  %v3578_v46 = vld [vmem:[%s7123_s5 + $0x180] sm:$0xff]  ;;  %v3579_v4 = vld [vmem:[%s7123_s5 + $0x188] sm:$0xff]  ;;  %v1612_v16 = vadd.f32 %v1611_v56, %v1510_v27 }
 0x363   :  { %2398 = vmatpush.msra.mxu0 %v3578_v46  ;;  %2445 = vmatpush.msra.mxu1 %v3579_v4 }
 0x364   :  { %v6043_v8 = vmax.f32 %v1888_v57, %v1889_v12 }
 0x365   :  { %2399 = vmatpush.msra.mxu0 %v3576_v45  ;;  %2446 = vmatpush.msra.mxu1 %v3577_v20  ;;  %v3605_v45 = vld [vmem:[%s7123_s5 + $0x258] sm:$0xff] }
 0x366   :  { %3555 = vmatmul.msk.f32.gmra.mxu2 %vm1969_vm3, %v6043_v8  ;;  %3566 = vmatmul.msk.f32.gmra.mxu3 %vm1969_vm3, %v6043_v8 }
 0x367   :  { %v1721_v29 = vpop.f32.mrf.mxu0  ;;  %v1822_v24 = vpop.f32.mrf.mxu1  ;;  %2400 = vmatpush.msra.mxu0 %v3574_v43  ;;  %2447 = vmatpush.msra.mxu1 %v3575_v52 }
 0x36a   :  { %1768 = vmatmul.f32.gmra.mxu0 %v5815_v10  ;;  %3526 = vmatmul.msk.f32.gmra.mxu1 %vm1372_vm1, %v5817_v55  ;;  %v1823_v10 = vadd.f32 %v1822_v24, %v1721_v29  ;;  %v1600_v55 = vadd.f32 %v5955_v47, %v5953_v11  ;;  %v3614_v11 = vld [vmem:[%s7123_s5 + $0x2a0] sm:$0xff]  ;;  %v3615_v47 = vld [vmem:[%s7123_s5 + $0x2a8] sm:$0xff]  ;;  %v3604_v24 = vld [vmem:[%s7123_s5 + $0x250] sm:$0xff] }
 0x36b   :  { %2165 = vmatpush.msra.mxu2 %v3614_v11  ;;  %2212 = vmatpush.msrb.mxu3 %v3615_v47 }
 0x36c   :  { %v1890_v50 = vmax.f32 %v1600_v55, %v1823_v10 }
 0x36d   :  { %2166 = vmatpush.msra.mxu2 %v3612_v62  ;;  %2213 = vmatpush.msrb.mxu3 %v3613_v35 }
 0x36f   :  { %v1724_v38 = vpop.f32.mrf.mxu0  ;;  %v1825_v31 = vpop.f32.mrf.mxu1  ;;  %2167 = vmatpush.msra.mxu2 %v3610_v60  ;;  %2214 = vmatpush.msrb.mxu3 %v3611_v44  ;;  %v3596_v44 = vld [vmem:[%s7123_s5 + $0x210] sm:$0xff] }
 0x370   :  { %v1826_v53 = vadd.f32 %v1825_v31, %v1724_v38 }
 0x371   :  { %2168 = vmatpush.msra.mxu2 %v3608_v33  ;;  %2215 = vmatpush.msrb.mxu3 %v3609_v7 }
 0x372   :  { %v1891_v37 = vmax.f32 %v1603_v49, %v1826_v53  ;;  %1771 = vmatmul.f32.gmra.mxu0 %v5841_v63  ;;  %3527 = vmatmul.msk.f32.gmra.mxu1 %vm1372_vm1, %v5843_v36  ;;  %v1513_v36 = vpop.f32.mrf.mxu2  ;;  %v3602_v49 = vld [vmem:[%s7123_s5 + $0x240] sm:$0xff]  ;;  %v3603_v53 = vld [vmem:[%s7123_s5 + $0x248] sm:$0xff] }
 0x373   :  { %v1615_v23 = vadd.f32 %v1614_v21, %v1513_v36  ;;  %2169 = vmatpush.msra.mxu2 %v3606_v22  ;;  %v1942_v22 = vld [vmem:[%s7123_s5 + $0x90] sm:$0xff] }
 0x374   :  { %v6085_v2 = vmax.f32 %v1890_v50, %v1891_v37 }
 0x375   :  { %2170 = vmatpush.msra.mxu2 %v3604_v24  ;;  %v1940_v24 = vld [vmem:[%s7123_s5 + $0x80] sm:$0xff] }
 0x376   :  { %3556 = vmatmul.msk.f32.gmra.mxu2 %vm1969_vm3, %v6085_v2  ;;  %3567 = vmatmul.msk.f32.gmra.mxu3 %vm1969_vm3, %v6085_v2 }
 0x377   :  { %v1727_v63 = vpop.f32.mrf.mxu0  ;;  %v1828_v15 = vpop.f32.mrf.mxu1  ;;  %2171 = vmatpush.msra.mxu2 %v3602_v49 }
 0x378   :  { %v1829_v19 = vadd.f32 %v1828_v15, %v1727_v63  ;;  %v3600_v63 = vld [vmem:[%s7123_s5 + $0x230] sm:$0xff]  ;;  %v3601_v15 = vld [vmem:[%s7123_s5 + $0x238] sm:$0xff] }
 0x379   :  { %2172 = vmatpush.msra.mxu2 %v3600_v63  ;;  %v1937_v63 = vld [vmem:[%s7123_s5 + $0x68] sm:$0xff] }
 0x37a   :  { %1774 = vmatmul.f32.gmra.mxu0 %v5865_v14  ;;  %3528 = vmatmul.msk.f32.gmra.mxu1 %vm1372_vm1, %v5867_v42  ;;  %v1609_v14 = vadd.f32 %v1608_v18, %v1507_v51  ;;  %v1516_v41 = vpop.f32.mrf.mxu2  ;;  %v1617_v42 = vpop.f32.mrf.mxu3  ;;  %v1892_v58 = vmax.f32 %v1606_v39, %v1829_v19  ;;  %v3607_v51 = vld [vmem:[%s7123_s5 + $0x268] sm:$0xff] }
 0x37b   :  { %2216 = vmatpush.msrb.mxu3 %v3607_v51  ;;  %v1618_v13 = vadd.f32 %v1617_v42, %v1516_v41  ;;  %v3598_v42 = vld [vmem:[%s7123_s5 + $0x220] sm:$0xff]  ;;  %v1943_v51 = vld [vmem:[%s7123_s5 + $0x98] sm:$0xff] }
 0x37c   :  { %2173 = vmatpush.msra.mxu2 %v3598_v42  ;;  %v1934_v42 = vld [vmem:[%s7123_s5 + $0x50] sm:$0xff] }
 0x37d   :  { %2217 = vmatpush.msrb.mxu3 %v3605_v45  ;;  %v1941_v45 = vld [vmem:[%s7123_s5 + $0x88] sm:$0xff] }
 0x37e   :  { %2174 = vmatpush.msra.mxu2 %v3596_v44 }
 0x37f   :  { %v1730_v40 = vpop.f32.mrf.mxu0  ;;  %v1831_v30 = vpop.f32.mrf.mxu1  ;;  %2218 = vmatpush.msrb.mxu3 %v3603_v53  ;;  %v1938_v53 = vld [vmem:[%s7123_s5 + $0x70] sm:$0xff] }
 0x380   :  { %v1832_v25 = vadd.f32 %v1831_v30, %v1730_v40 }
 0x381   :  { %2219 = vmatpush.msrb.mxu3 %v3601_v15 }
 0x382   :  { %v1893_v3 = vmax.f32 %v1609_v14, %v1832_v25  ;;  %1777 = vmatmul.f32.gmra.mxu0 %v5901_v61  ;;  %3529 = vmatmul.msk.f32.gmra.mxu1 %vm1372_vm1, %v5903_v9  ;;  %v1519_v59 = vpop.f32.mrf.mxu2  ;;  %v1620_v1 = vpop.f32.mrf.mxu3 }
 0x383   :  { %v1621_v32 = vadd.f32 %v1620_v1, %v1519_v59  ;;  %v1944_v59 = vld [vmem:[%s7123_s5 + $0xa0] sm:$0xf]  ;;  %v1945_v1 = vld [vmem:[%s7123_s5 + $0xa8] sm:$0xf] }
 0x384   :  { %v6111_v5 = vmax.f32 %v1892_v58, %v1893_v3  ;;  %v3599_v58 = vld [vmem:[%s7123_s5 + $0x228] sm:$0xff]  ;;  %3662 = vmatpush.msk.msrb.mxu2 %vm2000_vm2, %v1944_v59 }
 0x385   :  { %2220 = vmatpush.msrb.mxu3 %v3599_v58  ;;  %v1935_v58 = vld [vmem:[%s7123_s5 + $0x58] sm:$0xff] }
 0x386   :  { %3557 = vmatmul.msk.f32.gmra.mxu2 %vm1969_vm3, %v6111_v5  ;;  %3568 = vmatmul.msk.f32.gmra.mxu3 %vm1969_vm3, %v6111_v5 }
 0x387   :  { %v1733_v61 = vpop.f32.mrf.mxu0  ;;  %v1834_v9 = vpop.f32.mrf.mxu1  ;;  %2291 = vmatpush.msrb.mxu2 %v1942_v22 }
 0x388   :  { %v1835_v34 = vadd.f32 %v1834_v9, %v1733_v61  ;;  %v3597_v61 = vld [vmem:[%s7123_s5 + $0x218] sm:$0xff] }
 0x389   :  { %2221 = vmatpush.msrb.mxu3 %v3597_v61  ;;  %2292 = vmatpush.msrb.mxu2 %v1940_v24 }
 0x38a   :  { %3685 = vmatmul.msk.f32.vlgmr.msra.gmra.mxu0 %vm1969_vm3, %v5973_v0  ;;  %3696 = vmatmul.msk.f32.vlgmr.msra.gmra.mxu1 %vm1969_vm3, %v5973_v0  ;;  %v1894_v57 = vmax.f32 %v1612_v16, %v1835_v34  ;;  %v1522_v18 = vpop.f32.mrf.mxu2  ;;  %v1623_v46 = vpop.f32.mrf.mxu3 }
 0x38b   :  { %v1624_v35 = vadd.f32 %v1623_v46, %v1522_v18  ;;  %3673 = vmatpush.msk.msra.mxu3 %vm2000_vm2, %v1945_v1  ;;  %2293 = vmatpush.msrb.mxu2 %v1938_v53  ;;  %v1928_v1 = vld [vmem:[%s7123_s5 + $0x20] sm:$0xff] }
 0x38d   :  { %2338 = vmatpush.msra.mxu3 %v1943_v51 }
 0x38f   :  { %v1736_v6 = vpop.f32.mrf.mxu0  ;;  %v1837_v48 = vpop.f32.mrf.mxu1  ;;  %2339 = vmatpush.msra.mxu3 %v1941_v45 }
 0x390   :  { %v1838_v26 = vadd.f32 %v1837_v48, %v1736_v6 }
 0x392   :  { %v1895_v12 = vmax.f32 %v1615_v23, %v1838_v26  ;;  %3686 = vmatmul.msk.f32.gmra.mxu0 %vm1969_vm3, %v6043_v8  ;;  %3697 = vmatmul.msk.f32.gmra.mxu1 %vm1969_vm3, %v6043_v8  ;;  %v1525_v27 = vpop.f32.mrf.mxu2  ;;  %v1626_v56 = vpop.f32.mrf.mxu3 }
 0x393   :  { %v1627_v19 = vadd.f32 %v1626_v56, %v1525_v27 }
 0x394   :  { %v6137_v54 = vmax.f32 %v1894_v57, %v1895_v12 }
 0x396   :  { %3558 = vmatmul.msk.f32.gmra.mxu2 %vm1969_vm3, %v6137_v54  ;;  %3569 = vmatmul.msk.f32.gmra.mxu3 %vm1969_vm3, %v6137_v54 }
 0x397   :  { %v1739_v4 = vpop.f32.mrf.mxu0  ;;  %v1840_v29 = vpop.f32.mrf.mxu1 }
 0x398   :  { %v1841_v20 = vadd.f32 %v1840_v29, %v1739_v4 }
 0x39a   :  { %3687 = vmatmul.msk.f32.gmra.mxu0 %vm1969_vm3, %v6085_v2  ;;  %3698 = vmatmul.msk.f32.gmra.mxu1 %vm1969_vm3, %v6085_v2  ;;  %v1896_v38 = vmax.f32 %v1618_v13, %v1841_v20  ;;  %v1528_v11 = vpop.f32.mrf.mxu2  ;;  %v1629_v47 = vpop.f32.mrf.mxu3 }
 0x39b   :  { %v1630_v48 = vadd.f32 %v1629_v47, %v1528_v11  ;;  %v1936_v47 = vld [vmem:[%s7123_s5 + $0x60] sm:$0xff] }
 0x39c   :  { %2294 = vmatpush.msrb.mxu2 %v1936_v47 }
 0x39e   :  { %2295 = vmatpush.msrb.mxu2 %v1934_v42  ;;  %v3651_v42 = vld [vmem:[%s7123_s5 + $0x318] sm:$0xff] }
 0x39f   :  { %v1742_v43 = vpop.f32.mrf.mxu0  ;;  %v1843_v52 = vpop.f32.mrf.mxu1 }
 0x3a0   :  { %v1844_v10 = vadd.f32 %v1843_v52, %v1742_v43 }
 0x3a2   :  { %v1897_v31 = vmax.f32 %v1621_v32, %v1844_v10  ;;  %3688 = vmatmul.msk.f32.gmra.mxu0 %vm1969_vm3, %v6111_v5  ;;  %3699 = vmatmul.msk.f32.gmra.mxu1 %vm1969_vm3, %v6111_v5  ;;  %v1531_v14 = vpop.f32.mrf.mxu2  ;;  %v1632_v25 = vpop.f32.mrf.mxu3 }
 0x3a3   :  { %v1633_v16 = vadd.f32 %v1632_v25, %v1531_v14 }
 0x3a4   :  { %v6163_v55 = vmax.f32 %v1896_v38, %v1897_v31 }
 0x3a6   :  { %3559 = vmatmul.msk.f32.gmra.mxu2 %vm1969_vm3, %v6163_v55  ;;  %3570 = vmatmul.msk.f32.gmra.mxu3 %vm1969_vm3, %v6163_v55 }
 0x3a7   :  { %v1745_v50 = vpop.f32.mrf.mxu0  ;;  %v1846_v37 = vpop.f32.mrf.mxu1 }
 0x3a8   :  { %v1847_v36 = vadd.f32 %v1846_v37, %v1745_v50  ;;  %v1939_v50 = vld [vmem:[%s7123_s5 + $0x78] sm:$0xff] }
 0x3a9   :  { %2340 = vmatpush.msra.mxu3 %v1939_v50 }
 0x3aa   :  { %3689 = vmatmul.msk.f32.gmra.mxu0 %vm1969_vm3, %v6137_v54  ;;  %3700 = vmatmul.msk.f32.gmra.mxu1 %vm1969_vm3, %v6137_v54  ;;  %v1898_v30 = vmax.f32 %v1624_v35, %v1847_v36  ;;  %v1534_v9 = vpop.f32.mrf.mxu2  ;;  %v1635_v33 = vpop.f32.mrf.mxu3 }
 0x3ab   :  { %v1636_v13 = vadd.f32 %v1635_v33, %v1534_v9  ;;  %2341 = vmatpush.msra.mxu3 %v1937_v63  ;;  %v1930_v9 = vld [vmem:[%s7123_s5 + $0x30] sm:$0xff]  ;;  %v1931_v33 = vld [vmem:[%s7123_s5 + $0x38] sm:$0xff] }
 0x3ad   :  { %2342 = vmatpush.msra.mxu3 %v1935_v58 }
 0x3af   :  { %v1748_v21 = vpop.f32.mrf.mxu0  ;;  %v1849_v62 = vpop.f32.mrf.mxu1 }
 0x3b0   :  { %v1850_v40 = vadd.f32 %v1849_v62, %v1748_v21 }
 0x3b2   :  { %v1899_v39 = vmax.f32 %v1627_v19, %v1850_v40  ;;  %3690 = vmatmul.msk.f32.gmra.mxu0 %vm1969_vm3, %v6163_v55  ;;  %3701 = vmatmul.msk.f32.gmra.mxu1 %vm1969_vm3, %v6163_v55  ;;  %v1537_v4 = vpop.f32.mrf.mxu2  ;;  %v1638_v29 = vpop.f32.mrf.mxu3 }
 0x3b3   :  { %v1639_v32 = vadd.f32 %v1638_v29, %v1537_v4 }
 0x3b4   :  { %v6189_v41 = vmax.f32 %v1898_v30, %v1899_v39 }
 0x3b6   :  { %3560 = vmatmul.msk.f32.gmra.mxu2 %vm1969_vm3, %v6189_v41  ;;  %3571 = vmatmul.msk.f32.gmra.mxu3 %vm1969_vm3, %v6189_v41 }
 0x3b7   :  { %v1751_v3 = vpop.f32.mrf.mxu0  ;;  %v1852_v60 = vpop.f32.mrf.mxu1 }
 0x3b8   :  { %v1853_v7 = vadd.f32 %v1852_v60, %v1751_v3  ;;  %v1932_v3 = vld [vmem:[%s7123_s5 + $0x40] sm:$0xff]  ;;  %v1933_v60 = vld [vmem:[%s7123_s5 + $0x48] sm:$0xff] }
 0x3b9   :  { %2296 = vmatpush.msrb.mxu2 %v1932_v3  ;;  %2343 = vmatpush.msra.mxu3 %v1933_v60  ;;  %v3648_v3 = vld [vmem:[%s7123_s5 + $0x300] sm:$0xff]  ;;  %v3649_v60 = vld [vmem:[%s7123_s5 + $0x308] sm:$0xff] }
 0x3ba   :  { %3691 = vmatmul.msk.f32.gmra.mxu0 %vm1969_vm3, %v6189_v41  ;;  %3702 = vmatmul.msk.f32.gmra.mxu1 %vm1969_vm3, %v6189_v41  ;;  %v1900_v26 = vmax.f32 %v1630_v48, %v1853_v7  ;;  %v1540_v38 = vpop.f32.mrf.mxu2  ;;  %v1641_v31 = vpop.f32.mrf.mxu3 }
 0x3bb   :  { %v1642_v19 = vadd.f32 %v1641_v31, %v1540_v38  ;;  %2297 = vmatpush.msrb.mxu2 %v1930_v9  ;;  %2344 = vmatpush.msra.mxu3 %v1931_v33  ;;  %v3647_v9 = vld [vmem:[%s7123_s5 + $0x2f8] sm:$0xff] }
 0x3bd   :  { %2298 = vmatpush.msrb.mxu2 %v1928_v1  ;;  %v3643_v1 = vld [vmem:[%s7123_s5 + $0x2d8] sm:$0xff] }
 0x3bf   :  { %v1754_v34 = vpop.f32.mrf.mxu0  ;;  %v1855_v6 = vpop.f32.mrf.mxu1 }
 0x3c0   :  { %v1856_v23 = vadd.f32 %v1855_v6, %v1754_v34  ;;  %v1929_v34 = vld [vmem:[%s7123_s5 + $0x28] sm:$0xff] }
 0x3c1   :  { %2345 = vmatpush.msra.mxu3 %v1929_v34 }
 0x3c2   :  { %v1901_v57 = vmax.f32 %v1633_v16, %v1856_v23  ;;  %v1543_v15 = vpop.f32.mrf.mxu2  ;;  %v1644_v36 = vpop.f32.mrf.mxu3  ;;  %v1926_v16 = vld [vmem:[%s7123_s5 + $0x10] sm:$0xff]  ;;  %v1927_v23 = vld [vmem:[%s7123_s5 + $0x18] sm:$0xff] }
 0x3c3   :  { %v1645_v40 = vadd.f32 %v1644_v36, %v1543_v15  ;;  %2299 = vmatpush.msrb.mxu2 %v1926_v16  ;;  %2346 = vmatpush.msra.mxu3 %v1927_v23  ;;  %v3654_v36 = vld [vmem:[%s7123_s5 + $0x330] sm:$0xff]  ;;  %v3640_v23 = vld [vmem:[%s7123_s5 + $0x2c0] sm:$0xff] }
 0x3c4   :  { %v6219_v12 = vmax.f32 %v1900_v26, %v1901_v57  ;;  %v1924_v26 = vld [vmem:[%s7123_s5] sm:$0xff]  ;;  %v1925_v57 = vld [vmem:[%s7123_s5 + $0x8] sm:$0xff] }
 0x3c5   :  { %2300 = vmatpush.msrb.mxu2 %v1924_v26  ;;  %2347 = vmatpush.msra.mxu3 %v1925_v57  ;;  %v3641_v26 = vld [vmem:[%s7123_s5 + $0x2c8] sm:$0xff] }
 0x3c6   :  { %3561 = vmatmul.msk.f32.gmra.mxu2 %vm1969_vm3, %v6219_v12  ;;  %3572 = vmatmul.msk.f32.gmra.mxu3 %vm1969_vm3, %v6219_v12 }
 0x3c7   :  { %3692 = vmatmul.msk.f32.gmra.mxu0 %vm1969_vm3, %v6219_v12  ;;  %3703 = vmatmul.msk.f32.gmra.mxu1 %vm1969_vm3, %v6219_v12  ;;  %v1757_v18 = vpop.f32.mrf.mxu0  ;;  %v1858_v46 = vpop.f32.mrf.mxu1 }
 0x3c8   :  { %v1859_v20 = vadd.f32 %v1858_v46, %v1757_v18  ;;  %v3660_v18 = vld [vmem:[%s7123_s5 + $0x360] sm:$0xf]  ;;  %v3661_v46 = vld [vmem:[%s7123_s5 + $0x368] sm:$0xf] }
 0x3ca   :  { %v1902_v56 = vmax.f32 %v1636_v13, %v1859_v20  ;;  %v6289_v44 = vpop.f32.mrf.mxu2  ;;  %v1647_v61 = vpop.f32.mrf.mxu3  ;;  %v3658_v20 = vld [vmem:[%s7123_s5 + $0x350] sm:$0xff] }
 0x3cb   :  { %v1648_v50 = vadd.f32 %v1647_v61, %v6289_v44  ;;  %v3646_v61 = vld [vmem:[%s7123_s5 + $0x2f0] sm:$0xff] }
 0x3cf   :  { %v1760_v43 = vpop.f32.mrf.mxu0  ;;  %v1861_v52 = vpop.f32.mrf.mxu1 }
 0x3d0   :  { %v1862_v27 = vadd.f32 %v1861_v52, %v1760_v43  ;;  %v3659_v43 = vld [vmem:[%s7123_s5 + $0x358] sm:$0xff] }
 0x3d2   :  { %v1903_v10 = vmax.f32 %v1639_v32, %v1862_v27  ;;  %v1549_v7 = vpop.f32.mrf.mxu2  ;;  %v1650_v59 = vpop.f32.mrf.mxu3 }
 0x3d3   :  { %v1651_v31 = vadd.f32 %v1650_v59, %v1549_v7  ;;  %v3644_v7 = vld [vmem:[%s7123_s5 + $0x2e0] sm:$0xff]  ;;  %v3645_v59 = vld [vmem:[%s7123_s5 + $0x2e8] sm:$0xff] }
 0x3d4   :  { %v6241_v49 = vmax.f32 %v1902_v56, %v1903_v10  ;;  %v3656_v56 = vld [vmem:[%s7123_s5 + $0x340] sm:$0xff]  ;;  %v3657_v10 = vld [vmem:[%s7123_s5 + $0x348] sm:$0xff] }
 0x3d6   :  { %3562 = vmatmul.msk.f32.gmra.mxu2 %vm1969_vm3, %v6241_v49  ;;  %3573 = vmatmul.msk.f32.gmra.mxu3 %vm1969_vm3, %v6241_v49 }
 0x3d7   :  { %3693 = vmatmul.msk.f32.gmra.mxu0 %vm1969_vm3, %v6241_v49  ;;  %3704 = vmatmul.msk.f32.gmra.mxu1 %vm1969_vm3, %v6241_v49  ;;  %v1763_v37 = vpop.f32.mrf.mxu0  ;;  %v1864_v11 = vpop.f32.mrf.mxu1 }
 0x3d8   :  { %v1865_v21 = vadd.f32 %v1864_v11, %v1763_v37 }
 0x3da   :  { %v1904_v39 = vmax.f32 %v1642_v19, %v1865_v21  ;;  %v6311_v6 = vpop.f32.mrf.mxu2  ;;  %v6313_v48 = vpop.f32.mrf.mxu3  ;;  %v3655_v21 = vld [vmem:[%s7123_s5 + $0x338] sm:$0xff]  ;;  %v3652_v19 = vld [vmem:[%s7123_s5 + $0x320] sm:$0xff] }
 0x3de   :  { %3619 = vmatmul.msk.f32.vlgmr.msra.gmra.mxu2 %vm1969_vm3, %v6043_v8  ;;  %3630 = vmatmul.msk.f32.vlgmr.msrb.gmra.mxu3 %vm1969_vm3, %v6043_v8 }
 0x3df   :  { %v1766_v62 = vpop.f32.mrf.mxu0  ;;  %v1867_v35 = vpop.f32.mrf.mxu1  ;;  %3706 = vmatpush.msk.msra.mxu2 %vm2000_vm2, %v3660_v18  ;;  %3717 = vmatpush.msk.msrb.mxu3 %vm2000_vm2, %v3661_v46 }
 0x3e0   :  { %v1868_v30 = vadd.f32 %v1867_v35, %v1766_v62 }
 0x3e1   :  { %2520 = vmatpush.msra.mxu2 %v3658_v20  ;;  %2567 = vmatpush.msrb.mxu3 %v3659_v43 }
 0x3e2   :  { %v1905_v14 = vmax.f32 %v1645_v40, %v1868_v30  ;;  %v6335_v22 = vpop.f32.mrf.mxu2  ;;  %v6337_v51 = vpop.f32.mrf.mxu3  ;;  %v3653_v40 = vld [vmem:[%s7123_s5 + $0x328] sm:$0xff] }
 0x3e3   :  { %2521 = vmatpush.msra.mxu2 %v3656_v56  ;;  %2568 = vmatpush.msrb.mxu3 %v3657_v10 }
 0x3e4   :  { %v6267_v25 = vmax.f32 %v1904_v39, %v1905_v14  ;;  %v3650_v14 = vld [vmem:[%s7123_s5 + $0x310] sm:$0xff] }
 0x3e5   :  { %2522 = vmatpush.msra.mxu2 %v3654_v36  ;;  %2569 = vmatpush.msrb.mxu3 %v3655_v21  ;;  %v2786_v36 = vld [vmem:[%s7124_s8 + $0x70] sm:$0xff]  ;;  %v2647_v21 = vld [vmem:[%s7125_s7 + $0x98] sm:$0xff] }
 0x3e6   :  { %3620 = vmatmul.msk.f32.gmra.mxu2 %vm1969_vm3, %v6085_v2  ;;  %3631 = vmatmul.msk.f32.gmra.mxu3 %vm1969_vm3, %v6085_v2 }
 0x3e7   :  { %3694 = vmatmul.msk.f32.gmra.mxu0 %vm1969_vm3, %v6267_v25  ;;  %3705 = vmatmul.msk.f32.gmra.mxu1 %vm1969_vm3, %v6267_v25  ;;  %v1769_v4 = vpop.f32.mrf.mxu0  ;;  %v1870_v29 = vpop.f32.mrf.mxu1 }
 0x3e8   :  { %v1871_v53 = vadd.f32 %v1870_v29, %v1769_v4  ;;  %2523 = vmatpush.msra.mxu2 %v3652_v19  ;;  %2570 = vmatpush.msrb.mxu3 %v3653_v40  ;;  %v2785_v19 = vld [vmem:[%s7124_s8 + $0x68] sm:$0xff] }
 0x3e9   :  { %2737 = vmatpush.msrb.mxu1 %v2647_v21 }
 0x3ea   :  { %v6351_v24 = vpop.f32.mrf.mxu2  ;;  %v6353_v45 = vpop.f32.mrf.mxu3  ;;  %v1906_v63 = vmax.f32 %v1648_v50, %v1871_v53  ;;  %2524 = vmatpush.msra.mxu2 %v3650_v14  ;;  %2571 = vmatpush.msrb.mxu3 %v3651_v42  ;;  %v2642_v42 = vld [vmem:[%s7125_s7 + $0x70] sm:$0xff] }
 0x3ec   :  { %2525 = vmatpush.msra.mxu2 %v3648_v3  ;;  %2572 = vmatpush.msrb.mxu3 %v3649_v60  ;;  %v2784_v3 = vld [vmem:[%s7124_s8 + $0x60] sm:$0xff] }
 0x3ee   :  { %3621 = vmatmul.msk.f32.gmra.mxu2 %vm1969_vm3, %v6111_v5  ;;  %3632 = vmatmul.msk.f32.gmra.mxu3 %vm1969_vm3, %v6111_v5 }
 0x3ef   :  { %v1772_v32 = vpop.f32.mrf.mxu0  ;;  %v1873_v27 = vpop.f32.mrf.mxu1  ;;  %2526 = vmatpush.msra.mxu2 %v3646_v61  ;;  %2573 = vmatpush.msrb.mxu3 %v3647_v9  ;;  %v2783_v9 = vld [vmem:[%s7124_s8 + $0x58] sm:$0xff] }
 0x3f0   :  { %v1874_v38 = vadd.f32 %v1873_v27, %v1772_v32 }
 0x3f1   :  { %2527 = vmatpush.msra.mxu2 %v3644_v7  ;;  %2574 = vmatpush.msrb.mxu3 %v3645_v59  ;;  %v2790_v7 = vld [vmem:[%s7124_s8 + $0x90] sm:$0xff] }
 0x3f2   :  { %v6365_v52 = vpop.f32.mrf.mxu2  ;;  %v6367_v13 = vpop.f32.mrf.mxu3  ;;  %v1907_v37 = vmax.f32 %v1651_v31, %v1874_v38  ;;  %v2782_v59 = vld [vmem:[%s7124_s8 + $0x50] sm:$0xff] }
 0x3f3   :  { %2575 = vmatpush.msrb.mxu3 %v3643_v1 }
 0x3f4   :  { %v6384_v15 = vmax.f32 %v1906_v63, %v1907_v37  ;;  %v2791_v37 = vld [vmem:[%s7124_s8 + $0x98] sm:$0xff] }
 0x3f5   :  { %2576 = vmatpush.msrb.mxu3 %v3641_v26  ;;  %v2639_v26 = vld [vmem:[%s7125_s7 + $0x58] sm:$0xff] }
 0x3f6   :  { %3622 = vmatmul.msk.f32.gmra.mxu2 %vm1969_vm3, %v6137_v54  ;;  %3633 = vmatmul.msk.f32.gmra.mxu3 %vm1969_vm3, %v6137_v54 }
 0x3f7   :  { %v1775_v1 = vpop.f32.mrf.mxu0 }
 0x3fa   :  { %v6380_v11 = vpop.f32.mrf.mxu2  ;;  %v6382_v47 = vpop.f32.mrf.mxu3 }
 0x3fe   :  { %3623 = vmatmul.msk.f32.gmra.mxu2 %vm1969_vm3, %v6163_v55  ;;  %3634 = vmatmul.msk.f32.gmra.mxu3 %vm1969_vm3, %v6163_v55 }
 0x402   :  { %v6396_v62 = vpop.f32.mrf.mxu2  ;;  %v6398_v35 = vpop.f32.mrf.mxu3 }
 0x406   :  { %3624 = vmatmul.msk.f32.gmra.mxu2 %vm1969_vm3, %v6189_v41  ;;  %3635 = vmatmul.msk.f32.gmra.mxu3 %vm1969_vm3, %v6189_v41 }
 0x40a   :  { %v6410_v30 = vpop.f32.mrf.mxu2  ;;  %v6412_v39 = vpop.f32.mrf.mxu3 }
 0x40e   :  { %3625 = vmatmul.msk.f32.gmra.mxu2 %vm1969_vm3, %v6219_v12  ;;  %3636 = vmatmul.msk.f32.gmra.mxu3 %vm1969_vm3, %v6219_v12 }
 0x416   :  { %3626 = vmatmul.msk.f32.gmra.mxu2 %vm1969_vm3, %v6241_v49  ;;  %3637 = vmatmul.msk.f32.gmra.mxu3 %vm1969_vm3, %v6241_v49 }
 0x419   :  { %v6426_v58 = vpop.f32.mrf.mxu3 }
 0x41e   :  { %3627 = vmatmul.msk.f32.gmra.mxu2 %vm1969_vm3, %v6267_v25  ;;  %3638 = vmatmul.msk.f32.gmra.mxu3 %vm1969_vm3, %v6267_v25 }
 0x426   :  { %3628 = vmatmul.msk.f32.gmra.mxu2 %vm1969_vm3, %v6384_v15  ;;  %3639 = vmatmul.msk.f32.gmra.mxu3 %vm1969_vm3, %v6384_v15 }
 0x429   :  { %v6440_v44 = vpop.f32.mrf.mxu3 }
 0x42e   :  { %3663 = vmatmul.msk.f32.vlgmr.msrb.gmra.mxu2 %vm1969_vm3, %v5935_v17  ;;  %3674 = vmatmul.msk.f32.vlgmr.msra.gmra.mxu3 %vm1969_vm3, %v5935_v17  ;;  %v6424_v17 = vpop.f32.mrf.mxu2 }
 0x42f   :  { %2851 = vmatpush.msra.mxu3 %v2791_v37 }
 0x431   :  { %2852 = vmatpush.msra.mxu3 %v2790_v7  ;;  %v2779_v7 = vld [vmem:[%s7124_s8 + $0x38] sm:$0xff] }
 0x436   :  { %3664 = vmatmul.msk.f32.gmra.mxu2 %vm1969_vm3, %v5951_v28  ;;  %3675 = vmatmul.msk.f32.gmra.mxu3 %vm1969_vm3, %v5951_v28  ;;  %v6438_v28 = vpop.f32.mrf.mxu2 }
 0x439   :  { %v6454_v33 = vpop.f32.mrf.mxu3 }
 0x43e   :  { %3665 = vmatmul.msk.f32.gmra.mxu2 %vm1969_vm3, %v5973_v0  ;;  %3676 = vmatmul.msk.f32.gmra.mxu3 %vm1969_vm3, %v5973_v0  ;;  %v6452_v0 = vpop.f32.mrf.mxu2 }
 0x446   :  { %3666 = vmatmul.msk.f32.gmra.mxu2 %vm1969_vm3, %v6043_v8  ;;  %3677 = vmatmul.msk.f32.gmra.mxu3 %vm1969_vm3, %v6043_v8  ;;  %v3642_v8 = vld [vmem:[%s7123_s5 + $0x2d0] sm:$0xff] }
 0x447   :  { %2528 = vmatpush.msra.mxu2 %v3642_v8  ;;  %v2646_v8 = vld [vmem:[%s7125_s7 + $0x90] sm:$0xff] }
 0x448   :  { %2738 = vmatpush.msrb.mxu1 %v2646_v8 }
 0x449   :  { %v6472_v34 = vpop.f32.mrf.mxu2  ;;  %v6474_v16 = vpop.f32.mrf.mxu3  ;;  %2529 = vmatpush.msra.mxu2 %v3640_v23 }
 0x44a   :  { %7423 = vst [vmem:[#allocation4_spill] sm:$0xff] %v6472_v34  ;;  %v1876_v23 = vpop.f32.mrf.mxu1 }
 0x44b   :  { %7424 = vst [vmem:[#allocation89_spill] sm:$0xff] %v6474_v16  ;;  %v1877_v8 = vadd.f32 %v1876_v23, %v1775_v1 }
 0x44e   :  { %3667 = vmatmul.msk.f32.gmra.mxu2 %vm1969_vm3, %v6085_v2  ;;  %3678 = vmatmul.msk.f32.gmra.mxu3 %vm1969_vm3, %v6085_v2 }
 0x452   :  { %v1879_v21 = vpop.f32.mrf.mxu1 }
 0x456   :  { %3668 = vmatmul.msk.f32.gmra.mxu2 %vm1969_vm3, %v6111_v5  ;;  %3679 = vmatmul.msk.f32.gmra.mxu3 %vm1969_vm3, %v6111_v5 }
 0x459   :  { %v6486_v57 = vpop.f32.mrf.mxu2  ;;  %v6488_v18 = vpop.f32.mrf.mxu3 }
 0x45a   :  { %7425 = vst [vmem:[#allocation11_spill] sm:$0xff] %v6486_v57 }
 0x45b   :  { %7426 = vst [vmem:[#allocation5_spill] sm:$0xff] %v6488_v18 }
 0x45e   :  { %3669 = vmatmul.msk.f32.gmra.mxu2 %vm1969_vm3, %v6137_v54  ;;  %3680 = vmatmul.msk.f32.gmra.mxu3 %vm1969_vm3, %v6137_v54 }
 0x461   :  { %v6494_v46 = vpop.f32.mrf.mxu2  ;;  %v6496_v4 = vpop.f32.mrf.mxu3 }
 0x466   :  { %3670 = vmatmul.msk.f32.gmra.mxu2 %vm1969_vm3, %v6163_v55  ;;  %3681 = vmatmul.msk.f32.gmra.mxu3 %vm1969_vm3, %v6163_v55 }
 0x469   :  { %v6502_v29 = vpop.f32.mrf.mxu2  ;;  %v6504_v20 = vpop.f32.mrf.mxu3 }
 0x46e   :  { %3671 = vmatmul.msk.f32.gmra.mxu2 %vm1969_vm3, %v6189_v41  ;;  %3682 = vmatmul.msk.f32.gmra.mxu3 %vm1969_vm3, %v6189_v41 }
 0x471   :  { %v6510_v43 = vpop.f32.mrf.mxu2  ;;  %v6512_v32 = vpop.f32.mrf.mxu3 }
 0x476   :  { %3672 = vmatmul.msk.f32.gmra.mxu2 %vm1969_vm3, %v6219_v12  ;;  %3683 = vmatmul.msk.f32.gmra.mxu3 %vm1969_vm3, %v6219_v12 }
 0x479   :  { %v6518_v27 = vpop.f32.mrf.mxu2  ;;  %v6520_v56 = vpop.f32.mrf.mxu3 }
 0x47e   :  { %3707 = vmatmul.msk.f32.vlgmr.msra.gmra.mxu2 %vm1969_vm3, %v6085_v2  ;;  %3718 = vmatmul.msk.f32.vlgmr.msrb.gmra.mxu3 %vm1969_vm3, %v6085_v2 }
 0x481   :  { %v6526_v10 = vpop.f32.mrf.mxu2  ;;  %v6528_v38 = vpop.f32.mrf.mxu3 }
 0x486   :  { %3708 = vmatmul.msk.f32.gmra.mxu2 %vm1969_vm3, %v6111_v5  ;;  %3719 = vmatmul.msk.f32.gmra.mxu3 %vm1969_vm3, %v6111_v5  ;;  %v2787_v5 = vld [vmem:[%s7124_s8 + $0x78] sm:$0xff] }
 0x487   :  { %2792 = vmatpush.msrb.mxu2 %v2787_v5 }
 0x489   :  { %v6534_v31 = vpop.f32.mrf.mxu2  ;;  %v6536_v53 = vpop.f32.mrf.mxu3  ;;  %2793 = vmatpush.msrb.mxu2 %v2786_v36  ;;  %v2781_v36 = vld [vmem:[%s7124_s8 + $0x48] sm:$0xff] }
 0x48b   :  { %2794 = vmatpush.msrb.mxu2 %v2785_v19 }
 0x48d   :  { %2795 = vmatpush.msrb.mxu2 %v2784_v3 }
 0x48e   :  { %3709 = vmatmul.msk.f32.gmra.mxu2 %vm1969_vm3, %v6137_v54  ;;  %3720 = vmatmul.msk.f32.gmra.mxu3 %vm1969_vm3, %v6137_v54 }
 0x48f   :  { %2796 = vmatpush.msrb.mxu2 %v2783_v9  ;;  %v2637_v9 = vld [vmem:[%s7125_s7 + $0x48] sm:$0xff] }
 0x491   :  { %v6542_v2 = vpop.f32.mrf.mxu2  ;;  %v6544_v50 = vpop.f32.mrf.mxu3  ;;  %2797 = vmatpush.msrb.mxu2 %v2782_v59  ;;  %v1657_v59 = vadd.f32 %v6337_v51, %v6335_v22  ;;  %v2778_v51 = vld [vmem:[%s7124_s8 + $0x30] sm:$0xff] }
 0x493   :  { %2798 = vmatpush.msrb.mxu2 %v2781_v36 }
 0x496   :  { %3710 = vmatmul.msk.f32.gmra.mxu2 %vm1969_vm3, %v6163_v55  ;;  %3721 = vmatmul.msk.f32.gmra.mxu3 %vm1969_vm3, %v6163_v55  ;;  %v2643_v55 = vld [vmem:[%s7125_s7 + $0x78] sm:$0xff] }
 0x497   :  { %2678 = vmatpush.msrb.mxu0 %v2643_v55  ;;  %v1778_v55 = vpop.f32.mrf.mxu0 }
 0x498   :  { %v1880_v3 = vadd.f32 %v1879_v21, %v1778_v55 }
 0x499   :  { %v6556_v54 = vpop.f32.mrf.mxu2  ;;  %v6558_v63 = vpop.f32.mrf.mxu3  ;;  %2679 = vmatpush.msrb.mxu0 %v2642_v42 }
 0x49a   :  { %7427 = vst [vmem:[#allocation91_spill] sm:$0xff] %v6556_v54  ;;  %v1909_v36 = vmax.f32 %v1657_v59, %v1880_v3  ;;  %v2634_v3 = vld [vmem:[%s7125_s7 + $0x30] sm:$0xff]  ;;  %v2788_v59 = vld [vmem:[%s7124_s8 + $0x80] sm:$0xff] }
 0x49b   :  { %7428 = vst [vmem:[#allocation18_spill] sm:$0xff] %v6558_v63 }
 0x49e   :  { %3711 = vmatmul.msk.f32.gmra.mxu2 %vm1969_vm3, %v6189_v41  ;;  %3722 = vmatmul.msk.f32.gmra.mxu3 %vm1969_vm3, %v6189_v41  ;;  %v2641_v41 = vld [vmem:[%s7125_s7 + $0x68] sm:$0xff] }
 0x49f   :  { %2680 = vmatpush.msrb.mxu0 %v2641_v41  ;;  %v2780_v41 = vld [vmem:[%s7124_s8 + $0x40] sm:$0xff] }
 0x4a0   :  { %2799 = vmatpush.msrb.mxu2 %v2780_v41  ;;  %v2776_v41 = vld [vmem:[%s7124_s8 + $0x20] sm:$0xff] }
 0x4a1   :  { %v6576_v40 = vpop.f32.mrf.mxu2  ;;  %v6578_v14 = vpop.f32.mrf.mxu3 }
 0x4a2   :  { %7429 = vst [vmem:[#allocation6_spill] sm:$0xff] %v6576_v40  ;;  %2800 = vmatpush.msrb.mxu2 %v2779_v7 }
 0x4a3   :  { %7430 = vst [vmem:[#allocation92_spill] sm:$0xff] %v6578_v14 }
 0x4a4   :  { %2801 = vmatpush.msrb.mxu2 %v2778_v51 }
 0x4a6   :  { %3712 = vmatmul.msk.f32.gmra.mxu2 %vm1969_vm3, %v6219_v12  ;;  %3723 = vmatmul.msk.f32.gmra.mxu3 %vm1969_vm3, %v6219_v12  ;;  %v2640_v12 = vld [vmem:[%s7125_s7 + $0x60] sm:$0xff] }
 0x4a7   :  { %2681 = vmatpush.msrb.mxu0 %v2640_v12  ;;  %v2636_v12 = vld [vmem:[%s7125_s7 + $0x40] sm:$0xff] }
 0x4a9   :  { %v6593_v60 = vpop.f32.mrf.mxu2  ;;  %v6595_v61 = vpop.f32.mrf.mxu3  ;;  %2682 = vmatpush.msrb.mxu0 %v2639_v26  ;;  %v1654_v26 = vadd.f32 %v6313_v48, %v6311_v6  ;;  %v2645_v6 = vld [vmem:[%s7125_s7 + $0x88] sm:$0xff] }
 0x4aa   :  { %7431 = vst [vmem:[#allocation15_spill] sm:$0xff] %v6593_v60  ;;  %v2777_v48 = vld [vmem:[%s7124_s8 + $0x28] sm:$0xff]  ;;  %2739 = vmatpush.msrb.mxu1 %v2645_v6  ;;  %v2630_v6 = vld [vmem:[%s7125_s7 + $0x10] sm:$0xff] }
 0x4ab   :  { %7432 = vst [vmem:[#allocation121_spill] sm:$0xff] %v6595_v61  ;;  %v1908_v21 = vmax.f32 %v1654_v26, %v1877_v8  ;;  %2802 = vmatpush.msrb.mxu2 %v2777_v48  ;;  %v2632_v8 = vld [vmem:[%s7125_s7 + $0x20] sm:$0xff]  ;;  %v2774_v26 = vld [vmem:[%s7124_s8 + $0x10] sm:$0xff] }
 0x4ad   :  { %v1923_v22 = vmax.f32 %v1908_v21, %v1909_v36  ;;  %2803 = vmatpush.msrb.mxu2 %v2776_v41  ;;  %v2631_v36 = vld [vmem:[%s7125_s7 + $0x18] sm:$0xff]  ;;  %v2644_v21 = vld [vmem:[%s7125_s7 + $0x80] sm:$0xff]  ;;  %v2629_v41 = vld [vmem:[%s7125_s7 + $0x8] sm:$0xff] }
 0x4ae   :  { %3713 = vmatmul.msk.f32.gmra.mxu2 %vm1969_vm3, %v6241_v49  ;;  %3724 = vmatmul.msk.f32.gmra.mxu3 %vm1969_vm3, %v6241_v49  ;;  %v2638_v49 = vld [vmem:[%s7125_s7 + $0x50] sm:$0xff] }
 0x4af   :  { %2683 = vmatpush.msrb.mxu0 %v2638_v49  ;;  %2740 = vmatpush.msrb.mxu1 %v2644_v21  ;;  %v2402_v21 = vpop.f32.mrf.mxu0 }
 0x4b1   :  { %v6619_v5 = vpop.f32.mrf.mxu2  ;;  %v6621_v37 = vpop.f32.mrf.mxu3  ;;  %2684 = vmatpush.msrb.mxu0 %v2637_v9  ;;  %v2633_v9 = vld [vmem:[%s7125_s7 + $0x28] sm:$0xff] }
 0x4b2   :  { %v2303_v60 = vadd.f32 %v6619_v5, %v6351_v24  ;;  %v2350_v18 = vadd.f32 %v6621_v37, %v6353_v45 }
 0x4b3   :  { %2685 = vmatpush.msrb.mxu0 %v2636_v12  ;;  %v2775_v12 = vld [vmem:[%s7124_s8 + $0x18] sm:$0xff] }
 0x4b4   :  { %2804 = vmatpush.msrb.mxu2 %v2775_v12  ;;  %v2628_v12 = vld [vmem:[%s7125_s7] sm:$0xff] }
 0x4b6   :  { %3714 = vmatmul.msk.f32.gmra.mxu2 %vm1969_vm3, %v6267_v25  ;;  %3725 = vmatmul.msk.f32.gmra.mxu3 %vm1969_vm3, %v6267_v25  ;;  %v2789_v25 = vld [vmem:[%s7124_s8 + $0x88] sm:$0xff] }
 0x4b7   :  { %2853 = vmatpush.msra.mxu3 %v2789_v25  ;;  %2805 = vmatpush.msrb.mxu2 %v2774_v26 }
 0x4b9   :  { %v6633_v19 = vpop.f32.mrf.mxu2  ;;  %v6635_v42 = vpop.f32.mrf.mxu3  ;;  %2854 = vmatpush.msra.mxu3 %v2788_v59 }
 0x4ba   :  { %v2306_v37 = vadd.f32 %v6633_v19, %v6365_v52 }
 0x4be   :  { %3715 = vmatmul.msk.f32.gmra.mxu2 %vm1969_vm3, %v6384_v15  ;;  %3726 = vmatmul.msk.f32.gmra.mxu3 %vm1969_vm3, %v6384_v15  ;;  %v2635_v15 = vld [vmem:[%s7125_s7 + $0x38] sm:$0xff] }
 0x4bf   :  { %2686 = vmatpush.msrb.mxu0 %v2635_v15  ;;  %v2773_v15 = vld [vmem:[%s7124_s8 + $0x8] sm:$0xff] }
 0x4c0   :  { %2806 = vmatpush.msrb.mxu2 %v2773_v15  ;;  %v2449_v15 = vpop.f32.mrf.mxu1 }
 0x4c1   :  { %v6660_v49 = vpop.f32.mrf.mxu2  ;;  %v6662_v55 = vpop.f32.mrf.mxu3  ;;  %2687 = vmatpush.msrb.mxu0 %v2634_v3 }
 0x4c2   :  { %v2309_v19 = vadd.f32 %v6660_v49, %v6380_v11 }
 0x4c3   :  { %2688 = vmatpush.msrb.mxu0 %v2633_v9  ;;  %v2772_v9 = vld [vmem:[%s7124_s8] sm:$0xff] }
 0x4c4   :  { %2807 = vmatpush.msrb.mxu2 %v2772_v9  ;;  %v2405_v9 = vpop.f32.mrf.mxu0 }
 0x4c5   :  { %2689 = vmatpush.msrb.mxu0 %v2632_v8 }
 0x4c6   :  { %3716 = vmatmul.msk.f32.gmra.mxu2 %vm1969_vm3, %v1923_v22  ;;  %3727 = vmatmul.msk.f32.gmra.mxu3 %vm1969_vm3, %v1923_v22 }
 0x4c7   :  { %2690 = vmatpush.msrb.mxu0 %v2631_v36 }
 0x4c9   :  { %v6678_v1 = vpop.f32.mrf.mxu2  ;;  %v6680_v23 = vpop.f32.mrf.mxu3  ;;  %2691 = vmatpush.msrb.mxu0 %v2630_v6 }
 0x4cb   :  { %2692 = vmatpush.msrb.mxu0 %v2629_v41  ;;  %v2499_v41 = vld [vmem:[%s7126_s6] sm:$0x3] }
 0x4cc   :  { %v6755_v57 = vperm.slane %v2499_v41, 0  ;;  %v6757_v14 = vperm.slane %v2499_v41, 1  ;;  %v2408_v54 = vpop.f32.mrf.mxu0 }
 0x4cd   :  { %2693 = vmatpush.msrb.mxu0 %v2628_v12  ;;  %v2452_v12 = vpop.f32.mrf.mxu1 }
 0x4d1   :  { %v6691_v7 = vpop.f32.mrf.mxu2  ;;  %v6693_v25 = vpop.f32.mrf.mxu3 }
 0x4d5   :  { %v2455_v45 = vpop.f32.mrf.mxu1 }
 0x4d9   :  { %v6713_v22 = vpop.f32.mrf.mxu2  ;;  %v6715_v51 = vpop.f32.mrf.mxu3 }
 0x4e1   :  { %v6723_v48 = vpop.f32.mrf.mxu2  ;;  %v6725_v3 = vpop.f32.mrf.mxu3 }
 0x4e9   :  { %v6736_v59 = vpop.f32.mrf.mxu2  ;;  %v6738_v8 = vpop.f32.mrf.mxu3 }
 0x4f1   :  { %v6740_v26 = vpop.f32.mrf.mxu2  ;;  %v6742_v36 = vpop.f32.mrf.mxu3 }
 0x4f2   :  { %7433 = vst [vmem:[#allocation7_spill] sm:$0xff] %v6740_v26 }
 0x4f3   :  { %7434 = vst [vmem:[#allocation93_spill] sm:$0xff] %v6742_v36 }
 0x4f9   :  { %v6744_v6 = vpop.f32.mrf.mxu2  ;;  %v6746_v61 = vpop.f32.mrf.mxu3 }
 0x4fa   :  { %7435 = vst [vmem:[#allocation22_spill] sm:$0xff] %v6744_v6  ;;  %v2403_v6 = vadd.f32 %v2402_v21, %v6494_v46  ;;  %v2353_v46 = vadd.f32 %v6635_v42, %v6367_v13  ;;  %v2356_v42 = vadd.f32 %v6662_v55, %v6382_v47 }
 0x4fb   :  { %7436 = vst [vmem:[#allocation122_spill] sm:$0xff] %v6746_v61  ;;  %v2450_v61 = vadd.f32 %v2449_v15, %v6496_v4  ;;  %v2453_v4 = vadd.f32 %v2452_v12, %v6504_v20  ;;  %v2458_v20 = vpop.f32.mrf.mxu1  ;;  %v2359_v12 = vadd.f32 %v6680_v23, %v6398_v35 }
 0x4fc   :  { %v2479_v16 = vadd.f32 %v2403_v6, %v2303_v60 }
 0x4fd   :  { %v2480_v26 = vadd.f32 %v2450_v61, %v2350_v18  ;;  %v2406_v18 = vadd.f32 %v2405_v9, %v6502_v29  ;;  %v2411_v29 = vpop.f32.mrf.mxu0  ;;  %v2312_v9 = vadd.f32 %v6678_v1, %v6396_v62 }
 0x501   :  { %v2531_v40 = vpop.f32.mrf.mxu2  ;;  %v2578_v36 = vpop.f32.mrf.mxu3 }
 0x502   :  { %v2532_v34 = vadd.f32 %v2531_v40, %v6755_v57  ;;  %v2579_v63 = vadd.f32 %v2578_v36, %v6757_v14  ;;  %v2482_v40 = vadd.f32 %v2453_v4, %v2353_v46  ;;  %v2456_v36 = vadd.f32 %v2455_v45, %v6512_v32 }
 0x503   :  { %v2459_v32 = vadd.f32 %v2458_v20, %v6520_v56  ;;  %v2461_v35 = vpop.f32.mrf.mxu1 }
 0x504   :  { %v2608_v24 = vadd.f32 %v2532_v34, %v2479_v16  ;;  %v2609_v5 = vadd.f32 %v2579_v63, %v2480_v26  ;;  %v2481_v63 = vadd.f32 %v2406_v18, %v2306_v37  ;;  %v2409_v26 = vadd.f32 %v2408_v54, %v6510_v43 }
 0x505   :  { %v2484_v41 = vadd.f32 %v2456_v36, %v2356_v42  ;;  %v2412_v43 = vadd.f32 %v2411_v29, %v6518_v27  ;;  %v2486_v45 = vadd.f32 %v2459_v32, %v2359_v12  ;;  %v2414_v1 = vpop.f32.mrf.mxu0  ;;  %v2315_v18 = vadd.f32 %v6691_v7, %v6410_v30  ;;  %v7437_v32 = vld [vmem:[#allocation91_spill] sm:$0xff] }
 0x506   :  { %2694 = vmatmul.f32.vlgmr.msrb.gmra.mxu0 %v2608_v24  ;;  %3728 = vmatmul.msk.f32.vlgmr.msrb.gmra.mxu1 %vm99_vm0, %v2609_v5  ;;  %v2483_v6 = vadd.f32 %v2409_v26, %v2309_v19  ;;  %v2362_v27 = vadd.f32 %v6693_v25, %v6412_v39  ;;  %v2415_v56 = vadd.f32 %v2414_v1, %v6526_v10 }
 0x507   :  { %2808 = vmatmul.f32.vlgmr.msrb.gmra.mxu2 %v2608_v24  ;;  %3738 = vmatmul.msk.f32.vlgmr.msra.gmra.mxu3 %vm99_vm0, %v2609_v5  ;;  %v2485_v5 = vadd.f32 %v2412_v43, %v2312_v9  ;;  %v2462_v4 = vadd.f32 %v2461_v35, %v6528_v38  ;;  %v2365_v10 = vadd.f32 %v6715_v51, %v6426_v58  ;;  %v7439_v35 = vld [vmem:[#allocation4_spill] sm:$0xff] }
 0x508   :  { %v2321_v51 = vadd.f32 %v6723_v48, %v6438_v28  ;;  %v2368_v36 = vadd.f32 %v6725_v3, %v6440_v44  ;;  %v3768_v28 = vld [vmem:[%s7127_s9 + $0xe8] sm:$0xff]  ;;  %v2324_v12 = vadd.f32 %v6736_v59, %v6452_v0 }
 0x509   :  { %v2534_v34 = vpop.f32.mrf.mxu2  ;;  %v2581_v16 = vpop.f32.mrf.mxu3  ;;  %3034 = vmatpush.msrb.mxu3 %v3768_v28 }
 0x50a   :  { %v2535_v60 = vadd.f32 %v2534_v34, %v6755_v57  ;;  %v2582_v52 = vadd.f32 %v2581_v16, %v6757_v14 }
 0x50c   :  { %v2610_v61 = vadd.f32 %v2535_v60, %v2481_v63  ;;  %v2611_v13 = vadd.f32 %v2582_v52, %v2482_v40  ;;  %v2487_v63 = vadd.f32 %v2415_v56, %v2315_v18  ;;  %v2488_v40 = vadd.f32 %v2462_v4, %v2362_v27  ;;  %v2464_v52 = vpop.f32.mrf.mxu1  ;;  %v7441_v18 = vld [vmem:[#allocation89_spill] sm:$0xff] }
 0x50d   :  { %v2417_v25 = vpop.f32.mrf.mxu0  ;;  %v7442_v27 = vld [vmem:[#allocation93_spill] sm:$0xff] }
 0x50e   :  { %2697 = vmatmul.f32.gmra.mxu0 %v2610_v61  ;;  %3729 = vmatmul.msk.f32.gmra.mxu1 %vm99_vm0, %v2611_v13  ;;  %v2418_v38 = vadd.f32 %v2417_v25, %v6534_v31  ;;  %v2374_v56 = vadd.f32 %v7442_v27, %v7441_v18  ;;  %v3774_v18 = vld [vmem:[%s7127_s9 + $0x118] sm:$0xff]  ;;  %v3748_v27 = vld [vmem:[%s7127_s9 + $0x50] sm:$0xff] }
 0x50f   :  { %2811 = vmatmul.f32.gmra.mxu2 %v2610_v61  ;;  %3739 = vmatmul.msk.f32.gmra.mxu3 %vm99_vm0, %v2611_v13  ;;  %v2318_v61 = vadd.f32 %v6713_v22, %v6424_v17  ;;  %v2465_v13 = vadd.f32 %v2464_v52, %v6536_v53 }
 0x511   :  { %v2537_v21 = vpop.f32.mrf.mxu2  ;;  %v2584_v15 = vpop.f32.mrf.mxu3  ;;  %v2489_v29 = vadd.f32 %v2418_v38, %v2318_v61  ;;  %v2490_v20 = vadd.f32 %v2465_v13, %v2365_v10  ;;  %v7445_v13 = vld [vmem:[#allocation11_spill] sm:$0xff] }
 0x512   :  { %v2538_v11 = vadd.f32 %v2537_v21, %v6755_v57  ;;  %v2585_v47 = vadd.f32 %v2584_v15, %v6757_v14  ;;  %v3757_v21 = vld [vmem:[%s7127_s9 + $0x98] sm:$0xff]  ;;  %v2910_v15 = vld [vmem:[%s7127_s9 + $0x48] sm:$0xff] }
 0x513   :  { %2932 = vmatpush.msra.mxu0 %v3757_v21  ;;  %3011 = vmatpush.msra.mxu2 %v2910_v15 }
 0x514   :  { %v2612_v49 = vadd.f32 %v2538_v11, %v2483_v6  ;;  %v2613_v55 = vadd.f32 %v2585_v47, %v2484_v41  ;;  %v2467_v53 = vpop.f32.mrf.mxu1 }
 0x515   :  { %v2420_v31 = vpop.f32.mrf.mxu0  ;;  %v2468_v48 = vadd.f32 %v2467_v53, %v6544_v50 }
 0x516   :  { %2700 = vmatmul.f32.gmra.mxu0 %v2612_v49  ;;  %3730 = vmatmul.msk.f32.gmra.mxu1 %vm99_vm0, %v2613_v55  ;;  %v2421_v44 = vadd.f32 %v2420_v31, %v6542_v2  ;;  %v2371_v2 = vadd.f32 %v6738_v8, %v6454_v33 }
 0x517   :  { %2814 = vmatmul.f32.gmra.mxu2 %v2612_v49  ;;  %3740 = vmatmul.msk.f32.gmra.mxu3 %vm99_vm0, %v2613_v55  ;;  %v2492_v11 = vadd.f32 %v2468_v48, %v2368_v36  ;;  %v7450_v36 = vld [vmem:[#allocation121_spill] sm:$0xff] }
 0x518   :  { %v2491_v41 = vadd.f32 %v2421_v44, %v2321_v51 }
 0x519   :  { %v2540_v54 = vpop.f32.mrf.mxu2  ;;  %v2587_v24 = vpop.f32.mrf.mxu3 }
 0x51a   :  { %v2541_v37 = vadd.f32 %v2540_v54, %v6755_v57  ;;  %v2588_v62 = vadd.f32 %v2587_v24, %v6757_v14  ;;  %v7438_v24 = vld [vmem:[#allocation18_spill] sm:$0xff] }
 0x51c   :  { %v2614_v23 = vadd.f32 %v2541_v37, %v2485_v5  ;;  %v2615_v46 = vadd.f32 %v2588_v62, %v2486_v45  ;;  %v2470_v43 = vpop.f32.mrf.mxu1 }
 0x51d   :  { %v2423_v50 = vpop.f32.mrf.mxu0  ;;  %v2471_v5 = vadd.f32 %v2470_v43, %v7438_v24  ;;  %v2904_v43 = vld [vmem:[%s7127_s9 + $0x18] sm:$0xff]  ;;  %v3776_v24 = vld [vmem:[%s7127_s9 + $0x128] sm:$0xff] }
 0x51e   :  { %2703 = vmatmul.f32.gmra.mxu0 %v2614_v23  ;;  %3731 = vmatmul.msk.f32.gmra.mxu1 %vm99_vm0, %v2615_v46  ;;  %v2424_v54 = vadd.f32 %v2423_v50, %v7437_v32  ;;  %v3766_v50 = vld [vmem:[%s7127_s9 + $0xd8] sm:$0xff]  ;;  %v2903_v32 = vld [vmem:[%s7127_s9 + $0x10] sm:$0xff] }
 0x51f   :  { %2817 = vmatmul.f32.gmra.mxu2 %v2614_v23  ;;  %3741 = vmatmul.msk.f32.gmra.mxu3 %vm99_vm0, %v2615_v46  ;;  %v2494_v1 = vadd.f32 %v2471_v5, %v2371_v2  ;;  %v7440_v23 = vld [vmem:[#allocation7_spill] sm:$0xff]  ;;  %v2901_v5 = vld [vmem:[%s7127_s9] sm:$0xff] }
 0x520   :  { %v2493_v62 = vadd.f32 %v2424_v54, %v2324_v12  ;;  %v2327_v46 = vadd.f32 %v7440_v23, %v7439_v35  ;;  %v2905_v12 = vld [vmem:[%s7127_s9 + $0x20] sm:$0xff]  ;;  %v3755_v2 = vld [vmem:[%s7127_s9 + $0x88] sm:$0xff] }
 0x521   :  { %v2543_v34 = vpop.f32.mrf.mxu2  ;;  %v2590_v16 = vpop.f32.mrf.mxu3  ;;  %v2902_v54 = vld [vmem:[%s7127_s9 + $0x8] sm:$0xff]  ;;  %v3750_v23 = vld [vmem:[%s7127_s9 + $0x60] sm:$0xff] }
 0x522   :  { %v2544_v60 = vadd.f32 %v2543_v34, %v6755_v57  ;;  %v2591_v30 = vadd.f32 %v2590_v16, %v6757_v14  ;;  %v7443_v16 = vld [vmem:[#allocation6_spill] sm:$0xff] }
 0x524   :  { %v2616_v7 = vadd.f32 %v2544_v60, %v2487_v63  ;;  %v2617_v39 = vadd.f32 %v2591_v30, %v2488_v40  ;;  %v2473_v34 = vpop.f32.mrf.mxu1  ;;  %v7444_v40 = vld [vmem:[#allocation92_spill] sm:$0xff] }
 0x525   :  { %v2426_v4 = vpop.f32.mrf.mxu0  ;;  %v2474_v60 = vadd.f32 %v2473_v34, %v7444_v40  ;;  %v3773_v40 = vld [vmem:[%s7127_s9 + $0x110] sm:$0xff] }
 0x526   :  { %2706 = vmatmul.f32.gmra.mxu0 %v2616_v7  ;;  %3732 = vmatmul.msk.f32.gmra.mxu1 %vm99_vm0, %v2617_v39  ;;  %v2427_v63 = vadd.f32 %v2426_v4, %v7443_v16 }
 0x527   :  { %2820 = vmatmul.f32.gmra.mxu2 %v2616_v7  ;;  %3742 = vmatmul.msk.f32.gmra.mxu3 %vm99_vm0, %v2617_v39  ;;  %v2496_v25 = vadd.f32 %v2474_v60, %v2374_v56  ;;  %v3763_v56 = vld [vmem:[%s7127_s9 + $0xc0] sm:$0xff]  ;;  %v3762_v60 = vld [vmem:[%s7127_s9 + $0xb8] sm:$0xff] }
 0x528   :  { %v2495_v39 = vadd.f32 %v2427_v63, %v2327_v46  ;;  %v3749_v46 = vld [vmem:[%s7127_s9 + $0x58] sm:$0xff] }
 0x529   :  { %v2546_v19 = vpop.f32.mrf.mxu2  ;;  %v2593_v42 = vpop.f32.mrf.mxu3 }
 0x52a   :  { %v2547_v26 = vadd.f32 %v2546_v19, %v6755_v57  ;;  %v2594_v17 = vadd.f32 %v2593_v42, %v6757_v14  ;;  %v7446_v19 = vld [vmem:[#allocation22_spill] sm:$0xff] }
 0x52b   :  { %v2330_v42 = vadd.f32 %v7446_v19, %v7445_v13  ;;  %v3761_v13 = vld [vmem:[%s7127_s9 + $0xb0] sm:$0xff] }
 0x52c   :  { %v2618_v22 = vadd.f32 %v2547_v26, %v2489_v29  ;;  %v2619_v58 = vadd.f32 %v2594_v17, %v2490_v20  ;;  %v7447_v29 = vld [vmem:[#allocation5_spill] sm:$0xff]  ;;  %v7448_v20 = vld [vmem:[#allocation122_spill] sm:$0xff] }
 0x52d   :  { %v2377_v26 = vadd.f32 %v7448_v20, %v7447_v29  ;;  %v2429_v17 = vpop.f32.mrf.mxu0  ;;  %v3760_v29 = vld [vmem:[%s7127_s9 + $0xa8] sm:$0xff] }
 0x52e   :  { %2709 = vmatmul.f32.gmra.mxu0 %v2618_v22  ;;  %3733 = vmatmul.msk.f32.gmra.mxu1 %vm99_vm0, %v2619_v58 }
 0x52f   :  { %2823 = vmatmul.f32.gmra.mxu2 %v2618_v22  ;;  %3743 = vmatmul.msk.f32.gmra.mxu3 %vm99_vm0, %v2619_v58  ;;  %v2476_v22 = vpop.f32.mrf.mxu1  ;;  %v7449_v58 = vld [vmem:[#allocation15_spill] sm:$0xff] }
 0x530   :  { %v2430_v51 = vadd.f32 %v2429_v17, %v7449_v58  ;;  %v2477_v31 = vadd.f32 %v2476_v22, %v7450_v36  ;;  %v3759_v17 = vld [vmem:[%s7127_s9 + $0xa0] sm:$0xff] }
 0x531   :  { %v2549_v3 = vpop.f32.mrf.mxu2  ;;  %v2596_v6 = vpop.f32.mrf.mxu3 }
 0x532   :  { %v2550_v47 = vadd.f32 %v2549_v3, %v6755_v57  ;;  %v2597_v49 = vadd.f32 %v2596_v6, %v6757_v14  ;;  %v2497_v15 = vadd.f32 %v2430_v51, %v2330_v42  ;;  %v2498_v28 = vadd.f32 %v2477_v31, %v2377_v26  ;;  %v3772_v26 = vld [vmem:[%s7127_s9 + $0x108] sm:$0xff]  ;;  %v3771_v31 = vld [vmem:[%s7127_s9 + $0x100] sm:$0xff] }
 0x534   :  { %v2620_v55 = vadd.f32 %v2550_v47, %v2491_v41  ;;  %v2621_v9 = vadd.f32 %v2597_v49, %v2492_v11  ;;  %v3778_v41 = vld [vmem:[%s7127_s9 + $0x138] sm:$0xff]  ;;  %v2909_v11 = vld [vmem:[%s7127_s9 + $0x40] sm:$0xff]  ;;  %v2907_v49 = vld [vmem:[%s7127_s9 + $0x30] sm:$0xff] }
 0x535   :  { %2977 = vmatpush.msra.mxu1 %v3778_v41  ;;  %3012 = vmatpush.msra.mxu2 %v2909_v11  ;;  %v2908_v47 = vld [vmem:[%s7127_s9 + $0x38] sm:$0xff] }
 0x536   :  { %2712 = vmatmul.f32.gmra.mxu0 %v2620_v55  ;;  %3734 = vmatmul.msk.f32.gmra.mxu1 %vm99_vm0, %v2621_v9 }
 0x537   :  { %2826 = vmatmul.f32.gmra.mxu2 %v2620_v55  ;;  %3744 = vmatmul.msk.f32.gmra.mxu3 %vm99_vm0, %v2621_v9  ;;  %v2906_v55 = vld [vmem:[%s7127_s9 + $0x28] sm:$0xff]  ;;  %v3777_v9 = vld [vmem:[%s7127_s9 + $0x130] sm:$0xff] }
 0x538   :  { %3013 = vmatpush.msra.mxu2 %v2908_v47  ;;  %2978 = vmatpush.msra.mxu1 %v3777_v9  ;;  %v3787_v9 = vld [vmem:[%s7127_s9 + $0x178] sm:$0xff] }
 0x539   :  { %v2552_v45 = vpop.f32.mrf.mxu2  ;;  %v2599_v37 = vpop.f32.mrf.mxu3 }
 0x53a   :  { %v2553_v0 = vadd.f32 %v2552_v45, %v6755_v57  ;;  %v2600_v33 = vadd.f32 %v2599_v37, %v6757_v14  ;;  %3014 = vmatpush.msra.mxu2 %v2907_v49  ;;  %v3754_v45 = vld [vmem:[%s7127_s9 + $0x80] sm:$0xff]  ;;  %2979 = vmatpush.msra.mxu1 %v3776_v24  ;;  %v3765_v37 = vld [vmem:[%s7127_s9 + $0xd0] sm:$0xff] }
 0x53b   :  { %v3769_v49 = vld [vmem:[%s7127_s9 + $0xf0] sm:$0xff]  ;;  %v3784_v24 = vld [vmem:[%s7127_s9 + $0x160] sm:$0xff] }
 0x53c   :  { %v2622_v59 = vadd.f32 %v2553_v0, %v2493_v62  ;;  %v2623_v8 = vadd.f32 %v2600_v33, %v2494_v1  ;;  %3015 = vmatpush.msra.mxu2 %v2906_v55  ;;  %v3753_v62 = vld [vmem:[%s7127_s9 + $0x78] sm:$0xff]  ;;  %v3775_v1 = vld [vmem:[%s7127_s9 + $0x120] sm:$0xff]  ;;  %v3752_v0 = vld [vmem:[%s7127_s9 + $0x70] sm:$0xff] }
 0x53d   :  { %2980 = vmatpush.msra.mxu1 %v3775_v1  ;;  %v3764_v33 = vld [vmem:[%s7127_s9 + $0xc8] sm:$0xff]  ;;  %v3788_v55 = vld [vmem:[%s7127_s9 + $0x180] sm:$0xff] }
 0x53e   :  { %2715 = vmatmul.f32.gmra.mxu0 %v2622_v59  ;;  %3735 = vmatmul.msk.f32.gmra.mxu1 %vm99_vm0, %v2623_v8 }
 0x53f   :  { %2829 = vmatmul.f32.gmra.mxu2 %v2622_v59  ;;  %3745 = vmatmul.msk.f32.gmra.mxu3 %vm99_vm0, %v2623_v8  ;;  %v3751_v59 = vld [vmem:[%s7127_s9 + $0x68] sm:$0xff] }
 0x540   :  { %3016 = vmatpush.msra.mxu2 %v2905_v12  ;;  %2981 = vmatpush.msra.mxu1 %v3774_v18  ;;  %v3781_v18 = vld [vmem:[%s7127_s9 + $0x148] sm:$0xff] }
 0x541   :  { %v2555_v30 = vpop.f32.mrf.mxu2  ;;  %v2602_v7 = vpop.f32.mrf.mxu3 }
 0x542   :  { %v2556_v52 = vadd.f32 %v2555_v30, %v6755_v57  ;;  %v2603_v61 = vadd.f32 %v2602_v7, %v6757_v14  ;;  %3017 = vmatpush.msra.mxu2 %v2904_v43  ;;  %2982 = vmatpush.msra.mxu1 %v3773_v40 }
 0x544   :  { %v2624_v10 = vadd.f32 %v2556_v52, %v2495_v39  ;;  %v2625_v38 = vadd.f32 %v2603_v61, %v2496_v25  ;;  %3018 = vmatpush.msra.mxu2 %v2903_v32  ;;  %2983 = vmatpush.msra.mxu1 %v3772_v26  ;;  %v3786_v32 = vld [vmem:[%s7127_s9 + $0x170] sm:$0xff] }
 0x546   :  { %2718 = vmatmul.f32.gmra.mxu0 %v2624_v10  ;;  %3736 = vmatmul.msk.f32.gmra.mxu1 %vm99_vm0, %v2625_v38 }
 0x547   :  { %2832 = vmatmul.f32.gmra.mxu2 %v2624_v10  ;;  %3746 = vmatmul.msk.f32.gmra.mxu3 %vm99_vm0, %v2625_v38 }
 0x548   :  { %3019 = vmatpush.msra.mxu2 %v2902_v54  ;;  %2984 = vmatpush.msra.mxu1 %v3771_v31  ;;  %v3785_v54 = vld [vmem:[%s7127_s9 + $0x168] sm:$0xff] }
 0x549   :  { %v2558_v53 = vpop.f32.mrf.mxu2  ;;  %v2605_v21 = vpop.f32.mrf.mxu3 }
 0x54a   :  { %v2559_v44 = vadd.f32 %v2558_v53, %v6755_v57  ;;  %v2606_v48 = vadd.f32 %v2605_v21, %v6757_v14  ;;  %v3756_v57 = vld [vmem:[%s7127_s9 + $0x90] sm:$0xff]  ;;  %v3767_v14 = vld [vmem:[%s7127_s9 + $0xe0] sm:$0xff]  ;;  %3020 = vmatpush.msra.mxu2 %v2901_v5 }
 0x54b   :  { %2933 = vmatpush.msra.mxu0 %v3756_v57  ;;  %3035 = vmatpush.msrb.mxu3 %v3767_v14  ;;  %v3770_v57 = vld [vmem:[%s7127_s9 + $0xf8] sm:$0xff]  ;;  %v3789_v14 = vld [vmem:[%s7127_s9 + $0x188] sm:$0xff] }
 0x54c   :  { %v2626_v3 = vadd.f32 %v2559_v44, %v2497_v15  ;;  %v2627_v6 = vadd.f32 %v2606_v48, %v2498_v28  ;;  %2985 = vmatpush.msra.mxu1 %v3770_v57  ;;  %v3084_v57 = vld [vmem:[%s7130_s11 + $0x38] sm:$0xff] }
 0x54d   :  { %2934 = vmatpush.msra.mxu0 %v3755_v2  ;;  %3036 = vmatpush.msrb.mxu3 %v3766_v50 }
 0x54e   :  { %2721 = vmatmul.f32.gmra.mxu0 %v2626_v3  ;;  %3737 = vmatmul.msk.f32.gmra.mxu1 %vm99_vm0, %v2627_v6 }
 0x54f   :  { %2835 = vmatmul.f32.gmra.mxu2 %v2626_v3  ;;  %3747 = vmatmul.msk.f32.gmra.mxu3 %vm99_vm0, %v2627_v6 }
 0x550   :  { %2935 = vmatpush.msra.mxu0 %v3754_v45  ;;  %3037 = vmatpush.msrb.mxu3 %v3765_v37  ;;  %v3783_v45 = vld [vmem:[%s7127_s9 + $0x158] sm:$0xff] }
 0x551   :  { %2986 = vmatpush.msra.mxu1 %v3769_v49  ;;  %v3081_v49 = vld [vmem:[%s7130_s11 + $0x20] sm:$0xff] }
 0x552   :  { %2936 = vmatpush.msra.mxu0 %v3753_v62  ;;  %3038 = vmatpush.msrb.mxu3 %v3764_v33 }
 0x554   :  { %2937 = vmatpush.msra.mxu0 %v3752_v0  ;;  %3039 = vmatpush.msrb.mxu3 %v3763_v56  ;;  %v3780_v56 = vld [vmem:[%s7127_s9 + $0x140] sm:$0xff] }
 0x556   :  { %2938 = vmatpush.msra.mxu0 %v3751_v59  ;;  %3040 = vmatpush.msrb.mxu3 %v3762_v60 }
 0x558   :  { %2939 = vmatpush.msra.mxu0 %v3750_v23  ;;  %3041 = vmatpush.msrb.mxu3 %v3761_v13 }
 0x55a   :  { %2940 = vmatpush.msra.mxu0 %v3749_v46  ;;  %3042 = vmatpush.msrb.mxu3 %v3760_v29 }
 0x55c   :  { %2941 = vmatpush.msra.mxu0 %v3748_v27  ;;  %3043 = vmatpush.msrb.mxu3 %v3759_v17 }
 0x55e   :  { %3062 = vmatpush.msrb.mxu0 %v3789_v14  ;;  %v3083_v14 = vld [vmem:[%s7130_s11 + $0x30] sm:$0xff] }
 0x560   :  { %3063 = vmatpush.msrb.mxu0 %v3788_v55  ;;  %v3080_v55 = vld [vmem:[%s7130_s11 + $0x18] sm:$0xff] }
 0x562   :  { %3064 = vmatpush.msrb.mxu0 %v3787_v9  ;;  %v3079_v9 = vld [vmem:[%s7130_s11 + $0x10] sm:$0xff] }
 0x564   :  { %3065 = vmatpush.msrb.mxu0 %v3786_v32  ;;  %v3130_v32 = vld [vmem:[%s7131_s13 + $0x68] sm:$0xff] }
 0x566   :  { %3066 = vmatpush.msrb.mxu0 %v3785_v54  ;;  %v3129_v54 = vld [vmem:[%s7131_s13 + $0x60] sm:$0xff] }
 0x568   :  { %3067 = vmatpush.msrb.mxu0 %v3784_v24  ;;  %v3128_v24 = vld [vmem:[%s7131_s13 + $0x58] sm:$0xff] }
 0x56a   :  { %3068 = vmatpush.msrb.mxu0 %v3783_v45  ;;  %v3126_v45 = vld [vmem:[%s7131_s13 + $0x48] sm:$0xff] }
 0x583   :  { %v2695_v8 = vpop.f32.mrf.mxu0  ;;  %v2742_v35 = vpop.f32.mrf.mxu1 }
 0x584   :  { %v2743_v25 = vadd.f32 %v2742_v35, %v2695_v8  ;;  %v3782_v35 = vld [vmem:[%s7127_s9 + $0x150] sm:$0xff] }
 0x585   :  { %3069 = vmatpush.msrb.mxu0 %v3782_v35  ;;  %v3120_v35 = vld [vmem:[%s7131_s13 + $0x18] sm:$0xff] }
 0x587   :  { %3070 = vmatpush.msrb.mxu0 %v3781_v18  ;;  %v3797_v18 = vld [vmem:[%s7128_s10] ss:$0 sm:$0xff] }
 0x589   :  { %3071 = vmatpush.msrb.mxu0 %v3780_v56 }
 0x58a   :  { %v2809_v4 = vpop.f32.mrf.mxu2  ;;  %v2856_v34 = vpop.f32.mrf.mxu3 }
 0x58b   :  { %v2698_v16 = vpop.f32.mrf.mxu0  ;;  %v2745_v63 = vpop.f32.mrf.mxu1  ;;  %v2857_v30 = vadd.f32 %v2856_v34, %v2809_v4 }
 0x58c   :  { %v2746_v52 = vadd.f32 %v2745_v63, %v2698_v16 }
 0x58d   :  { %v2886_v19 = vmax.f32 %v2743_v25, %v2857_v30 }
 0x592   :  { %v2812_v7 = vpop.f32.mrf.mxu2  ;;  %v2859_v39 = vpop.f32.mrf.mxu3 }
 0x593   :  { %v2860_v61 = vadd.f32 %v2859_v39, %v2812_v7  ;;  %v2701_v10 = vpop.f32.mrf.mxu0  ;;  %v2748_v38 = vpop.f32.mrf.mxu1 }
 0x594   :  { %v2749_v28 = vadd.f32 %v2748_v38, %v2701_v10 }
 0x595   :  { %v2887_v42 = vmax.f32 %v2746_v52, %v2860_v61 }
 0x597   :  { %v2896_v20 = vmax.f32 %v2886_v19, %v2887_v42 }
 0x599   :  { %3790 = vmatmul.msk.f32.vlgmr.msra.gmra.mxu2 %vm2922_vm4, %v2896_v20 }
 0x59a   :  { %v2815_v22 = vpop.f32.mrf.mxu2  ;;  %v2862_v58 = vpop.f32.mrf.mxu3 }
 0x59b   :  { %v2704_v51 = vpop.f32.mrf.mxu0  ;;  %v2751_v36 = vpop.f32.mrf.mxu1  ;;  %v2863_v53 = vadd.f32 %v2862_v58, %v2815_v22 }
 0x59c   :  { %v2752_v44 = vadd.f32 %v2751_v36, %v2704_v51 }
 0x59d   :  { %v2888_v41 = vmax.f32 %v2749_v28, %v2863_v53  ;;  %v3091_v28 = vld [vmem:[%s7130_s11 + $0x70] sm:$0xff] }
 0x5a2   :  { %v2818_v21 = vpop.f32.mrf.mxu2  ;;  %v2865_v15 = vpop.f32.mrf.mxu3 }
 0x5a3   :  { %v2866_v48 = vadd.f32 %v2865_v15, %v2818_v21  ;;  %v2707_v3 = vpop.f32.mrf.mxu0  ;;  %v2754_v6 = vpop.f32.mrf.mxu1  ;;  %v3092_v15 = vld [vmem:[%s7130_s11 + $0x78] sm:$0xff] }
 0x5a4   :  { %v2755_v1 = vadd.f32 %v2754_v6, %v2707_v3  ;;  %3097 = vmatpush.msrb.mxu1 %v3092_v15  ;;  %v3088_v3 = vld [vmem:[%s7130_s11 + $0x58] sm:$0xff]  ;;  %v3087_v6 = vld [vmem:[%s7130_s11 + $0x50] sm:$0xff] }
 0x5a5   :  { %v2889_v11 = vmax.f32 %v2752_v44, %v2866_v48  ;;  %v3090_v44 = vld [vmem:[%s7130_s11 + $0x68] sm:$0xff]  ;;  %v3089_v48 = vld [vmem:[%s7130_s11 + $0x60] sm:$0xff] }
 0x5a6   :  { %3098 = vmatpush.msrb.mxu1 %v3091_v28 }
 0x5a7   :  { %v2897_v47 = vmax.f32 %v2888_v41, %v2889_v11  ;;  %v3086_v41 = vld [vmem:[%s7130_s11 + $0x48] sm:$0xff]  ;;  %v3085_v11 = vld [vmem:[%s7130_s11 + $0x40] sm:$0xff] }
 0x5a8   :  { %3099 = vmatpush.msrb.mxu1 %v3090_v44 }
 0x5a9   :  { %3758 = vmatmul.msk.f32.vlgmr.msra.gmra.mxu0 %vm2922_vm4, %v2897_v47  ;;  %v3082_v47 = vld [vmem:[%s7130_s11 + $0x28] sm:$0xff] }
 0x5aa   :  { %v2821_v12 = vpop.f32.mrf.mxu2  ;;  %v2868_v2 = vpop.f32.mrf.mxu3  ;;  %3100 = vmatpush.msrb.mxu1 %v3089_v48 }
 0x5ab   :  { %v2710_v50 = vpop.f32.mrf.mxu0  ;;  %v2757_v43 = vpop.f32.mrf.mxu1  ;;  %v2869_v5 = vadd.f32 %v2868_v2, %v2821_v12  ;;  %v3078_v12 = vld [vmem:[%s7130_s11 + $0x8] sm:$0xff]  ;;  %v3077_v2 = vld [vmem:[%s7130_s11] sm:$0xff] }
 0x5ac   :  { %v2758_v0 = vadd.f32 %v2757_v43, %v2710_v50  ;;  %3101 = vmatpush.msrb.mxu1 %v3088_v3  ;;  %v3132_v50 = vld [vmem:[%s7131_s13 + $0x78] sm:$0xff]  ;;  %v3131_v43 = vld [vmem:[%s7131_s13 + $0x70] sm:$0xff] }
 0x5ad   :  { %v2890_v23 = vmax.f32 %v2755_v1, %v2869_v5  ;;  %3137 = vmatpush.msrb.mxu2 %v3132_v50  ;;  %v3127_v5 = vld [vmem:[%s7131_s13 + $0x50] sm:$0xff] }
 0x5ae   :  { %3102 = vmatpush.msrb.mxu1 %v3087_v6  ;;  %v3123_v1 = vld [vmem:[%s7131_s13 + $0x30] sm:$0xff] }
 0x5af   :  { %3138 = vmatpush.msrb.mxu2 %v3131_v43 }
 0x5b0   :  { %3103 = vmatpush.msrb.mxu1 %v3086_v41 }
 0x5b1   :  { %3139 = vmatpush.msrb.mxu2 %v3130_v32 }
 0x5b2   :  { %v2824_v37 = vpop.f32.mrf.mxu2  ;;  %v2871_v62 = vpop.f32.mrf.mxu3  ;;  %3104 = vmatpush.msrb.mxu1 %v3085_v11 }
 0x5b3   :  { %v2872_v33 = vadd.f32 %v2871_v62, %v2824_v37  ;;  %v2713_v59 = vpop.f32.mrf.mxu0  ;;  %v2760_v8 = vpop.f32.mrf.mxu1  ;;  %3140 = vmatpush.msrb.mxu2 %v3129_v54  ;;  %v3125_v37 = vld [vmem:[%s7131_s13 + $0x40] sm:$0xff]  ;;  %v3124_v62 = vld [vmem:[%s7131_s13 + $0x38] sm:$0xff] }
 0x5b4   :  { %v2761_v7 = vadd.f32 %v2760_v8, %v2713_v59  ;;  %3105 = vmatpush.msrb.mxu1 %v3084_v57  ;;  %v3121_v59 = vld [vmem:[%s7131_s13 + $0x20] sm:$0xff] }
 0x5b5   :  { %v2891_v46 = vmax.f32 %v2758_v0, %v2872_v33  ;;  %3141 = vmatpush.msrb.mxu2 %v3128_v24  ;;  %v3122_v0 = vld [vmem:[%s7131_s13 + $0x28] sm:$0xff] }
 0x5b6   :  { %3106 = vmatpush.msrb.mxu1 %v3083_v14 }
 0x5b7   :  { %v2898_v27 = vmax.f32 %v2890_v23, %v2891_v46  ;;  %3142 = vmatpush.msrb.mxu2 %v3127_v5 }
 0x5b8   :  { %3107 = vmatpush.msrb.mxu1 %v3082_v47 }
 0x5b9   :  { %3791 = vmatmul.msk.f32.vlgmr.msrb.gmra.mxu3 %vm2922_vm4, %v2898_v27  ;;  %3143 = vmatpush.msrb.mxu2 %v3126_v45  ;;  %v3119_v27 = vld [vmem:[%s7131_s13 + $0x10] sm:$0xff] }
 0x5ba   :  { %v2827_v4 = vpop.f32.mrf.mxu2  ;;  %v2874_v34 = vpop.f32.mrf.mxu3  ;;  %3108 = vmatpush.msrb.mxu1 %v3081_v49 }
 0x5bb   :  { %v2716_v16 = vpop.f32.mrf.mxu0  ;;  %v2763_v63 = vpop.f32.mrf.mxu1  ;;  %v2875_v40 = vadd.f32 %v2874_v34, %v2827_v4  ;;  %3144 = vmatpush.msrb.mxu2 %v3125_v37 }
 0x5bc   :  { %v2764_v39 = vadd.f32 %v2763_v63, %v2716_v16  ;;  %3109 = vmatpush.msrb.mxu1 %v3080_v55 }
 0x5bd   :  { %v2892_v52 = vmax.f32 %v2761_v7, %v2875_v40  ;;  %3145 = vmatpush.msrb.mxu2 %v3124_v62  ;;  %v3798_v7 = vld [vmem:[%s7129_s12] ss:$0 sm:$0xff] }
 0x5be   :  { %3110 = vmatpush.msrb.mxu1 %v3079_v9 }
 0x5bf   :  { %3146 = vmatpush.msrb.mxu2 %v3123_v1 }
 0x5c0   :  { %3111 = vmatpush.msrb.mxu1 %v3078_v12 }
 0x5c1   :  { %3147 = vmatpush.msrb.mxu2 %v3122_v0 }
 0x5c2   :  { %v2830_v60 = vpop.f32.mrf.mxu2  ;;  %v2877_v30 = vpop.f32.mrf.mxu3  ;;  %3112 = vmatpush.msrb.mxu1 %v3077_v2 }
 0x5c3   :  { %v2878_v25 = vadd.f32 %v2877_v30, %v2830_v60  ;;  %v2719_v10 = vpop.f32.mrf.mxu0  ;;  %v2766_v38 = vpop.f32.mrf.mxu1  ;;  %3148 = vmatpush.msrb.mxu2 %v3121_v59  ;;  %v3118_v60 = vld [vmem:[%s7131_s13 + $0x8] sm:$0xff]  ;;  %v3117_v30 = vld [vmem:[%s7131_s13] sm:$0xff] }
 0x5c4   :  { %v2767_v58 = vadd.f32 %v2766_v38, %v2719_v10 }
 0x5c5   :  { %v2893_v61 = vmax.f32 %v2764_v39, %v2878_v25  ;;  %3149 = vmatpush.msrb.mxu2 %v3120_v35 }
 0x5c7   :  { %v2899_v13 = vmax.f32 %v2892_v52, %v2893_v61  ;;  %3150 = vmatpush.msrb.mxu2 %v3119_v27  ;;  %v3799_v52 = vld [vmem:[%s7132_s14] ss:$0 sm:$0xff] }
 0x5c9   :  { %3779 = vmatmul.msk.f32.vlgmr.msra.gmra.mxu1 %vm2922_vm4, %v2899_v13  ;;  %3151 = vmatpush.msrb.mxu2 %v3118_v60 }
 0x5ca   :  { %v2833_v19 = vpop.f32.mrf.mxu2  ;;  %v2880_v42 = vpop.f32.mrf.mxu3 }
 0x5cb   :  { %v2722_v29 = vpop.f32.mrf.mxu0  ;;  %v2769_v20 = vpop.f32.mrf.mxu1  ;;  %v2881_v26 = vadd.f32 %v2880_v42, %v2833_v19  ;;  %3152 = vmatpush.msrb.mxu2 %v3117_v30 }
 0x5cc   :  { %v2770_v51 = vadd.f32 %v2769_v20, %v2722_v29 }
 0x5cd   :  { %v2894_v31 = vmax.f32 %v2767_v58, %v2881_v26 }
 0x5d2   :  { %v2836_v17 = vpop.f32.mrf.mxu2  ;;  %v2883_v22 = vpop.f32.mrf.mxu3 }
 0x5d3   :  { %v2884_v36 = vadd.f32 %v2883_v22, %v2836_v17 }
 0x5d5   :  { %v2895_v53 = vmax.f32 %v2770_v51, %v2884_v36 }
 0x5d7   :  { %v2900_v21 = vmax.f32 %v2894_v31, %v2895_v53 }
 0x5d9   :  { %3792 = vmatmul.msk.f32.vlgmr.msrb.gmra.mxu0 %vm2922_vm4, %v2900_v21 }
 0x61c   :  { %v3022_v56 = vpop.f32.mrf.mxu2 }
 0x626   :  { %v2943_v33 = vpop.f32.mrf.mxu0 }
 0x627   :  { %v3023_v4 = vadd.f32 %v3022_v56, %v2943_v33 }
 0x63c   :  { %v3045_v23 = vpop.f32.mrf.mxu3 }
 0x646   :  { %v2988_v8 = vpop.f32.mrf.mxu1 }
 0x647   :  { %v3046_v46 = vadd.f32 %v3045_v23, %v2988_v8 }
 0x649   :  { %v3048_v16 = vadd.f32 %v3046_v46, %v3023_v4 }
 0x656   :  { %v3073_v34 = vpop.f32.mrf.mxu0 }
 0x657   :  { %v3074_v63 = vadd.f32 %v3797_v18, %v3073_v34 }
 0x659   :  { %v3076_v40 = vadd.f32 %v3074_v63, %v3048_v16 }
 0x65b   :  { %3113 = vmatmul.f32.vlgmr.msrb.gmra.mxu1 %v3076_v40 }
 0x6d8   :  { %v3114_v39 = vpop.f32.mrf.mxu1 }
 0x6d9   :  { %v3115_v25 = vadd.f32 %v3798_v7, %v3114_v39 }
 0x6db   :  { %3153 = vmatmul.f32.vlgmr.msrb.gmra.mxu2 %v3115_v25 }
 0x75e   :  { %v3154_v61 = vpop.f32.mrf.mxu2 }
 0x75f   :  { %v3155_v10 = vadd.f32 %v3799_v52, %v3154_v61 }
 0x761   :  { %3157 = vst [vmem:[%s7133_s15] sm:$0xff] %v3155_v10 }

</bundles_post_ra>
